<compile_context>
chip_gen: v5e
topology: v5e:2x2
jax: 0.10.0
libtpu: 0.0.40
codegen_flags: <defaults>
</compile_context>

<pallas_src>
import functools
import math

import jax
import jax.numpy as jnp
from jax import lax
from jax.experimental import pallas as pl
from jax.experimental.pallas import tpu as pltpu

MIN_NORM = 1e-15
MIN_SS = 1e-30                      # MIN_NORM ** 2
KAPPAS = (-2.0, 2.0)                # (PoincareBall c=2, SphereProjection k=2)
NC_PAD = 128                        # lane-dense output width


def _round_up(x, m):
    return -(-x // m) * m


def _cdiv(a, b):
    return -(-a // b)


# ----------------------------- in-kernel math helpers -----------------------------

def _sum_sq(x):
    return jnp.sum(x * x, axis=-1, keepdims=True)


def _mxu(x, w):
    # x: (B, in) f32/bf16, w: (in, out) bf16 view of the packed weight buffer.
    # bf16 MXU operands, f32 accumulation.
    return lax.dot_general(x.astype(jnp.bfloat16), w, (((1,), (0,)), ((), ())),
                           preferred_element_type=jnp.float32)


def _artanh(x):
    x = jnp.clip(x, -1.0 + 1e-7, 1.0 - 1e-7)
    # 0.5*log((1+x)/(1-x)) without the divide (both logs go to the EUP slot).
    return 0.5 * (jnp.log(1.0 + x) - jnp.log(1.0 - x))


def _arctan_pos(x):
    # cephes atanf for x >= 0, basic VPU ops only (avoids lax.atan lowering).
    t3p8 = 2.414213562373095
    tp8 = 0.4142135623730951
    big = x > t3p8
    mid = jnp.logical_and(x > tp8, jnp.logical_not(big))
    xr = jnp.where(big, -1.0 / jnp.maximum(x, MIN_NORM),
                   jnp.where(mid, (x - 1.0) / (x + 1.0), x))
    yoff = jnp.where(big, math.pi / 2.0, jnp.where(mid, math.pi / 4.0, 0.0))
    z = xr * xr
    p = (((8.05374449538e-2 * z - 1.38776856032e-1) * z + 1.99777106478e-1) * z
         - 3.33329491539e-1) * z * xr + xr
    return yoff + p


def _tan_pos(x):
    # cephes tanf for x >= 0, basic VPU ops only (avoids lax.tan lowering).
    fopi = 1.2732395447351628
    dp1, dp2, dp3 = 0.78515625, 2.4187564849853515625e-4, 3.77489497744594108e-8
    j = jnp.floor(x * fopi)
    odd = j - 2.0 * jnp.floor(j * 0.5)          # j & 1
    y = j + odd                                  # adjusted j (always even)
    z = ((x - y * dp1) - y * dp2) - y * dp3
    zz = z * z
    poly = (((((9.38540185543e-3 * zz + 3.11992232697e-3) * zz + 2.44301354525e-2) * zz
              + 5.34112807005e-2) * zz + 1.33387994085e-1) * zz + 3.33331568548e-1)
    r = poly * zz * z + z
    flip = (y * 0.5) - 2.0 * jnp.floor(y * 0.25)  # bit1 of adjusted j
    r_safe = jnp.where(jnp.abs(r) < 1e-30, 1e-30, r)
    # exact divide kept in this branch (correctness concern)
    return jnp.where(flip > 0.5, -1.0 / r_safe, r)


def _tan_k(x, kappa):
    sk = math.sqrt(abs(kappa))
    inv_sk = 1.0 / sk
    if kappa < 0:
        return jnp.tanh(sk * x) * inv_sk
    return _tan_pos(sk * x) * inv_sk          # arguments are >= 0 by construction


def _artan_k(x, kappa):
    sk = math.sqrt(abs(kappa))
    inv_sk = 1.0 / sk
    if kappa < 0:
        return _artanh(sk * x) * inv_sk
    return _arctan_pos(sk * x) * inv_sk       # arguments are >= 0 by construction


def _projx_ss(x, ss, kappa):
    """projx with an already-known sum-of-squares; returns (projected x, its sum-of-squares)."""
    if kappa < 0:
        maxnorm = (1.0 - 4e-3) / math.sqrt(abs(kappa))   # geoopt float32 eps
        max_ss = maxnorm * maxnorm
        ss_c = jnp.maximum(ss, MIN_SS)
        inv_n = lax.rsqrt(ss_c)
        over = ss_c > max_ss
        x_p = jnp.where(over, x * (inv_n * maxnorm), x)
        ss_p = jnp.where(over, max_ss, ss)
        return x_p, ss_p
    return x, ss                                          # k > 0: maxnorm ~ 1e15 -> identity


def _expmap0(u, kappa):
    ss = jnp.maximum(_sum_sq(u), MIN_SS)
    inv_n = lax.rsqrt(ss)
    n = ss * inv_n                              # norm without a second EUP sqrt
    t = _tan_k(n, kappa)
    y = t * (u * inv_n)
    y, _ = _projx_ss(y, t * t, kappa)           # |u*inv_n| == 1 -> ss(y) == t^2
    return y


def _logmap0(y, kappa):
    ss = jnp.maximum(_sum_sq(y), MIN_SS)
    inv_n = lax.rsqrt(ss)
    n = ss * inv_n
    return _artan_k(n, kappa) * (y * inv_n)


def _mobius_add(x, y, kappa, x2=None):
    if x2 is None:
        x2 = _sum_sq(x)
    y2 = _sum_sq(y)
    xy = jnp.sum(x * y, axis=-1, keepdims=True)
    num = (1.0 - 2.0 * kappa * xy - kappa * y2) * x + (1.0 + kappa * x2) * y
    den = 1.0 - 2.0 * kappa * xy + (kappa ** 2) * x2 * y2
    return num / jnp.maximum(den, MIN_NORM)     # exact divide (den can be clamped tiny)


def _mobius_scalar_mul(r, x, kappa):
    """Returns (r (x) x, its sum-of-squares) so the caller's projx skips a reduce."""
    ss = jnp.maximum(_sum_sq(x), MIN_SS)
    inv_n = lax.rsqrt(ss)
    n = ss * inv_n
    t = _tan_k(r * _artan_k(n, kappa), kappa)
    return t * (x * inv_n), t * t


def _linear(x, w, b):
    # w is pre-transposed to (in, out); b is (1, out)
    return _mxu(x, w) + b


def _manifold_linear(x, w, b, kappa):
    # Manifold_Linear.forward: projx(mobius_add(mobius_matvec(W, x), bias))
    x_ss = jnp.maximum(_sum_sq(x), MIN_SS)
    inv_xn = lax.rsqrt(x_ss)
    x_n = x_ss * inv_xn
    mx = _mxu(x, w)
    mx_ss_raw = _sum_sq(mx)
    mx_ss = jnp.maximum(mx_ss_raw, MIN_SS)
    inv_mxn = lax.rsqrt(mx_ss)
    mx_n = mx_ss * inv_mxn
    t = _tan_k(mx_n * inv_xn * _artan_k(x_n, kappa), kappa)
    res = t * (mx * inv_mxn)
    is_zero = mx_ss_raw <= 0.0                      # reuse the sum-of-squares (no abs pass)
    mv = jnp.where(is_zero, 0.0, res)
    mv_ss = jnp.where(is_zero, 0.0, t * t)          # shared ss for projx/mobius_add
    mv, mv_ss = _projx_ss(mv, mv_ss, kappa)
    out = _mobius_add(mv, b, kappa, x2=mv_ss)
    out, _ = _projx_ss(out, _sum_sq(out), kappa)
    return out


# ----------------------------------- the Pallas kernel ------------------------------------

def _head_kernel(wl, bl, feat_ref, mask_ref, wbuf_ref, bbuf_ref, out_ref):
    def W(name):
        off, r, c = wl[name]
        return wbuf_ref[off:off + r, :c]          # bf16 (in, out) weight view

    def Bv(name):
        off, r, c = bl[name]
        return bbuf_ref[off:off + r, :c]          # f32 bias / row-vector view

    feat = feat_ref[...]                          # (BM, C*P) bf16, mask pre-applied
    mask = mask_ref[...]                          # (BM, P)   f32

    # masked mean-pool + embedding fused into one MXU matmul (K = C*P).
    denom = jnp.maximum(jnp.sum(mask, axis=-1, keepdims=True), 1.0)   # >= 1, approx-safe
    inv_den = pl.reciprocal(denom, approx=True)
    x_cls = _mxu(feat, W("emb_pool_w")) * inv_den + Bv("emb_b")       # (BM, D0)
    # TODO(synk): stand-in for the ParticleTransformer backbone (source not provided).

    man_proc_1 = []
    proc_log = []
    for m in range(2):
        kap = KAPPAS[m]
        h = _expmap0(x_cls, kap)                                                      # expmap0
        h = jnp.maximum(_manifold_linear(h, W(f"w11_{m}"), Bv(f"b11_{m}"), kap), 0.0)  # fc_X_1[0]
        h = jnp.maximum(_manifold_linear(h, W(f"w12_{m}"), Bv(f"b12_{m}"), kap), 0.0)  # fc_X_1[1]
        man_proc_1.append(h)
        wj = _linear(h, W(f"wjet_w_{m}"), Bv(f"wjet_b_{m}"))                          # W_jet[m]
        proc_log.append(_logmap0(wj, kap))

    mu = 0.5 * (proc_log[0] + proc_log[1])
    # Th_jet (out_features = 1): VPU multiply + lane reduce, no MXU round trip
    att = []
    for m in range(2):
        d = proc_log[m] - mu
        att.append(jnp.sum(d * Bv(f"th_w_{m}"), axis=-1, keepdims=True) + Bv(f"th_b_{m}"))

    # softmax over the manifold (stack) dimension
    amax = jnp.maximum(att[0], att[1])
    e0 = jnp.exp(att[0] - amax)
    e1 = jnp.exp(att[1] - amax)
    inv = pl.reciprocal(e0 + e1, approx=True)      # denominator >= 1
    w_soft = (e0 * inv, e1 * inv)

    man_log = []
    for m in range(2):
        kap = KAPPAS[m]
        sm, sm_ss = _mobius_scalar_mul(w_soft[m], man_proc_1[m], kap)                 # post-att
        h, _ = _projx_ss(sm, sm_ss, kap)
        h = jnp.maximum(_manifold_linear(h, W(f"w21_{m}"), Bv(f"b21_{m}"), kap), 0.0)  # fc_X_2[0]
        man_log.append(_logmap0(h, kap))

    # fc_final: pre-transposed, zero-padded to 128 output lanes (lane-dense store).
    logits = (_mxu(man_log[0], W("fcf_w_0"))
              + _mxu(man_log[1], W("fcf_w_1"))
              + Bv("fcf_b"))                                  # pad lanes biased to -1e30

    # for_inference = True -> softmax over classes; EXACT normalization (correctness concern).
    lmax = jnp.max(logits, axis=-1, keepdims=True)
    ex = jnp.exp(logits - lmax)
    out_ref[...] = ex / jnp.sum(ex, axis=-1, keepdims=True)


# --------------------------------------- wrapper -----------------------------------------

def _pack_params(params, P):
    """Pack parameters into two lane-aligned resident buffers.

    wbuf (bf16): all matmul weights, pre-transposed to (in, out) layout so dot_general
                 contracts (1, 0) with no per-step relayout; rows padded to multiples of 16
                 (bf16 sublane packing) so static slices are aligned views.
    bbuf (f32):  biases + Th_jet row vectors (all norm / manifold math stays f32)."""
    f32 = jnp.float32

    emb_w = jnp.asarray(params["emb_w"], f32)            # (D0, C) PyTorch layout
    D0, C = emb_w.shape
    # combined pool+embedding weight: W[c*P + p, d] = emb_w[d, c]
    emb_pool_w = jnp.repeat(emb_w.T[:, None, :], P, axis=1).reshape(C * P, D0)

    w_entries = [("emb_pool_w", emb_pool_w)]
    for m in range(2):
        w_entries += [
            (f"w11_{m}", jnp.asarray(params["w11"][m], f32).T),
            (f"w12_{m}", jnp.asarray(params["w12"][m], f32).T),
            (f"wjet_w_{m}", jnp.asarray(params["wjet_w"][m], f32).T),
            (f"w21_{m}", jnp.asarray(params["w21"][m], f32).T),
        ]
    fcf_w = jnp.asarray(params["fcf_w"], f32)             # (NC, 2*D2)
    NC, d2x2 = fcf_w.shape
    assert NC <= NC_PAD
    D2 = d2x2 // 2
    fcf_wt = jnp.zeros((d2x2, NC_PAD), f32).at[:, :NC].set(fcf_w.T)
    w_entries += [("fcf_w_0", fcf_wt[:D2]), ("fcf_w_1", fcf_wt[D2:])]

    wl = {}
    wblocks = []
    row = 0
    for name, a in w_entries:
        r, c = a.shape
        assert c <= 128
        r_pad = _round_up(r, 16)                           # bf16 sublane tile
        wblocks.append(jnp.pad(a, ((0, r_pad - r), (0, 128 - c))).astype(jnp.bfloat16))
        wl[name] = (row, r, c)
        row += r_pad
    wbuf = jnp.concatenate(wblocks, axis=0)                # (rows16, 128) bf16

    b_entries = [("emb_b", params["emb_b"])]
    for m in range(2):
        b_entries += [
            (f"b11_{m}", params["b11"][m]),
            (f"b12_{m}", params["b12"][m]),
            (f"wjet_b_{m}", params["wjet_b"][m]),
            (f"th_w_{m}", params["th_w"][m]),              # (1, A) row vector (VPU use)
            (f"th_b_{m}", params["th_b"][m]),              # (1, 1)
            (f"b21_{m}", params["b21"][m]),
        ]
    fcf_b = jnp.asarray(params["fcf_b"], f32)
    fcf_bp = jnp.full((1, NC_PAD), -1e30, f32).at[:, :NC].set(fcf_b[0])
    b_entries += [("fcf_b", fcf_bp)]

    bl = {}
    bblocks = []
    brow = 0
    for name, a in b_entries:
        a = jnp.asarray(a, f32)
        r, c = a.shape
        assert c <= 128
        r_pad = _round_up(r, 8)
        bblocks.append(jnp.pad(a, ((0, r_pad - r), (0, 128 - c))))
        bl[name] = (brow, r, c)
        brow += r_pad
    bbuf = jnp.concatenate(bblocks, axis=0)                # (rows8, 128) f32
    return wbuf, wl, bbuf, bl


def _choose_block(B):
    """Batch block size. Keep BM a multiple of 8, cap at 128, and when B > 8 use at
    least 2 grid steps so the 'parallel' axis lands on both v7x TensorCores."""
    b8 = _round_up(B, 8)
    if b8 <= 8:
        return b8, b8
    bm = min(128, _round_up(_cdiv(b8, 2), 8))
    return bm, _round_up(b8, bm)


def particle_transformer_wrapper_forward(points, features, lorentz_vectors, mask, params):
    # points / lorentz_vectors are only consumed by the (stubbed) backbone.
    del points, lorentz_vectors
    B, C, P = features.shape
    NC = params["fcf_w"].shape[0]

    # Mask multiply, flatten and bf16 cast fuse into a single XLA pass over the features;
    # the kernel then sees a dense, lane-friendly 2D (B, C*P) bf16 slab.
    feat2 = (features.astype(jnp.float32) * mask.astype(jnp.float32)
             ).reshape(B, C * P).astype(jnp.bfloat16)
    msk = mask.reshape(mask.shape[0], mask.shape[-1]).astype(jnp.float32)   # (B, P)

    wbuf, wl, bbuf, bl = _pack_params(params, P)

    BM, B_pad = _choose_block(B)
    if B_pad != B:
        feat2 = jnp.pad(feat2, ((0, B_pad - B), (0, 0)))
        msk = jnp.pad(msk, ((0, B_pad - B), (0, 0)))

    out = pl.pallas_call(
        functools.partial(_head_kernel, wl, bl),
        out_shape=jax.ShapeDtypeStruct((B_pad, NC_PAD), jnp.float32),
        grid=(B_pad // BM,),
        in_specs=[
            pl.BlockSpec((BM, C * P), lambda i: (i, 0)),     # masked feature slab (bf16)
            pl.BlockSpec((BM, P), lambda i: (i, 0)),         # mask (for pool denominator)
            pl.BlockSpec(wbuf.shape, lambda i: (0, 0)),      # packed bf16 weights (resident)
            pl.BlockSpec(bbuf.shape, lambda i: (0, 0)),      # packed f32 biases (resident)
        ],
        out_specs=pl.BlockSpec((BM, NC_PAD), lambda i: (i, 0)),  # lane-dense output slab
        compiler_params=pltpu.CompilerParams(
            dimension_semantics=("parallel",),               # shards across TCs on v7x
            vmem_limit_bytes=32 * 1024 * 1024),              # above v5e's 16 MiB default
    )(feat2, msk, wbuf, bbuf)

    return out[:B, :NC]


def init_params(key, C=16, D0=32, H1=64, A=32, D2=32, NC=10):
    keys = list(jax.random.split(key, 32))
    it = iter(keys)

    def man_linear(out_f, in_f):  # Manifold_Linear init: kaiming_uniform(a=sqrt(0.1))
        a = math.sqrt(0.1)
        bw = math.sqrt(6.0 / ((1.0 + a * a) * in_f))
        bb = 1.0 / math.sqrt(in_f)
        w = jnp.stack([jax.random.uniform(next(it), (out_f, in_f), jnp.float32, -bw, bw)
                       for _ in range(2)])
        b = jnp.stack([jax.random.uniform(next(it), (1, out_f), jnp.float32, -bb, bb)
                       for _ in range(2)])
        return w, b

    def linear_pair(out_f, in_f):  # nn.Linear default init, one per manifold
        bd = 1.0 / math.sqrt(in_f)
        w = jnp.stack([jax.random.uniform(next(it), (out_f, in_f), jnp.float32, -bd, bd)
                       for _ in range(2)])
        b = jnp.stack([jax.random.uniform(next(it), (1, out_f), jnp.float32, -bd, bd)
                       for _ in range(2)])
        return w, b

    def linear_single(out_f, in_f):
        bd = 1.0 / math.sqrt(in_f)
        w = jax.random.uniform(next(it), (out_f, in_f), jnp.float32, -bd, bd)
        b = jax.random.uniform(next(it), (1, out_f), jnp.float32, -bd, bd)
        return w, b

    emb_w, emb_b = linear_single(D0, C)       # backbone stand-in
    w11, b11 = man_linear(H1, D0)             # fc_X_1 layer 0 (per manifold)
    w12, b12 = man_linear(H1, H1)             # fc_X_1 layer 1
    wjet_w, wjet_b = linear_pair(A, H1)       # W_jet
    th_w, th_b = linear_pair(1, A)            # Th_jet
    w21, b21 = man_linear(D2, H1)             # fc_X_2 layer 0
    fcf_w, fcf_b = linear_single(NC, 2 * D2)  # fc_final

    return dict(emb_w=emb_w, emb_b=emb_b, w11=w11, b11=b11, w12=w12, b12=b12,
                wjet_w=wjet_w, wjet_b=wjet_b, th_w=th_w, th_b=th_b,
                w21=w21, b21=b21, fcf_w=fcf_w, fcf_b=fcf_b)


if __name__ == "__main__":
    # Small shapes consistent with the module:
    #   embed_dims[-1] = 32, fc_params = [(64,0.1),(64,0.1),(32,0.1)], jet_att_dim = 32,
    #   num_classes = 10, for_inference = True.
    B, C, P, NC = 8, 16, 16, 10
    key = jax.random.PRNGKey(0)
    k1, k2, k3, k4, k5 = jax.random.split(key, 5)

    points = jax.random.normal(k1, (B, 2, P), jnp.float32)
    features = jax.random.normal(k2, (B, C, P), jnp.float32)
    lorentz_vectors = jax.random.normal(k3, (B, 4, P), jnp.float32)
    mask = (jax.random.uniform(k4, (B, 1, P)) > 0.2).astype(jnp.float32)

    params = init_params(k5, C=C, D0=32, H1=64, A=32, D2=32, NC=NC)

    out = particle_transformer_wrapper_forward(points, features, lorentz_vectors, mask, params)
    out = jax.block_until_ready(out)

    assert out.shape == (B, NC), out.shape
    assert bool(jnp.all(jnp.isfinite(out)))
    # for_inference=True: rows are class probabilities; final softmax uses exact divide.
    assert bool(jnp.all(jnp.abs(jnp.sum(out, axis=-1) - 1.0) < 1e-5))
    print("KERNEL_OK")
</pallas_src>

<mosaic_0001>
module attributes {stable_mosaic.version = 11 : i64} {
  func.func @_head_kernel(%arg0: i32, %arg1: memref<8x256xbf16, #tpu.memory_space<vmem>>, %arg2: memref<8x16xf32, #tpu.memory_space<vmem>>, %arg3: memref<768x128xbf16, #tpu.memory_space<vmem>>, %arg4: memref<112x128xf32, #tpu.memory_space<vmem>>, %arg5: memref<8x128xf32, #tpu.memory_space<vmem>>) attributes {dimension_semantics = [#tpu.dimension_semantics<parallel>], iteration_bounds = array<i64: 1>, scalar_prefetch = 0 : i64, scratch_operands = 0 : i64, tpu.core_type = #tpu.core_type<tc>, window_params = [{transform_indices = @transform_0, window_bounds = array<i64: 8, 256>}, {transform_indices = @transform_1, window_bounds = array<i64: 8, 16>}, {pipeline_mode = #tpu.pipeline_mode<synchronous>, transform_indices = @transform_2, window_bounds = array<i64: 768, 128>}, {pipeline_mode = #tpu.pipeline_mode<synchronous>, transform_indices = @transform_3, window_bounds = array<i64: 112, 128>}, {transform_indices = @transform_4, window_bounds = array<i64: 8, 128>}]} {
    %c0 = arith.constant 0 : index
    %c0_0 = arith.constant 0 : index
    %0 = vector.load %arg1[%c0, %c0_0] : memref<8x256xbf16, #tpu.memory_space<vmem>>, vector<8x256xbf16>
    %c0_1 = arith.constant 0 : index
    %c0_2 = arith.constant 0 : index
    %1 = vector.load %arg2[%c0_1, %c0_2] : memref<8x16xf32, #tpu.memory_space<vmem>>, vector<8x16xf32>
    %cst = arith.constant dense<0.000000e+00> : vector<8xf32>
    %2 = vector.multi_reduction <add>, %1, %cst [1] : vector<8x16xf32> to vector<8xf32>
    %3 = vector.shape_cast %2 : vector<8xf32> to vector<8x1xf32>
    %cst_3 = arith.constant 1.000000e+00 : f32
    %4 = vector.broadcast %cst_3 : f32 to vector<8x1xf32>
    %5 = arith.maximumf %3, %4 : vector<8x1xf32>
    %6 = tpu.reciprocal %5 {approx = true} : vector<8x1xf32> -> vector<8x1xf32>
    %c0_4 = arith.constant 0 : index
    %c0_5 = arith.constant 0 : index
    %7 = vector.load %arg3[%c0_4, %c0_5] : memref<768x128xbf16, #tpu.memory_space<vmem>>, vector<256x32xbf16>
    %cst_6 = arith.constant dense<0.000000e+00> : vector<8x32xf32>
    %8 = tpu.matmul %0, %7, %cst_6 {dimension_numbers = #tpu.dot_dimension_numbers<[1], [0], [0], [1], [0, 0, 1, 1], [], []>} : vector<8x256xbf16>, vector<256x32xbf16>, vector<8x32xf32> -> vector<8x32xf32>
    %9 = vector.broadcast %6 : vector<8x1xf32> to vector<8x32xf32>
    %10 = arith.mulf %8, %9 : vector<8x32xf32>
    %c0_7 = arith.constant 0 : index
    %c0_8 = arith.constant 0 : index
    %11 = vector.load %arg4[%c0_7, %c0_8] : memref<112x128xf32, #tpu.memory_space<vmem>>, vector<1x32xf32>
    %12 = vector.broadcast %11 : vector<1x32xf32> to vector<8x32xf32>
    %13 = arith.addf %10, %12 : vector<8x32xf32>
    %14 = arith.mulf %13, %13 : vector<8x32xf32>
    %cst_9 = arith.constant dense<0.000000e+00> : vector<8xf32>
    %15 = vector.multi_reduction <add>, %14, %cst_9 [1] : vector<8x32xf32> to vector<8xf32>
    %16 = vector.shape_cast %15 : vector<8xf32> to vector<8x1xf32>
    %cst_10 = arith.constant 1.000000e-30 : f32
    %17 = vector.broadcast %cst_10 : f32 to vector<8x1xf32>
    %18 = arith.maximumf %16, %17 : vector<8x1xf32>
    %19 = math.rsqrt %18 : vector<8x1xf32>
    %20 = arith.mulf %18, %19 : vector<8x1xf32>
    %cst_11 = arith.constant 1.41421354 : f32
    %21 = vector.broadcast %cst_11 : f32 to vector<8x1xf32>
    %22 = arith.mulf %21, %20 : vector<8x1xf32>
    %23 = math.tanh %22 : vector<8x1xf32>
    %cst_12 = arith.constant 0.707106769 : f32
    %24 = vector.broadcast %cst_12 : f32 to vector<8x1xf32>
    %25 = arith.mulf %23, %24 : vector<8x1xf32>
    %26 = vector.broadcast %19 : vector<8x1xf32> to vector<8x32xf32>
    %27 = arith.mulf %13, %26 : vector<8x32xf32>
    %28 = vector.broadcast %25 : vector<8x1xf32> to vector<8x32xf32>
    %29 = arith.mulf %28, %27 : vector<8x32xf32>
    %30 = arith.mulf %25, %25 : vector<8x1xf32>
    %cst_13 = arith.constant 1.000000e-30 : f32
    %31 = vector.broadcast %cst_13 : f32 to vector<8x1xf32>
    %32 = arith.maximumf %30, %31 : vector<8x1xf32>
    %33 = math.rsqrt %32 : vector<8x1xf32>
    %cst_14 = arith.constant 4.960080e-01 : f32
    %34 = vector.broadcast %cst_14 : f32 to vector<8x1xf32>
    %35 = arith.cmpf ogt, %32, %34 : vector<8x1xf32>
    %cst_15 = arith.constant 0.70427835 : f32
    %36 = vector.broadcast %cst_15 : f32 to vector<8x1xf32>
    %37 = arith.mulf %33, %36 : vector<8x1xf32>
    %38 = vector.broadcast %37 : vector<8x1xf32> to vector<8x32xf32>
    %39 = arith.mulf %29, %38 : vector<8x32xf32>
    %40 = vector.shape_cast %35 : vector<8x1xi1> to vector<8x1xi1>
    %41 = vector.broadcast %40 : vector<8x1xi1> to vector<8x32xi1>
    %42 = arith.select %41, %39, %29 : vector<8x32xi1>, vector<8x32xf32>
    %c256 = arith.constant 256 : index
    %c0_16 = arith.constant 0 : index
    %43 = vector.load %arg3[%c256, %c0_16] : memref<768x128xbf16, #tpu.memory_space<vmem>>, vector<32x64xbf16>
    %c8 = arith.constant 8 : index
    %c0_17 = arith.constant 0 : index
    %44 = vector.load %arg4[%c8, %c0_17] : memref<112x128xf32, #tpu.memory_space<vmem>>, vector<1x64xf32>
    %45 = arith.mulf %42, %42 : vector<8x32xf32>
    %cst_18 = arith.constant dense<0.000000e+00> : vector<8xf32>
    %46 = vector.multi_reduction <add>, %45, %cst_18 [1] : vector<8x32xf32> to vector<8xf32>
    %47 = vector.shape_cast %46 : vector<8xf32> to vector<8x1xf32>
    %cst_19 = arith.constant 1.000000e-30 : f32
    %48 = vector.broadcast %cst_19 : f32 to vector<8x1xf32>
    %49 = arith.maximumf %47, %48 : vector<8x1xf32>
    %50 = math.rsqrt %49 : vector<8x1xf32>
    %51 = arith.mulf %49, %50 : vector<8x1xf32>
    %52 = arith.truncf %42 : vector<8x32xf32> to vector<8x32xbf16>
    %cst_20 = arith.constant dense<0.000000e+00> : vector<8x64xf32>
    %53 = tpu.matmul %52, %43, %cst_20 {dimension_numbers = #tpu.dot_dimension_numbers<[1], [0], [0], [1], [0, 0, 1, 1], [], []>} : vector<8x32xbf16>, vector<32x64xbf16>, vector<8x64xf32> -> vector<8x64xf32>
    %54 = arith.mulf %53, %53 : vector<8x64xf32>
    %cst_21 = arith.constant dense<0.000000e+00> : vector<8xf32>
    %55 = vector.multi_reduction <add>, %54, %cst_21 [1] : vector<8x64xf32> to vector<8xf32>
    %56 = vector.shape_cast %55 : vector<8xf32> to vector<8x1xf32>
    %cst_22 = arith.constant 1.000000e-30 : f32
    %57 = vector.broadcast %cst_22 : f32 to vector<8x1xf32>
    %58 = arith.maximumf %56, %57 : vector<8x1xf32>
    %59 = math.rsqrt %58 : vector<8x1xf32>
    %60 = arith.mulf %58, %59 : vector<8x1xf32>
    %61 = arith.mulf %60, %50 : vector<8x1xf32>
    %cst_23 = arith.constant 1.41421354 : f32
    %62 = vector.broadcast %cst_23 : f32 to vector<8x1xf32>
    %63 = arith.mulf %62, %51 : vector<8x1xf32>
    %cst_24 = arith.constant -0.99999988 : f32
    %cst_25 = arith.constant 0.99999988 : f32
    %64 = vector.broadcast %cst_24 : f32 to vector<8x1xf32>
    %65 = arith.maximumf %64, %63 : vector<8x1xf32>
    %66 = vector.broadcast %cst_25 : f32 to vector<8x1xf32>
    %67 = arith.minimumf %66, %65 : vector<8x1xf32>
    %cst_26 = arith.constant 1.000000e+00 : f32
    %68 = vector.broadcast %cst_26 : f32 to vector<8x1xf32>
    %69 = arith.addf %68, %67 : vector<8x1xf32>
    %70 = math.log %69 : vector<8x1xf32>
    %cst_27 = arith.constant 1.000000e+00 : f32
    %71 = vector.broadcast %cst_27 : f32 to vector<8x1xf32>
    %72 = arith.subf %71, %67 : vector<8x1xf32>
    %73 = math.log %72 : vector<8x1xf32>
    %74 = arith.subf %70, %73 : vector<8x1xf32>
    %cst_28 = arith.constant 5.000000e-01 : f32
    %75 = vector.broadcast %cst_28 : f32 to vector<8x1xf32>
    %76 = arith.mulf %75, %74 : vector<8x1xf32>
    %cst_29 = arith.constant 0.707106769 : f32
    %77 = vector.broadcast %cst_29 : f32 to vector<8x1xf32>
    %78 = arith.mulf %76, %77 : vector<8x1xf32>
    %79 = arith.mulf %61, %78 : vector<8x1xf32>
    %cst_30 = arith.constant 1.41421354 : f32
    %80 = vector.broadcast %cst_30 : f32 to vector<8x1xf32>
    %81 = arith.mulf %80, %79 : vector<8x1xf32>
    %82 = math.tanh %81 : vector<8x1xf32>
    %cst_31 = arith.constant 0.707106769 : f32
    %83 = vector.broadcast %cst_31 : f32 to vector<8x1xf32>
    %84 = arith.mulf %82, %83 : vector<8x1xf32>
    %85 = vector.broadcast %59 : vector<8x1xf32> to vector<8x64xf32>
    %86 = arith.mulf %53, %85 : vector<8x64xf32>
    %87 = vector.broadcast %84 : vector<8x1xf32> to vector<8x64xf32>
    %88 = arith.mulf %87, %86 : vector<8x64xf32>
    %cst_32 = arith.constant 0.000000e+00 : f32
    %89 = vector.broadcast %cst_32 : f32 to vector<8x1xf32>
    %90 = arith.cmpf ole, %56, %89 : vector<8x1xf32>
    %cst_33 = arith.constant 0.000000e+00 : f32
    %91 = vector.shape_cast %90 : vector<8x1xi1> to vector<8x1xi1>
    %92 = vector.broadcast %91 : vector<8x1xi1> to vector<8x64xi1>
    %93 = vector.broadcast %cst_33 : f32 to vector<8x64xf32>
    %94 = arith.select %92, %93, %88 : vector<8x64xi1>, vector<8x64xf32>
    %95 = arith.mulf %84, %84 : vector<8x1xf32>
    %cst_34 = arith.constant 0.000000e+00 : f32
    %96 = vector.broadcast %cst_34 : f32 to vector<8x1xf32>
    %97 = arith.select %90, %96, %95 : vector<8x1xi1>, vector<8x1xf32>
    %cst_35 = arith.constant 1.000000e-30 : f32
    %98 = vector.broadcast %cst_35 : f32 to vector<8x1xf32>
    %99 = arith.maximumf %97, %98 : vector<8x1xf32>
    %100 = math.rsqrt %99 : vector<8x1xf32>
    %cst_36 = arith.constant 4.960080e-01 : f32
    %101 = vector.broadcast %cst_36 : f32 to vector<8x1xf32>
    %102 = arith.cmpf ogt, %99, %101 : vector<8x1xf32>
    %cst_37 = arith.constant 0.70427835 : f32
    %103 = vector.broadcast %cst_37 : f32 to vector<8x1xf32>
    %104 = arith.mulf %100, %103 : vector<8x1xf32>
    %105 = vector.broadcast %104 : vector<8x1xf32> to vector<8x64xf32>
    %106 = arith.mulf %94, %105 : vector<8x64xf32>
    %107 = vector.shape_cast %102 : vector<8x1xi1> to vector<8x1xi1>
    %108 = vector.broadcast %107 : vector<8x1xi1> to vector<8x64xi1>
    %109 = arith.select %108, %106, %94 : vector<8x64xi1>, vector<8x64xf32>
    %cst_38 = arith.constant 4.960080e-01 : f32
    %110 = vector.broadcast %cst_38 : f32 to vector<8x1xf32>
    %111 = arith.select %102, %110, %97 : vector<8x1xi1>, vector<8x1xf32>
    %112 = arith.mulf %44, %44 : vector<1x64xf32>
    %cst_39 = arith.constant dense<0.000000e+00> : vector<1xf32>
    %113 = vector.multi_reduction <add>, %112, %cst_39 [1] : vector<1x64xf32> to vector<1xf32>
    %114 = vector.shape_cast %113 : vector<1xf32> to vector<1x1xf32>
    %115 = vector.broadcast %44 : vector<1x64xf32> to vector<8x64xf32>
    %116 = arith.mulf %109, %115 : vector<8x64xf32>
    %cst_40 = arith.constant dense<0.000000e+00> : vector<8xf32>
    %117 = vector.multi_reduction <add>, %116, %cst_40 [1] : vector<8x64xf32> to vector<8xf32>
    %118 = vector.shape_cast %117 : vector<8xf32> to vector<8x1xf32>
    %cst_41 = arith.constant -4.000000e+00 : f32
    %119 = vector.broadcast %cst_41 : f32 to vector<8x1xf32>
    %120 = arith.mulf %119, %118 : vector<8x1xf32>
    %cst_42 = arith.constant 1.000000e+00 : f32
    %121 = vector.broadcast %cst_42 : f32 to vector<8x1xf32>
    %122 = arith.subf %121, %120 : vector<8x1xf32>
    %cst_43 = arith.constant -2.000000e+00 : f32
    %123 = vector.broadcast %cst_43 : f32 to vector<1x1xf32>
    %124 = arith.mulf %123, %114 : vector<1x1xf32>
    %125 = vector.broadcast %124 : vector<1x1xf32> to vector<8x1xf32>
    %126 = arith.subf %122, %125 : vector<8x1xf32>
    %127 = vector.broadcast %126 : vector<8x1xf32> to vector<8x64xf32>
    %128 = arith.mulf %127, %109 : vector<8x64xf32>
    %cst_44 = arith.constant -2.000000e+00 : f32
    %129 = vector.broadcast %cst_44 : f32 to vector<8x1xf32>
    %130 = arith.mulf %129, %111 : vector<8x1xf32>
    %cst_45 = arith.constant 1.000000e+00 : f32
    %131 = vector.broadcast %cst_45 : f32 to vector<8x1xf32>
    %132 = arith.addf %131, %130 : vector<8x1xf32>
    %133 = vector.broadcast %132 : vector<8x1xf32> to vector<8x64xf32>
    %134 = vector.broadcast %44 : vector<1x64xf32> to vector<8x64xf32>
    %135 = arith.mulf %133, %134 : vector<8x64xf32>
    %136 = arith.addf %128, %135 : vector<8x64xf32>
    %cst_46 = arith.constant -4.000000e+00 : f32
    %137 = vector.broadcast %cst_46 : f32 to vector<8x1xf32>
    %138 = arith.mulf %137, %118 : vector<8x1xf32>
    %cst_47 = arith.constant 1.000000e+00 : f32
    %139 = vector.broadcast %cst_47 : f32 to vector<8x1xf32>
    %140 = arith.subf %139, %138 : vector<8x1xf32>
    %cst_48 = arith.constant 4.000000e+00 : f32
    %141 = vector.broadcast %cst_48 : f32 to vector<8x1xf32>
    %142 = arith.mulf %141, %111 : vector<8x1xf32>
    %143 = vector.broadcast %114 : vector<1x1xf32> to vector<8x1xf32>
    %144 = arith.mulf %142, %143 : vector<8x1xf32>
    %145 = arith.addf %140, %144 : vector<8x1xf32>
    %cst_49 = arith.constant 1.000000e-15 : f32
    %146 = vector.broadcast %cst_49 : f32 to vector<8x1xf32>
    %147 = arith.maximumf %145, %146 : vector<8x1xf32>
    %148 = vector.broadcast %147 : vector<8x1xf32> to vector<8x64xf32>
    %149 = arith.divf %136, %148 : vector<8x64xf32>
    %150 = arith.mulf %149, %149 : vector<8x64xf32>
    %cst_50 = arith.constant dense<0.000000e+00> : vector<8xf32>
    %151 = vector.multi_reduction <add>, %150, %cst_50 [1] : vector<8x64xf32> to vector<8xf32>
    %152 = vector.shape_cast %151 : vector<8xf32> to vector<8x1xf32>
    %cst_51 = arith.constant 1.000000e-30 : f32
    %153 = vector.broadcast %cst_51 : f32 to vector<8x1xf32>
    %154 = arith.maximumf %152, %153 : vector<8x1xf32>
    %155 = math.rsqrt %154 : vector<8x1xf32>
    %cst_52 = arith.constant 4.960080e-01 : f32
    %156 = vector.broadcast %cst_52 : f32 to vector<8x1xf32>
    %157 = arith.cmpf ogt, %154, %156 : vector<8x1xf32>
    %cst_53 = arith.constant 0.70427835 : f32
    %158 = vector.broadcast %cst_53 : f32 to vector<8x1xf32>
    %159 = arith.mulf %155, %158 : vector<8x1xf32>
    %160 = vector.broadcast %159 : vector<8x1xf32> to vector<8x64xf32>
    %161 = arith.mulf %149, %160 : vector<8x64xf32>
    %162 = vector.shape_cast %157 : vector<8x1xi1> to vector<8x1xi1>
    %163 = vector.broadcast %162 : vector<8x1xi1> to vector<8x64xi1>
    %164 = arith.select %163, %161, %149 : vector<8x64xi1>, vector<8x64xf32>
    %cst_54 = arith.constant 0.000000e+00 : f32
    %165 = vector.broadcast %cst_54 : f32 to vector<8x64xf32>
    %166 = arith.maximumf %164, %165 : vector<8x64xf32>
    %c288 = arith.constant 288 : index
    %c0_55 = arith.constant 0 : index
    %167 = vector.load %arg3[%c288, %c0_55] : memref<768x128xbf16, #tpu.memory_space<vmem>>, vector<64x64xbf16>
    %c16 = arith.constant 16 : index
    %c0_56 = arith.constant 0 : index
    %168 = vector.load %arg4[%c16, %c0_56] : memref<112x128xf32, #tpu.memory_space<vmem>>, vector<1x64xf32>
    %169 = arith.mulf %166, %166 : vector<8x64xf32>
    %cst_57 = arith.constant dense<0.000000e+00> : vector<8xf32>
    %170 = vector.multi_reduction <add>, %169, %cst_57 [1] : vector<8x64xf32> to vector<8xf32>
    %171 = vector.shape_cast %170 : vector<8xf32> to vector<8x1xf32>
    %cst_58 = arith.constant 1.000000e-30 : f32
    %172 = vector.broadcast %cst_58 : f32 to vector<8x1xf32>
    %173 = arith.maximumf %171, %172 : vector<8x1xf32>
    %174 = math.rsqrt %173 : vector<8x1xf32>
    %175 = arith.mulf %173, %174 : vector<8x1xf32>
    %176 = arith.truncf %166 : vector<8x64xf32> to vector<8x64xbf16>
    %cst_59 = arith.constant dense<0.000000e+00> : vector<8x64xf32>
    %177 = tpu.matmul %176, %167, %cst_59 {dimension_numbers = #tpu.dot_dimension_numbers<[1], [0], [0], [1], [0, 0, 1, 1], [], []>} : vector<8x64xbf16>, vector<64x64xbf16>, vector<8x64xf32> -> vector<8x64xf32>
    %178 = arith.mulf %177, %177 : vector<8x64xf32>
    %cst_60 = arith.constant dense<0.000000e+00> : vector<8xf32>
    %179 = vector.multi_reduction <add>, %178, %cst_60 [1] : vector<8x64xf32> to vector<8xf32>
    %180 = vector.shape_cast %179 : vector<8xf32> to vector<8x1xf32>
    %cst_61 = arith.constant 1.000000e-30 : f32
    %181 = vector.broadcast %cst_61 : f32 to vector<8x1xf32>
    %182 = arith.maximumf %180, %181 : vector<8x1xf32>
    %183 = math.rsqrt %182 : vector<8x1xf32>
    %184 = arith.mulf %182, %183 : vector<8x1xf32>
    %185 = arith.mulf %184, %174 : vector<8x1xf32>
    %cst_62 = arith.constant 1.41421354 : f32
    %186 = vector.broadcast %cst_62 : f32 to vector<8x1xf32>
    %187 = arith.mulf %186, %175 : vector<8x1xf32>
    %cst_63 = arith.constant -0.99999988 : f32
    %cst_64 = arith.constant 0.99999988 : f32
    %188 = vector.broadcast %cst_63 : f32 to vector<8x1xf32>
    %189 = arith.maximumf %188, %187 : vector<8x1xf32>
    %190 = vector.broadcast %cst_64 : f32 to vector<8x1xf32>
    %191 = arith.minimumf %190, %189 : vector<8x1xf32>
    %cst_65 = arith.constant 1.000000e+00 : f32
    %192 = vector.broadcast %cst_65 : f32 to vector<8x1xf32>
    %193 = arith.addf %192, %191 : vector<8x1xf32>
    %194 = math.log %193 : vector<8x1xf32>
    %cst_66 = arith.constant 1.000000e+00 : f32
    %195 = vector.broadcast %cst_66 : f32 to vector<8x1xf32>
    %196 = arith.subf %195, %191 : vector<8x1xf32>
    %197 = math.log %196 : vector<8x1xf32>
    %198 = arith.subf %194, %197 : vector<8x1xf32>
    %cst_67 = arith.constant 5.000000e-01 : f32
    %199 = vector.broadcast %cst_67 : f32 to vector<8x1xf32>
    %200 = arith.mulf %199, %198 : vector<8x1xf32>
    %cst_68 = arith.constant 0.707106769 : f32
    %201 = vector.broadcast %cst_68 : f32 to vector<8x1xf32>
    %202 = arith.mulf %200, %201 : vector<8x1xf32>
    %203 = arith.mulf %185, %202 : vector<8x1xf32>
    %cst_69 = arith.constant 1.41421354 : f32
    %204 = vector.broadcast %cst_69 : f32 to vector<8x1xf32>
    %205 = arith.mulf %204, %203 : vector<8x1xf32>
    %206 = math.tanh %205 : vector<8x1xf32>
    %cst_70 = arith.constant 0.707106769 : f32
    %207 = vector.broadcast %cst_70 : f32 to vector<8x1xf32>
    %208 = arith.mulf %206, %207 : vector<8x1xf32>
    %209 = vector.broadcast %183 : vector<8x1xf32> to vector<8x64xf32>
    %210 = arith.mulf %177, %209 : vector<8x64xf32>
    %211 = vector.broadcast %208 : vector<8x1xf32> to vector<8x64xf32>
    %212 = arith.mulf %211, %210 : vector<8x64xf32>
    %cst_71 = arith.constant 0.000000e+00 : f32
    %213 = vector.broadcast %cst_71 : f32 to vector<8x1xf32>
    %214 = arith.cmpf ole, %180, %213 : vector<8x1xf32>
    %cst_72 = arith.constant 0.000000e+00 : f32
    %215 = vector.shape_cast %214 : vector<8x1xi1> to vector<8x1xi1>
    %216 = vector.broadcast %215 : vector<8x1xi1> to vector<8x64xi1>
    %217 = vector.broadcast %cst_72 : f32 to vector<8x64xf32>
    %218 = arith.select %216, %217, %212 : vector<8x64xi1>, vector<8x64xf32>
    %219 = arith.mulf %208, %208 : vector<8x1xf32>
    %cst_73 = arith.constant 0.000000e+00 : f32
    %220 = vector.broadcast %cst_73 : f32 to vector<8x1xf32>
    %221 = arith.select %214, %220, %219 : vector<8x1xi1>, vector<8x1xf32>
    %cst_74 = arith.constant 1.000000e-30 : f32
    %222 = vector.broadcast %cst_74 : f32 to vector<8x1xf32>
    %223 = arith.maximumf %221, %222 : vector<8x1xf32>
    %224 = math.rsqrt %223 : vector<8x1xf32>
    %cst_75 = arith.constant 4.960080e-01 : f32
    %225 = vector.broadcast %cst_75 : f32 to vector<8x1xf32>
    %226 = arith.cmpf ogt, %223, %225 : vector<8x1xf32>
    %cst_76 = arith.constant 0.70427835 : f32
    %227 = vector.broadcast %cst_76 : f32 to vector<8x1xf32>
    %228 = arith.mulf %224, %227 : vector<8x1xf32>
    %229 = vector.broadcast %228 : vector<8x1xf32> to vector<8x64xf32>
    %230 = arith.mulf %218, %229 : vector<8x64xf32>
    %231 = vector.shape_cast %226 : vector<8x1xi1> to vector<8x1xi1>
    %232 = vector.broadcast %231 : vector<8x1xi1> to vector<8x64xi1>
    %233 = arith.select %232, %230, %218 : vector<8x64xi1>, vector<8x64xf32>
    %cst_77 = arith.constant 4.960080e-01 : f32
    %234 = vector.broadcast %cst_77 : f32 to vector<8x1xf32>
    %235 = arith.select %226, %234, %221 : vector<8x1xi1>, vector<8x1xf32>
    %236 = arith.mulf %168, %168 : vector<1x64xf32>
    %cst_78 = arith.constant dense<0.000000e+00> : vector<1xf32>
    %237 = vector.multi_reduction <add>, %236, %cst_78 [1] : vector<1x64xf32> to vector<1xf32>
    %238 = vector.shape_cast %237 : vector<1xf32> to vector<1x1xf32>
    %239 = vector.broadcast %168 : vector<1x64xf32> to vector<8x64xf32>
    %240 = arith.mulf %233, %239 : vector<8x64xf32>
    %cst_79 = arith.constant dense<0.000000e+00> : vector<8xf32>
    %241 = vector.multi_reduction <add>, %240, %cst_79 [1] : vector<8x64xf32> to vector<8xf32>
    %242 = vector.shape_cast %241 : vector<8xf32> to vector<8x1xf32>
    %cst_80 = arith.constant -4.000000e+00 : f32
    %243 = vector.broadcast %cst_80 : f32 to vector<8x1xf32>
    %244 = arith.mulf %243, %242 : vector<8x1xf32>
    %cst_81 = arith.constant 1.000000e+00 : f32
    %245 = vector.broadcast %cst_81 : f32 to vector<8x1xf32>
    %246 = arith.subf %245, %244 : vector<8x1xf32>
    %cst_82 = arith.constant -2.000000e+00 : f32
    %247 = vector.broadcast %cst_82 : f32 to vector<1x1xf32>
    %248 = arith.mulf %247, %238 : vector<1x1xf32>
    %249 = vector.broadcast %248 : vector<1x1xf32> to vector<8x1xf32>
    %250 = arith.subf %246, %249 : vector<8x1xf32>
    %251 = vector.broadcast %250 : vector<8x1xf32> to vector<8x64xf32>
    %252 = arith.mulf %251, %233 : vector<8x64xf32>
    %cst_83 = arith.constant -2.000000e+00 : f32
    %253 = vector.broadcast %cst_83 : f32 to vector<8x1xf32>
    %254 = arith.mulf %253, %235 : vector<8x1xf32>
    %cst_84 = arith.constant 1.000000e+00 : f32
    %255 = vector.broadcast %cst_84 : f32 to vector<8x1xf32>
    %256 = arith.addf %255, %254 : vector<8x1xf32>
    %257 = vector.broadcast %256 : vector<8x1xf32> to vector<8x64xf32>
    %258 = vector.broadcast %168 : vector<1x64xf32> to vector<8x64xf32>
    %259 = arith.mulf %257, %258 : vector<8x64xf32>
    %260 = arith.addf %252, %259 : vector<8x64xf32>
    %cst_85 = arith.constant -4.000000e+00 : f32
    %261 = vector.broadcast %cst_85 : f32 to vector<8x1xf32>
    %262 = arith.mulf %261, %242 : vector<8x1xf32>
    %cst_86 = arith.constant 1.000000e+00 : f32
    %263 = vector.broadcast %cst_86 : f32 to vector<8x1xf32>
    %264 = arith.subf %263, %262 : vector<8x1xf32>
    %cst_87 = arith.constant 4.000000e+00 : f32
    %265 = vector.broadcast %cst_87 : f32 to vector<8x1xf32>
    %266 = arith.mulf %265, %235 : vector<8x1xf32>
    %267 = vector.broadcast %238 : vector<1x1xf32> to vector<8x1xf32>
    %268 = arith.mulf %266, %267 : vector<8x1xf32>
    %269 = arith.addf %264, %268 : vector<8x1xf32>
    %cst_88 = arith.constant 1.000000e-15 : f32
    %270 = vector.broadcast %cst_88 : f32 to vector<8x1xf32>
    %271 = arith.maximumf %269, %270 : vector<8x1xf32>
    %272 = vector.broadcast %271 : vector<8x1xf32> to vector<8x64xf32>
    %273 = arith.divf %260, %272 : vector<8x64xf32>
    %274 = arith.mulf %273, %273 : vector<8x64xf32>
    %cst_89 = arith.constant dense<0.000000e+00> : vector<8xf32>
    %275 = vector.multi_reduction <add>, %274, %cst_89 [1] : vector<8x64xf32> to vector<8xf32>
    %276 = vector.shape_cast %275 : vector<8xf32> to vector<8x1xf32>
    %cst_90 = arith.constant 1.000000e-30 : f32
    %277 = vector.broadcast %cst_90 : f32 to vector<8x1xf32>
    %278 = arith.maximumf %276, %277 : vector<8x1xf32>
    %279 = math.rsqrt %278 : vector<8x1xf32>
    %cst_91 = arith.constant 4.960080e-01 : f32
    %280 = vector.broadcast %cst_91 : f32 to vector<8x1xf32>
    %281 = arith.cmpf ogt, %278, %280 : vector<8x1xf32>
    %cst_92 = arith.constant 0.70427835 : f32
    %282 = vector.broadcast %cst_92 : f32 to vector<8x1xf32>
    %283 = arith.mulf %279, %282 : vector<8x1xf32>
    %284 = vector.broadcast %283 : vector<8x1xf32> to vector<8x64xf32>
    %285 = arith.mulf %273, %284 : vector<8x64xf32>
    %286 = vector.shape_cast %281 : vector<8x1xi1> to vector<8x1xi1>
    %287 = vector.broadcast %286 : vector<8x1xi1> to vector<8x64xi1>
    %288 = arith.select %287, %285, %273 : vector<8x64xi1>, vector<8x64xf32>
    %cst_93 = arith.constant 0.000000e+00 : f32
    %289 = vector.broadcast %cst_93 : f32 to vector<8x64xf32>
    %290 = arith.maximumf %288, %289 : vector<8x64xf32>
    %c352 = arith.constant 352 : index
    %c0_94 = arith.constant 0 : index
    %291 = vector.load %arg3[%c352, %c0_94] : memref<768x128xbf16, #tpu.memory_space<vmem>>, vector<64x32xbf16>
    %c24 = arith.constant 24 : index
    %c0_95 = arith.constant 0 : index
    %292 = vector.load %arg4[%c24, %c0_95] : memref<112x128xf32, #tpu.memory_space<vmem>>, vector<1x32xf32>
    %293 = arith.truncf %290 : vector<8x64xf32> to vector<8x64xbf16>
    %cst_96 = arith.constant dense<0.000000e+00> : vector<8x32xf32>
    %294 = tpu.matmul %293, %291, %cst_96 {dimension_numbers = #tpu.dot_dimension_numbers<[1], [0], [0], [1], [0, 0, 1, 1], [], []>} : vector<8x64xbf16>, vector<64x32xbf16>, vector<8x32xf32> -> vector<8x32xf32>
    %295 = vector.broadcast %292 : vector<1x32xf32> to vector<8x32xf32>
    %296 = arith.addf %294, %295 : vector<8x32xf32>
    %297 = arith.mulf %296, %296 : vector<8x32xf32>
    %cst_97 = arith.constant dense<0.000000e+00> : vector<8xf32>
    %298 = vector.multi_reduction <add>, %297, %cst_97 [1] : vector<8x32xf32> to vector<8xf32>
    %299 = vector.shape_cast %298 : vector<8xf32> to vector<8x1xf32>
    %cst_98 = arith.constant 1.000000e-30 : f32
    %300 = vector.broadcast %cst_98 : f32 to vector<8x1xf32>
    %301 = arith.maximumf %299, %300 : vector<8x1xf32>
    %302 = math.rsqrt %301 : vector<8x1xf32>
    %303 = arith.mulf %301, %302 : vector<8x1xf32>
    %cst_99 = arith.constant 1.41421354 : f32
    %304 = vector.broadcast %cst_99 : f32 to vector<8x1xf32>
    %305 = arith.mulf %304, %303 : vector<8x1xf32>
    %cst_100 = arith.constant -0.99999988 : f32
    %cst_101 = arith.constant 0.99999988 : f32
    %306 = vector.broadcast %cst_100 : f32 to vector<8x1xf32>
    %307 = arith.maximumf %306, %305 : vector<8x1xf32>
    %308 = vector.broadcast %cst_101 : f32 to vector<8x1xf32>
    %309 = arith.minimumf %308, %307 : vector<8x1xf32>
    %cst_102 = arith.constant 1.000000e+00 : f32
    %310 = vector.broadcast %cst_102 : f32 to vector<8x1xf32>
    %311 = arith.addf %310, %309 : vector<8x1xf32>
    %312 = math.log %311 : vector<8x1xf32>
    %cst_103 = arith.constant 1.000000e+00 : f32
    %313 = vector.broadcast %cst_103 : f32 to vector<8x1xf32>
    %314 = arith.subf %313, %309 : vector<8x1xf32>
    %315 = math.log %314 : vector<8x1xf32>
    %316 = arith.subf %312, %315 : vector<8x1xf32>
    %cst_104 = arith.constant 5.000000e-01 : f32
    %317 = vector.broadcast %cst_104 : f32 to vector<8x1xf32>
    %318 = arith.mulf %317, %316 : vector<8x1xf32>
    %cst_105 = arith.constant 0.707106769 : f32
    %319 = vector.broadcast %cst_105 : f32 to vector<8x1xf32>
    %320 = arith.mulf %318, %319 : vector<8x1xf32>
    %321 = vector.broadcast %302 : vector<8x1xf32> to vector<8x32xf32>
    %322 = arith.mulf %296, %321 : vector<8x32xf32>
    %323 = vector.broadcast %320 : vector<8x1xf32> to vector<8x32xf32>
    %324 = arith.mulf %323, %322 : vector<8x32xf32>
    %325 = arith.mulf %13, %13 : vector<8x32xf32>
    %cst_106 = arith.constant dense<0.000000e+00> : vector<8xf32>
    %326 = vector.multi_reduction <add>, %325, %cst_106 [1] : vector<8x32xf32> to vector<8xf32>
    %327 = vector.shape_cast %326 : vector<8xf32> to vector<8x1xf32>
    %cst_107 = arith.constant 1.000000e-30 : f32
    %328 = vector.broadcast %cst_107 : f32 to vector<8x1xf32>
    %329 = arith.maximumf %327, %328 : vector<8x1xf32>
    %330 = math.rsqrt %329 : vector<8x1xf32>
    %331 = arith.mulf %329, %330 : vector<8x1xf32>
    %cst_108 = arith.constant 1.41421354 : f32
    %332 = vector.broadcast %cst_108 : f32 to vector<8x1xf32>
    %333 = arith.mulf %332, %331 : vector<8x1xf32>
    %cst_109 = arith.constant 1.27323949 : f32
    %334 = vector.broadcast %cst_109 : f32 to vector<8x1xf32>
    %335 = arith.mulf %333, %334 : vector<8x1xf32>
    %336 = math.floor %335 : vector<8x1xf32>
    %cst_110 = arith.constant 5.000000e-01 : f32
    %337 = vector.broadcast %cst_110 : f32 to vector<8x1xf32>
    %338 = arith.mulf %336, %337 : vector<8x1xf32>
    %339 = math.floor %338 : vector<8x1xf32>
    %cst_111 = arith.constant 2.000000e+00 : f32
    %340 = vector.broadcast %cst_111 : f32 to vector<8x1xf32>
    %341 = arith.mulf %340, %339 : vector<8x1xf32>
    %342 = arith.subf %336, %341 : vector<8x1xf32>
    %343 = arith.addf %336, %342 : vector<8x1xf32>
    %cst_112 = arith.constant 0.78515625 : f32
    %344 = vector.broadcast %cst_112 : f32 to vector<8x1xf32>
    %345 = arith.mulf %343, %344 : vector<8x1xf32>
    %346 = arith.subf %333, %345 : vector<8x1xf32>
    %cst_113 = arith.constant 2.41875648E-4 : f32
    %347 = vector.broadcast %cst_113 : f32 to vector<8x1xf32>
    %348 = arith.mulf %343, %347 : vector<8x1xf32>
    %349 = arith.subf %346, %348 : vector<8x1xf32>
    %cst_114 = arith.constant 3.77489506E-8 : f32
    %350 = vector.broadcast %cst_114 : f32 to vector<8x1xf32>
    %351 = arith.mulf %343, %350 : vector<8x1xf32>
    %352 = arith.subf %349, %351 : vector<8x1xf32>
    %353 = arith.mulf %352, %352 : vector<8x1xf32>
    %cst_115 = arith.constant 0.00938540231 : f32
    %354 = vector.broadcast %cst_115 : f32 to vector<8x1xf32>
    %355 = arith.mulf %354, %353 : vector<8x1xf32>
    %cst_116 = arith.constant 0.00311992224 : f32
    %356 = vector.broadcast %cst_116 : f32 to vector<8x1xf32>
    %357 = arith.addf %355, %356 : vector<8x1xf32>
    %358 = arith.mulf %357, %353 : vector<8x1xf32>
    %cst_117 = arith.constant 0.0244301353 : f32
    %359 = vector.broadcast %cst_117 : f32 to vector<8x1xf32>
    %360 = arith.addf %358, %359 : vector<8x1xf32>
    %361 = arith.mulf %360, %353 : vector<8x1xf32>
    %cst_118 = arith.constant 0.0534112789 : f32
    %362 = vector.broadcast %cst_118 : f32 to vector<8x1xf32>
    %363 = arith.addf %361, %362 : vector<8x1xf32>
    %364 = arith.mulf %363, %353 : vector<8x1xf32>
    %cst_119 = arith.constant 1.333880e-01 : f32
    %365 = vector.broadcast %cst_119 : f32 to vector<8x1xf32>
    %366 = arith.addf %364, %365 : vector<8x1xf32>
    %367 = arith.mulf %366, %353 : vector<8x1xf32>
    %cst_120 = arith.constant 0.333331555 : f32
    %368 = vector.broadcast %cst_120 : f32 to vector<8x1xf32>
    %369 = arith.addf %367, %368 : vector<8x1xf32>
    %370 = arith.mulf %369, %353 : vector<8x1xf32>
    %371 = arith.mulf %370, %352 : vector<8x1xf32>
    %372 = arith.addf %371, %352 : vector<8x1xf32>
    %cst_121 = arith.constant 5.000000e-01 : f32
    %373 = vector.broadcast %cst_121 : f32 to vector<8x1xf32>
    %374 = arith.mulf %343, %373 : vector<8x1xf32>
    %cst_122 = arith.constant 2.500000e-01 : f32
    %375 = vector.broadcast %cst_122 : f32 to vector<8x1xf32>
    %376 = arith.mulf %343, %375 : vector<8x1xf32>
    %377 = math.floor %376 : vector<8x1xf32>
    %cst_123 = arith.constant 2.000000e+00 : f32
    %378 = vector.broadcast %cst_123 : f32 to vector<8x1xf32>
    %379 = arith.mulf %378, %377 : vector<8x1xf32>
    %380 = arith.subf %374, %379 : vector<8x1xf32>
    %381 = math.absf %372 : vector<8x1xf32>
    %cst_124 = arith.constant 1.000000e-30 : f32
    %382 = vector.broadcast %cst_124 : f32 to vector<8x1xf32>
    %383 = arith.cmpf olt, %381, %382 : vector<8x1xf32>
    %cst_125 = arith.constant 1.000000e-30 : f32
    %384 = vector.broadcast %cst_125 : f32 to vector<8x1xf32>
    %385 = arith.select %383, %384, %372 : vector<8x1xi1>, vector<8x1xf32>
    %cst_126 = arith.constant 5.000000e-01 : f32
    %386 = vector.broadcast %cst_126 : f32 to vector<8x1xf32>
    %387 = arith.cmpf ogt, %380, %386 : vector<8x1xf32>
    %cst_127 = arith.constant -1.000000e+00 : f32
    %388 = vector.broadcast %cst_127 : f32 to vector<8x1xf32>
    %389 = arith.divf %388, %385 : vector<8x1xf32>
    %390 = arith.select %387, %389, %372 : vector<8x1xi1>, vector<8x1xf32>
    %cst_128 = arith.constant 0.707106769 : f32
    %391 = vector.broadcast %cst_128 : f32 to vector<8x1xf32>
    %392 = arith.mulf %390, %391 : vector<8x1xf32>
    %393 = vector.broadcast %330 : vector<8x1xf32> to vector<8x32xf32>
    %394 = arith.mulf %13, %393 : vector<8x32xf32>
    %395 = vector.broadcast %392 : vector<8x1xf32> to vector<8x32xf32>
    %396 = arith.mulf %395, %394 : vector<8x32xf32>
    %c480 = arith.constant 480 : index
    %c0_129 = arith.constant 0 : index
    %397 = vector.load %arg3[%c480, %c0_129] : memref<768x128xbf16, #tpu.memory_space<vmem>>, vector<32x64xbf16>
    %c56 = arith.constant 56 : index
    %c0_130 = arith.constant 0 : index
    %398 = vector.load %arg4[%c56, %c0_130] : memref<112x128xf32, #tpu.memory_space<vmem>>, vector<1x64xf32>
    %399 = arith.mulf %396, %396 : vector<8x32xf32>
    %cst_131 = arith.constant dense<0.000000e+00> : vector<8xf32>
    %400 = vector.multi_reduction <add>, %399, %cst_131 [1] : vector<8x32xf32> to vector<8xf32>
    %401 = vector.shape_cast %400 : vector<8xf32> to vector<8x1xf32>
    %cst_132 = arith.constant 1.000000e-30 : f32
    %402 = vector.broadcast %cst_132 : f32 to vector<8x1xf32>
    %403 = arith.maximumf %401, %402 : vector<8x1xf32>
    %404 = math.rsqrt %403 : vector<8x1xf32>
    %405 = arith.mulf %403, %404 : vector<8x1xf32>
    %406 = arith.truncf %396 : vector<8x32xf32> to vector<8x32xbf16>
    %cst_133 = arith.constant dense<0.000000e+00> : vector<8x64xf32>
    %407 = tpu.matmul %406, %397, %cst_133 {dimension_numbers = #tpu.dot_dimension_numbers<[1], [0], [0], [1], [0, 0, 1, 1], [], []>} : vector<8x32xbf16>, vector<32x64xbf16>, vector<8x64xf32> -> vector<8x64xf32>
    %408 = arith.mulf %407, %407 : vector<8x64xf32>
    %cst_134 = arith.constant dense<0.000000e+00> : vector<8xf32>
    %409 = vector.multi_reduction <add>, %408, %cst_134 [1] : vector<8x64xf32> to vector<8xf32>
    %410 = vector.shape_cast %409 : vector<8xf32> to vector<8x1xf32>
    %cst_135 = arith.constant 1.000000e-30 : f32
    %411 = vector.broadcast %cst_135 : f32 to vector<8x1xf32>
    %412 = arith.maximumf %410, %411 : vector<8x1xf32>
    %413 = math.rsqrt %412 : vector<8x1xf32>
    %414 = arith.mulf %412, %413 : vector<8x1xf32>
    %415 = arith.mulf %414, %404 : vector<8x1xf32>
    %cst_136 = arith.constant 1.41421354 : f32
    %416 = vector.broadcast %cst_136 : f32 to vector<8x1xf32>
    %417 = arith.mulf %416, %405 : vector<8x1xf32>
    %cst_137 = arith.constant 2.41421366 : f32
    %418 = vector.broadcast %cst_137 : f32 to vector<8x1xf32>
    %419 = arith.cmpf ogt, %417, %418 : vector<8x1xf32>
    %cst_138 = arith.constant 0.414213568 : f32
    %420 = vector.broadcast %cst_138 : f32 to vector<8x1xf32>
    %421 = arith.cmpf ogt, %417, %420 : vector<8x1xf32>
    %cst_139 = arith.constant dense<true> : vector<8x1xi1>
    %422 = arith.xori %419, %cst_139 : vector<8x1xi1>
    %423 = arith.andi %421, %422 : vector<8x1xi1>
    %cst_140 = arith.constant 1.000000e-15 : f32
    %424 = vector.broadcast %cst_140 : f32 to vector<8x1xf32>
    %425 = arith.maximumf %417, %424 : vector<8x1xf32>
    %cst_141 = arith.constant -1.000000e+00 : f32
    %426 = vector.broadcast %cst_141 : f32 to vector<8x1xf32>
    %427 = arith.divf %426, %425 : vector<8x1xf32>
    %cst_142 = arith.constant 1.000000e+00 : f32
    %428 = vector.broadcast %cst_142 : f32 to vector<8x1xf32>
    %429 = arith.subf %417, %428 : vector<8x1xf32>
    %cst_143 = arith.constant 1.000000e+00 : f32
    %430 = vector.broadcast %cst_143 : f32 to vector<8x1xf32>
    %431 = arith.addf %417, %430 : vector<8x1xf32>
    %432 = arith.divf %429, %431 : vector<8x1xf32>
    %433 = arith.select %423, %432, %417 : vector<8x1xi1>, vector<8x1xf32>
    %434 = arith.select %419, %427, %433 : vector<8x1xi1>, vector<8x1xf32>
    %cst_144 = arith.constant 0.785398185 : f32
    %cst_145 = arith.constant 0.000000e+00 : f32
    %435 = vector.broadcast %cst_144 : f32 to vector<8x1xf32>
    %436 = vector.broadcast %cst_145 : f32 to vector<8x1xf32>
    %437 = arith.select %423, %435, %436 : vector<8x1xi1>, vector<8x1xf32>
    %cst_146 = arith.constant 1.57079637 : f32
    %438 = vector.broadcast %cst_146 : f32 to vector<8x1xf32>
    %439 = arith.select %419, %438, %437 : vector<8x1xi1>, vector<8x1xf32>
    %440 = arith.mulf %434, %434 : vector<8x1xf32>
    %cst_147 = arith.constant 0.0805374458 : f32
    %441 = vector.broadcast %cst_147 : f32 to vector<8x1xf32>
    %442 = arith.mulf %441, %440 : vector<8x1xf32>
    %cst_148 = arith.constant 0.138776854 : f32
    %443 = vector.broadcast %cst_148 : f32 to vector<8x1xf32>
    %444 = arith.subf %442, %443 : vector<8x1xf32>
    %445 = arith.mulf %444, %440 : vector<8x1xf32>
    %cst_149 = arith.constant 0.199777111 : f32
    %446 = vector.broadcast %cst_149 : f32 to vector<8x1xf32>
    %447 = arith.addf %445, %446 : vector<8x1xf32>
    %448 = arith.mulf %447, %440 : vector<8x1xf32>
    %cst_150 = arith.constant 0.333329499 : f32
    %449 = vector.broadcast %cst_150 : f32 to vector<8x1xf32>
    %450 = arith.subf %448, %449 : vector<8x1xf32>
    %451 = arith.mulf %450, %440 : vector<8x1xf32>
    %452 = arith.mulf %451, %434 : vector<8x1xf32>
    %453 = arith.addf %452, %434 : vector<8x1xf32>
    %454 = arith.addf %439, %453 : vector<8x1xf32>
    %cst_151 = arith.constant 0.707106769 : f32
    %455 = vector.broadcast %cst_151 : f32 to vector<8x1xf32>
    %456 = arith.mulf %454, %455 : vector<8x1xf32>
    %457 = arith.mulf %415, %456 : vector<8x1xf32>
    %cst_152 = arith.constant 1.41421354 : f32
    %458 = vector.broadcast %cst_152 : f32 to vector<8x1xf32>
    %459 = arith.mulf %458, %457 : vector<8x1xf32>
    %cst_153 = arith.constant 1.27323949 : f32
    %460 = vector.broadcast %cst_153 : f32 to vector<8x1xf32>
    %461 = arith.mulf %459, %460 : vector<8x1xf32>
    %462 = math.floor %461 : vector<8x1xf32>
    %cst_154 = arith.constant 5.000000e-01 : f32
    %463 = vector.broadcast %cst_154 : f32 to vector<8x1xf32>
    %464 = arith.mulf %462, %463 : vector<8x1xf32>
    %465 = math.floor %464 : vector<8x1xf32>
    %cst_155 = arith.constant 2.000000e+00 : f32
    %466 = vector.broadcast %cst_155 : f32 to vector<8x1xf32>
    %467 = arith.mulf %466, %465 : vector<8x1xf32>
    %468 = arith.subf %462, %467 : vector<8x1xf32>
    %469 = arith.addf %462, %468 : vector<8x1xf32>
    %cst_156 = arith.constant 0.78515625 : f32
    %470 = vector.broadcast %cst_156 : f32 to vector<8x1xf32>
    %471 = arith.mulf %469, %470 : vector<8x1xf32>
    %472 = arith.subf %459, %471 : vector<8x1xf32>
    %cst_157 = arith.constant 2.41875648E-4 : f32
    %473 = vector.broadcast %cst_157 : f32 to vector<8x1xf32>
    %474 = arith.mulf %469, %473 : vector<8x1xf32>
    %475 = arith.subf %472, %474 : vector<8x1xf32>
    %cst_158 = arith.constant 3.77489506E-8 : f32
    %476 = vector.broadcast %cst_158 : f32 to vector<8x1xf32>
    %477 = arith.mulf %469, %476 : vector<8x1xf32>
    %478 = arith.subf %475, %477 : vector<8x1xf32>
    %479 = arith.mulf %478, %478 : vector<8x1xf32>
    %cst_159 = arith.constant 0.00938540231 : f32
    %480 = vector.broadcast %cst_159 : f32 to vector<8x1xf32>
    %481 = arith.mulf %480, %479 : vector<8x1xf32>
    %cst_160 = arith.constant 0.00311992224 : f32
    %482 = vector.broadcast %cst_160 : f32 to vector<8x1xf32>
    %483 = arith.addf %481, %482 : vector<8x1xf32>
    %484 = arith.mulf %483, %479 : vector<8x1xf32>
    %cst_161 = arith.constant 0.0244301353 : f32
    %485 = vector.broadcast %cst_161 : f32 to vector<8x1xf32>
    %486 = arith.addf %484, %485 : vector<8x1xf32>
    %487 = arith.mulf %486, %479 : vector<8x1xf32>
    %cst_162 = arith.constant 0.0534112789 : f32
    %488 = vector.broadcast %cst_162 : f32 to vector<8x1xf32>
    %489 = arith.addf %487, %488 : vector<8x1xf32>
    %490 = arith.mulf %489, %479 : vector<8x1xf32>
    %cst_163 = arith.constant 1.333880e-01 : f32
    %491 = vector.broadcast %cst_163 : f32 to vector<8x1xf32>
    %492 = arith.addf %490, %491 : vector<8x1xf32>
    %493 = arith.mulf %492, %479 : vector<8x1xf32>
    %cst_164 = arith.constant 0.333331555 : f32
    %494 = vector.broadcast %cst_164 : f32 to vector<8x1xf32>
    %495 = arith.addf %493, %494 : vector<8x1xf32>
    %496 = arith.mulf %495, %479 : vector<8x1xf32>
    %497 = arith.mulf %496, %478 : vector<8x1xf32>
    %498 = arith.addf %497, %478 : vector<8x1xf32>
    %cst_165 = arith.constant 5.000000e-01 : f32
    %499 = vector.broadcast %cst_165 : f32 to vector<8x1xf32>
    %500 = arith.mulf %469, %499 : vector<8x1xf32>
    %cst_166 = arith.constant 2.500000e-01 : f32
    %501 = vector.broadcast %cst_166 : f32 to vector<8x1xf32>
    %502 = arith.mulf %469, %501 : vector<8x1xf32>
    %503 = math.floor %502 : vector<8x1xf32>
    %cst_167 = arith.constant 2.000000e+00 : f32
    %504 = vector.broadcast %cst_167 : f32 to vector<8x1xf32>
    %505 = arith.mulf %504, %503 : vector<8x1xf32>
    %506 = arith.subf %500, %505 : vector<8x1xf32>
    %507 = math.absf %498 : vector<8x1xf32>
    %cst_168 = arith.constant 1.000000e-30 : f32
    %508 = vector.broadcast %cst_168 : f32 to vector<8x1xf32>
    %509 = arith.cmpf olt, %507, %508 : vector<8x1xf32>
    %cst_169 = arith.constant 1.000000e-30 : f32
    %510 = vector.broadcast %cst_169 : f32 to vector<8x1xf32>
    %511 = arith.select %509, %510, %498 : vector<8x1xi1>, vector<8x1xf32>
    %cst_170 = arith.constant 5.000000e-01 : f32
    %512 = vector.broadcast %cst_170 : f32 to vector<8x1xf32>
    %513 = arith.cmpf ogt, %506, %512 : vector<8x1xf32>
    %cst_171 = arith.constant -1.000000e+00 : f32
    %514 = vector.broadcast %cst_171 : f32 to vector<8x1xf32>
    %515 = arith.divf %514, %511 : vector<8x1xf32>
    %516 = arith.select %513, %515, %498 : vector<8x1xi1>, vector<8x1xf32>
    %cst_172 = arith.constant 0.707106769 : f32
    %517 = vector.broadcast %cst_172 : f32 to vector<8x1xf32>
    %518 = arith.mulf %516, %517 : vector<8x1xf32>
    %519 = vector.broadcast %413 : vector<8x1xf32> to vector<8x64xf32>
    %520 = arith.mulf %407, %519 : vector<8x64xf32>
    %521 = vector.broadcast %518 : vector<8x1xf32> to vector<8x64xf32>
    %522 = arith.mulf %521, %520 : vector<8x64xf32>
    %cst_173 = arith.constant 0.000000e+00 : f32
    %523 = vector.broadcast %cst_173 : f32 to vector<8x1xf32>
    %524 = arith.cmpf ole, %410, %523 : vector<8x1xf32>
    %cst_174 = arith.constant 0.000000e+00 : f32
    %525 = vector.shape_cast %524 : vector<8x1xi1> to vector<8x1xi1>
    %526 = vector.broadcast %525 : vector<8x1xi1> to vector<8x64xi1>
    %527 = vector.broadcast %cst_174 : f32 to vector<8x64xf32>
    %528 = arith.select %526, %527, %522 : vector<8x64xi1>, vector<8x64xf32>
    %529 = arith.mulf %518, %518 : vector<8x1xf32>
    %cst_175 = arith.constant 0.000000e+00 : f32
    %530 = vector.broadcast %cst_175 : f32 to vector<8x1xf32>
    %531 = arith.select %524, %530, %529 : vector<8x1xi1>, vector<8x1xf32>
    %532 = arith.mulf %398, %398 : vector<1x64xf32>
    %cst_176 = arith.constant dense<0.000000e+00> : vector<1xf32>
    %533 = vector.multi_reduction <add>, %532, %cst_176 [1] : vector<1x64xf32> to vector<1xf32>
    %534 = vector.shape_cast %533 : vector<1xf32> to vector<1x1xf32>
    %535 = vector.broadcast %398 : vector<1x64xf32> to vector<8x64xf32>
    %536 = arith.mulf %528, %535 : vector<8x64xf32>
    %cst_177 = arith.constant dense<0.000000e+00> : vector<8xf32>
    %537 = vector.multi_reduction <add>, %536, %cst_177 [1] : vector<8x64xf32> to vector<8xf32>
    %538 = vector.shape_cast %537 : vector<8xf32> to vector<8x1xf32>
    %cst_178 = arith.constant 4.000000e+00 : f32
    %539 = vector.broadcast %cst_178 : f32 to vector<8x1xf32>
    %540 = arith.mulf %539, %538 : vector<8x1xf32>
    %cst_179 = arith.constant 1.000000e+00 : f32
    %541 = vector.broadcast %cst_179 : f32 to vector<8x1xf32>
    %542 = arith.subf %541, %540 : vector<8x1xf32>
    %cst_180 = arith.constant 2.000000e+00 : f32
    %543 = vector.broadcast %cst_180 : f32 to vector<1x1xf32>
    %544 = arith.mulf %543, %534 : vector<1x1xf32>
    %545 = vector.broadcast %544 : vector<1x1xf32> to vector<8x1xf32>
    %546 = arith.subf %542, %545 : vector<8x1xf32>
    %547 = vector.broadcast %546 : vector<8x1xf32> to vector<8x64xf32>
    %548 = arith.mulf %547, %528 : vector<8x64xf32>
    %cst_181 = arith.constant 2.000000e+00 : f32
    %549 = vector.broadcast %cst_181 : f32 to vector<8x1xf32>
    %550 = arith.mulf %549, %531 : vector<8x1xf32>
    %cst_182 = arith.constant 1.000000e+00 : f32
    %551 = vector.broadcast %cst_182 : f32 to vector<8x1xf32>
    %552 = arith.addf %551, %550 : vector<8x1xf32>
    %553 = vector.broadcast %552 : vector<8x1xf32> to vector<8x64xf32>
    %554 = vector.broadcast %398 : vector<1x64xf32> to vector<8x64xf32>
    %555 = arith.mulf %553, %554 : vector<8x64xf32>
    %556 = arith.addf %548, %555 : vector<8x64xf32>
    %cst_183 = arith.constant 4.000000e+00 : f32
    %557 = vector.broadcast %cst_183 : f32 to vector<8x1xf32>
    %558 = arith.mulf %557, %538 : vector<8x1xf32>
    %cst_184 = arith.constant 1.000000e+00 : f32
    %559 = vector.broadcast %cst_184 : f32 to vector<8x1xf32>
    %560 = arith.subf %559, %558 : vector<8x1xf32>
    %cst_185 = arith.constant 4.000000e+00 : f32
    %561 = vector.broadcast %cst_185 : f32 to vector<8x1xf32>
    %562 = arith.mulf %561, %531 : vector<8x1xf32>
    %563 = vector.broadcast %534 : vector<1x1xf32> to vector<8x1xf32>
    %564 = arith.mulf %562, %563 : vector<8x1xf32>
    %565 = arith.addf %560, %564 : vector<8x1xf32>
    %cst_186 = arith.constant 1.000000e-15 : f32
    %566 = vector.broadcast %cst_186 : f32 to vector<8x1xf32>
    %567 = arith.maximumf %565, %566 : vector<8x1xf32>
    %568 = vector.broadcast %567 : vector<8x1xf32> to vector<8x64xf32>
    %569 = arith.divf %556, %568 : vector<8x64xf32>
    %cst_187 = arith.constant 0.000000e+00 : f32
    %570 = vector.broadcast %cst_187 : f32 to vector<8x64xf32>
    %571 = arith.maximumf %569, %570 : vector<8x64xf32>
    %c512 = arith.constant 512 : index
    %c0_188 = arith.constant 0 : index
    %572 = vector.load %arg3[%c512, %c0_188] : memref<768x128xbf16, #tpu.memory_space<vmem>>, vector<64x64xbf16>
    %c64 = arith.constant 64 : index
    %c0_189 = arith.constant 0 : index
    %573 = vector.load %arg4[%c64, %c0_189] : memref<112x128xf32, #tpu.memory_space<vmem>>, vector<1x64xf32>
    %574 = arith.mulf %571, %571 : vector<8x64xf32>
    %cst_190 = arith.constant dense<0.000000e+00> : vector<8xf32>
    %575 = vector.multi_reduction <add>, %574, %cst_190 [1] : vector<8x64xf32> to vector<8xf32>
    %576 = vector.shape_cast %575 : vector<8xf32> to vector<8x1xf32>
    %cst_191 = arith.constant 1.000000e-30 : f32
    %577 = vector.broadcast %cst_191 : f32 to vector<8x1xf32>
    %578 = arith.maximumf %576, %577 : vector<8x1xf32>
    %579 = math.rsqrt %578 : vector<8x1xf32>
    %580 = arith.mulf %578, %579 : vector<8x1xf32>
    %581 = arith.truncf %571 : vector<8x64xf32> to vector<8x64xbf16>
    %cst_192 = arith.constant dense<0.000000e+00> : vector<8x64xf32>
    %582 = tpu.matmul %581, %572, %cst_192 {dimension_numbers = #tpu.dot_dimension_numbers<[1], [0], [0], [1], [0, 0, 1, 1], [], []>} : vector<8x64xbf16>, vector<64x64xbf16>, vector<8x64xf32> -> vector<8x64xf32>
    %583 = arith.mulf %582, %582 : vector<8x64xf32>
    %cst_193 = arith.constant dense<0.000000e+00> : vector<8xf32>
    %584 = vector.multi_reduction <add>, %583, %cst_193 [1] : vector<8x64xf32> to vector<8xf32>
    %585 = vector.shape_cast %584 : vector<8xf32> to vector<8x1xf32>
    %cst_194 = arith.constant 1.000000e-30 : f32
    %586 = vector.broadcast %cst_194 : f32 to vector<8x1xf32>
    %587 = arith.maximumf %585, %586 : vector<8x1xf32>
    %588 = math.rsqrt %587 : vector<8x1xf32>
    %589 = arith.mulf %587, %588 : vector<8x1xf32>
    %590 = arith.mulf %589, %579 : vector<8x1xf32>
    %cst_195 = arith.constant 1.41421354 : f32
    %591 = vector.broadcast %cst_195 : f32 to vector<8x1xf32>
    %592 = arith.mulf %591, %580 : vector<8x1xf32>
    %cst_196 = arith.constant 2.41421366 : f32
    %593 = vector.broadcast %cst_196 : f32 to vector<8x1xf32>
    %594 = arith.cmpf ogt, %592, %593 : vector<8x1xf32>
    %cst_197 = arith.constant 0.414213568 : f32
    %595 = vector.broadcast %cst_197 : f32 to vector<8x1xf32>
    %596 = arith.cmpf ogt, %592, %595 : vector<8x1xf32>
    %cst_198 = arith.constant dense<true> : vector<8x1xi1>
    %597 = arith.xori %594, %cst_198 : vector<8x1xi1>
    %598 = arith.andi %596, %597 : vector<8x1xi1>
    %cst_199 = arith.constant 1.000000e-15 : f32
    %599 = vector.broadcast %cst_199 : f32 to vector<8x1xf32>
    %600 = arith.maximumf %592, %599 : vector<8x1xf32>
    %cst_200 = arith.constant -1.000000e+00 : f32
    %601 = vector.broadcast %cst_200 : f32 to vector<8x1xf32>
    %602 = arith.divf %601, %600 : vector<8x1xf32>
    %cst_201 = arith.constant 1.000000e+00 : f32
    %603 = vector.broadcast %cst_201 : f32 to vector<8x1xf32>
    %604 = arith.subf %592, %603 : vector<8x1xf32>
    %cst_202 = arith.constant 1.000000e+00 : f32
    %605 = vector.broadcast %cst_202 : f32 to vector<8x1xf32>
    %606 = arith.addf %592, %605 : vector<8x1xf32>
    %607 = arith.divf %604, %606 : vector<8x1xf32>
    %608 = arith.select %598, %607, %592 : vector<8x1xi1>, vector<8x1xf32>
    %609 = arith.select %594, %602, %608 : vector<8x1xi1>, vector<8x1xf32>
    %cst_203 = arith.constant 0.785398185 : f32
    %cst_204 = arith.constant 0.000000e+00 : f32
    %610 = vector.broadcast %cst_203 : f32 to vector<8x1xf32>
    %611 = vector.broadcast %cst_204 : f32 to vector<8x1xf32>
    %612 = arith.select %598, %610, %611 : vector<8x1xi1>, vector<8x1xf32>
    %cst_205 = arith.constant 1.57079637 : f32
    %613 = vector.broadcast %cst_205 : f32 to vector<8x1xf32>
    %614 = arith.select %594, %613, %612 : vector<8x1xi1>, vector<8x1xf32>
    %615 = arith.mulf %609, %609 : vector<8x1xf32>
    %cst_206 = arith.constant 0.0805374458 : f32
    %616 = vector.broadcast %cst_206 : f32 to vector<8x1xf32>
    %617 = arith.mulf %616, %615 : vector<8x1xf32>
    %cst_207 = arith.constant 0.138776854 : f32
    %618 = vector.broadcast %cst_207 : f32 to vector<8x1xf32>
    %619 = arith.subf %617, %618 : vector<8x1xf32>
    %620 = arith.mulf %619, %615 : vector<8x1xf32>
    %cst_208 = arith.constant 0.199777111 : f32
    %621 = vector.broadcast %cst_208 : f32 to vector<8x1xf32>
    %622 = arith.addf %620, %621 : vector<8x1xf32>
    %623 = arith.mulf %622, %615 : vector<8x1xf32>
    %cst_209 = arith.constant 0.333329499 : f32
    %624 = vector.broadcast %cst_209 : f32 to vector<8x1xf32>
    %625 = arith.subf %623, %624 : vector<8x1xf32>
    %626 = arith.mulf %625, %615 : vector<8x1xf32>
    %627 = arith.mulf %626, %609 : vector<8x1xf32>
    %628 = arith.addf %627, %609 : vector<8x1xf32>
    %629 = arith.addf %614, %628 : vector<8x1xf32>
    %cst_210 = arith.constant 0.707106769 : f32
    %630 = vector.broadcast %cst_210 : f32 to vector<8x1xf32>
    %631 = arith.mulf %629, %630 : vector<8x1xf32>
    %632 = arith.mulf %590, %631 : vector<8x1xf32>
    %cst_211 = arith.constant 1.41421354 : f32
    %633 = vector.broadcast %cst_211 : f32 to vector<8x1xf32>
    %634 = arith.mulf %633, %632 : vector<8x1xf32>
    %cst_212 = arith.constant 1.27323949 : f32
    %635 = vector.broadcast %cst_212 : f32 to vector<8x1xf32>
    %636 = arith.mulf %634, %635 : vector<8x1xf32>
    %637 = math.floor %636 : vector<8x1xf32>
    %cst_213 = arith.constant 5.000000e-01 : f32
    %638 = vector.broadcast %cst_213 : f32 to vector<8x1xf32>
    %639 = arith.mulf %637, %638 : vector<8x1xf32>
    %640 = math.floor %639 : vector<8x1xf32>
    %cst_214 = arith.constant 2.000000e+00 : f32
    %641 = vector.broadcast %cst_214 : f32 to vector<8x1xf32>
    %642 = arith.mulf %641, %640 : vector<8x1xf32>
    %643 = arith.subf %637, %642 : vector<8x1xf32>
    %644 = arith.addf %637, %643 : vector<8x1xf32>
    %cst_215 = arith.constant 0.78515625 : f32
    %645 = vector.broadcast %cst_215 : f32 to vector<8x1xf32>
    %646 = arith.mulf %644, %645 : vector<8x1xf32>
    %647 = arith.subf %634, %646 : vector<8x1xf32>
    %cst_216 = arith.constant 2.41875648E-4 : f32
    %648 = vector.broadcast %cst_216 : f32 to vector<8x1xf32>
    %649 = arith.mulf %644, %648 : vector<8x1xf32>
    %650 = arith.subf %647, %649 : vector<8x1xf32>
    %cst_217 = arith.constant 3.77489506E-8 : f32
    %651 = vector.broadcast %cst_217 : f32 to vector<8x1xf32>
    %652 = arith.mulf %644, %651 : vector<8x1xf32>
    %653 = arith.subf %650, %652 : vector<8x1xf32>
    %654 = arith.mulf %653, %653 : vector<8x1xf32>
    %cst_218 = arith.constant 0.00938540231 : f32
    %655 = vector.broadcast %cst_218 : f32 to vector<8x1xf32>
    %656 = arith.mulf %655, %654 : vector<8x1xf32>
    %cst_219 = arith.constant 0.00311992224 : f32
    %657 = vector.broadcast %cst_219 : f32 to vector<8x1xf32>
    %658 = arith.addf %656, %657 : vector<8x1xf32>
    %659 = arith.mulf %658, %654 : vector<8x1xf32>
    %cst_220 = arith.constant 0.0244301353 : f32
    %660 = vector.broadcast %cst_220 : f32 to vector<8x1xf32>
    %661 = arith.addf %659, %660 : vector<8x1xf32>
    %662 = arith.mulf %661, %654 : vector<8x1xf32>
    %cst_221 = arith.constant 0.0534112789 : f32
    %663 = vector.broadcast %cst_221 : f32 to vector<8x1xf32>
    %664 = arith.addf %662, %663 : vector<8x1xf32>
    %665 = arith.mulf %664, %654 : vector<8x1xf32>
    %cst_222 = arith.constant 1.333880e-01 : f32
    %666 = vector.broadcast %cst_222 : f32 to vector<8x1xf32>
    %667 = arith.addf %665, %666 : vector<8x1xf32>
    %668 = arith.mulf %667, %654 : vector<8x1xf32>
    %cst_223 = arith.constant 0.333331555 : f32
    %669 = vector.broadcast %cst_223 : f32 to vector<8x1xf32>
    %670 = arith.addf %668, %669 : vector<8x1xf32>
    %671 = arith.mulf %670, %654 : vector<8x1xf32>
    %672 = arith.mulf %671, %653 : vector<8x1xf32>
    %673 = arith.addf %672, %653 : vector<8x1xf32>
    %cst_224 = arith.constant 5.000000e-01 : f32
    %674 = vector.broadcast %cst_224 : f32 to vector<8x1xf32>
    %675 = arith.mulf %644, %674 : vector<8x1xf32>
    %cst_225 = arith.constant 2.500000e-01 : f32
    %676 = vector.broadcast %cst_225 : f32 to vector<8x1xf32>
    %677 = arith.mulf %644, %676 : vector<8x1xf32>
    %678 = math.floor %677 : vector<8x1xf32>
    %cst_226 = arith.constant 2.000000e+00 : f32
    %679 = vector.broadcast %cst_226 : f32 to vector<8x1xf32>
    %680 = arith.mulf %679, %678 : vector<8x1xf32>
    %681 = arith.subf %675, %680 : vector<8x1xf32>
    %682 = math.absf %673 : vector<8x1xf32>
    %cst_227 = arith.constant 1.000000e-30 : f32
    %683 = vector.broadcast %cst_227 : f32 to vector<8x1xf32>
    %684 = arith.cmpf olt, %682, %683 : vector<8x1xf32>
    %cst_228 = arith.constant 1.000000e-30 : f32
    %685 = vector.broadcast %cst_228 : f32 to vector<8x1xf32>
    %686 = arith.select %684, %685, %673 : vector<8x1xi1>, vector<8x1xf32>
    %cst_229 = arith.constant 5.000000e-01 : f32
    %687 = vector.broadcast %cst_229 : f32 to vector<8x1xf32>
    %688 = arith.cmpf ogt, %681, %687 : vector<8x1xf32>
    %cst_230 = arith.constant -1.000000e+00 : f32
    %689 = vector.broadcast %cst_230 : f32 to vector<8x1xf32>
    %690 = arith.divf %689, %686 : vector<8x1xf32>
    %691 = arith.select %688, %690, %673 : vector<8x1xi1>, vector<8x1xf32>
    %cst_231 = arith.constant 0.707106769 : f32
    %692 = vector.broadcast %cst_231 : f32 to vector<8x1xf32>
    %693 = arith.mulf %691, %692 : vector<8x1xf32>
    %694 = vector.broadcast %588 : vector<8x1xf32> to vector<8x64xf32>
    %695 = arith.mulf %582, %694 : vector<8x64xf32>
    %696 = vector.broadcast %693 : vector<8x1xf32> to vector<8x64xf32>
    %697 = arith.mulf %696, %695 : vector<8x64xf32>
    %cst_232 = arith.constant 0.000000e+00 : f32
    %698 = vector.broadcast %cst_232 : f32 to vector<8x1xf32>
    %699 = arith.cmpf ole, %585, %698 : vector<8x1xf32>
    %cst_233 = arith.constant 0.000000e+00 : f32
    %700 = vector.shape_cast %699 : vector<8x1xi1> to vector<8x1xi1>
    %701 = vector.broadcast %700 : vector<8x1xi1> to vector<8x64xi1>
    %702 = vector.broadcast %cst_233 : f32 to vector<8x64xf32>
    %703 = arith.select %701, %702, %697 : vector<8x64xi1>, vector<8x64xf32>
    %704 = arith.mulf %693, %693 : vector<8x1xf32>
    %cst_234 = arith.constant 0.000000e+00 : f32
    %705 = vector.broadcast %cst_234 : f32 to vector<8x1xf32>
    %706 = arith.select %699, %705, %704 : vector<8x1xi1>, vector<8x1xf32>
    %707 = arith.mulf %573, %573 : vector<1x64xf32>
    %cst_235 = arith.constant dense<0.000000e+00> : vector<1xf32>
    %708 = vector.multi_reduction <add>, %707, %cst_235 [1] : vector<1x64xf32> to vector<1xf32>
    %709 = vector.shape_cast %708 : vector<1xf32> to vector<1x1xf32>
    %710 = vector.broadcast %573 : vector<1x64xf32> to vector<8x64xf32>
    %711 = arith.mulf %703, %710 : vector<8x64xf32>
    %cst_236 = arith.constant dense<0.000000e+00> : vector<8xf32>
    %712 = vector.multi_reduction <add>, %711, %cst_236 [1] : vector<8x64xf32> to vector<8xf32>
    %713 = vector.shape_cast %712 : vector<8xf32> to vector<8x1xf32>
    %cst_237 = arith.constant 4.000000e+00 : f32
    %714 = vector.broadcast %cst_237 : f32 to vector<8x1xf32>
    %715 = arith.mulf %714, %713 : vector<8x1xf32>
    %cst_238 = arith.constant 1.000000e+00 : f32
    %716 = vector.broadcast %cst_238 : f32 to vector<8x1xf32>
    %717 = arith.subf %716, %715 : vector<8x1xf32>
    %cst_239 = arith.constant 2.000000e+00 : f32
    %718 = vector.broadcast %cst_239 : f32 to vector<1x1xf32>
    %719 = arith.mulf %718, %709 : vector<1x1xf32>
    %720 = vector.broadcast %719 : vector<1x1xf32> to vector<8x1xf32>
    %721 = arith.subf %717, %720 : vector<8x1xf32>
    %722 = vector.broadcast %721 : vector<8x1xf32> to vector<8x64xf32>
    %723 = arith.mulf %722, %703 : vector<8x64xf32>
    %cst_240 = arith.constant 2.000000e+00 : f32
    %724 = vector.broadcast %cst_240 : f32 to vector<8x1xf32>
    %725 = arith.mulf %724, %706 : vector<8x1xf32>
    %cst_241 = arith.constant 1.000000e+00 : f32
    %726 = vector.broadcast %cst_241 : f32 to vector<8x1xf32>
    %727 = arith.addf %726, %725 : vector<8x1xf32>
    %728 = vector.broadcast %727 : vector<8x1xf32> to vector<8x64xf32>
    %729 = vector.broadcast %573 : vector<1x64xf32> to vector<8x64xf32>
    %730 = arith.mulf %728, %729 : vector<8x64xf32>
    %731 = arith.addf %723, %730 : vector<8x64xf32>
    %cst_242 = arith.constant 4.000000e+00 : f32
    %732 = vector.broadcast %cst_242 : f32 to vector<8x1xf32>
    %733 = arith.mulf %732, %713 : vector<8x1xf32>
    %cst_243 = arith.constant 1.000000e+00 : f32
    %734 = vector.broadcast %cst_243 : f32 to vector<8x1xf32>
    %735 = arith.subf %734, %733 : vector<8x1xf32>
    %cst_244 = arith.constant 4.000000e+00 : f32
    %736 = vector.broadcast %cst_244 : f32 to vector<8x1xf32>
    %737 = arith.mulf %736, %706 : vector<8x1xf32>
    %738 = vector.broadcast %709 : vector<1x1xf32> to vector<8x1xf32>
    %739 = arith.mulf %737, %738 : vector<8x1xf32>
    %740 = arith.addf %735, %739 : vector<8x1xf32>
    %cst_245 = arith.constant 1.000000e-15 : f32
    %741 = vector.broadcast %cst_245 : f32 to vector<8x1xf32>
    %742 = arith.maximumf %740, %741 : vector<8x1xf32>
    %743 = vector.broadcast %742 : vector<8x1xf32> to vector<8x64xf32>
    %744 = arith.divf %731, %743 : vector<8x64xf32>
    %cst_246 = arith.constant 0.000000e+00 : f32
    %745 = vector.broadcast %cst_246 : f32 to vector<8x64xf32>
    %746 = arith.maximumf %744, %745 : vector<8x64xf32>
    %c576 = arith.constant 576 : index
    %c0_247 = arith.constant 0 : index
    %747 = vector.load %arg3[%c576, %c0_247] : memref<768x128xbf16, #tpu.memory_space<vmem>>, vector<64x32xbf16>
    %c72 = arith.constant 72 : index
    %c0_248 = arith.constant 0 : index
    %748 = vector.load %arg4[%c72, %c0_248] : memref<112x128xf32, #tpu.memory_space<vmem>>, vector<1x32xf32>
    %749 = arith.truncf %746 : vector<8x64xf32> to vector<8x64xbf16>
    %cst_249 = arith.constant dense<0.000000e+00> : vector<8x32xf32>
    %750 = tpu.matmul %749, %747, %cst_249 {dimension_numbers = #tpu.dot_dimension_numbers<[1], [0], [0], [1], [0, 0, 1, 1], [], []>} : vector<8x64xbf16>, vector<64x32xbf16>, vector<8x32xf32> -> vector<8x32xf32>
    %751 = vector.broadcast %748 : vector<1x32xf32> to vector<8x32xf32>
    %752 = arith.addf %750, %751 : vector<8x32xf32>
    %753 = arith.mulf %752, %752 : vector<8x32xf32>
    %cst_250 = arith.constant dense<0.000000e+00> : vector<8xf32>
    %754 = vector.multi_reduction <add>, %753, %cst_250 [1] : vector<8x32xf32> to vector<8xf32>
    %755 = vector.shape_cast %754 : vector<8xf32> to vector<8x1xf32>
    %cst_251 = arith.constant 1.000000e-30 : f32
    %756 = vector.broadcast %cst_251 : f32 to vector<8x1xf32>
    %757 = arith.maximumf %755, %756 : vector<8x1xf32>
    %758 = math.rsqrt %757 : vector<8x1xf32>
    %759 = arith.mulf %757, %758 : vector<8x1xf32>
    %cst_252 = arith.constant 1.41421354 : f32
    %760 = vector.broadcast %cst_252 : f32 to vector<8x1xf32>
    %761 = arith.mulf %760, %759 : vector<8x1xf32>
    %cst_253 = arith.constant 2.41421366 : f32
    %762 = vector.broadcast %cst_253 : f32 to vector<8x1xf32>
    %763 = arith.cmpf ogt, %761, %762 : vector<8x1xf32>
    %cst_254 = arith.constant 0.414213568 : f32
    %764 = vector.broadcast %cst_254 : f32 to vector<8x1xf32>
    %765 = arith.cmpf ogt, %761, %764 : vector<8x1xf32>
    %cst_255 = arith.constant dense<true> : vector<8x1xi1>
    %766 = arith.xori %763, %cst_255 : vector<8x1xi1>
    %767 = arith.andi %765, %766 : vector<8x1xi1>
    %cst_256 = arith.constant 1.000000e-15 : f32
    %768 = vector.broadcast %cst_256 : f32 to vector<8x1xf32>
    %769 = arith.maximumf %761, %768 : vector<8x1xf32>
    %cst_257 = arith.constant -1.000000e+00 : f32
    %770 = vector.broadcast %cst_257 : f32 to vector<8x1xf32>
    %771 = arith.divf %770, %769 : vector<8x1xf32>
    %cst_258 = arith.constant 1.000000e+00 : f32
    %772 = vector.broadcast %cst_258 : f32 to vector<8x1xf32>
    %773 = arith.subf %761, %772 : vector<8x1xf32>
    %cst_259 = arith.constant 1.000000e+00 : f32
    %774 = vector.broadcast %cst_259 : f32 to vector<8x1xf32>
    %775 = arith.addf %761, %774 : vector<8x1xf32>
    %776 = arith.divf %773, %775 : vector<8x1xf32>
    %777 = arith.select %767, %776, %761 : vector<8x1xi1>, vector<8x1xf32>
    %778 = arith.select %763, %771, %777 : vector<8x1xi1>, vector<8x1xf32>
    %cst_260 = arith.constant 0.785398185 : f32
    %cst_261 = arith.constant 0.000000e+00 : f32
    %779 = vector.broadcast %cst_260 : f32 to vector<8x1xf32>
    %780 = vector.broadcast %cst_261 : f32 to vector<8x1xf32>
    %781 = arith.select %767, %779, %780 : vector<8x1xi1>, vector<8x1xf32>
    %cst_262 = arith.constant 1.57079637 : f32
    %782 = vector.broadcast %cst_262 : f32 to vector<8x1xf32>
    %783 = arith.select %763, %782, %781 : vector<8x1xi1>, vector<8x1xf32>
    %784 = arith.mulf %778, %778 : vector<8x1xf32>
    %cst_263 = arith.constant 0.0805374458 : f32
    %785 = vector.broadcast %cst_263 : f32 to vector<8x1xf32>
    %786 = arith.mulf %785, %784 : vector<8x1xf32>
    %cst_264 = arith.constant 0.138776854 : f32
    %787 = vector.broadcast %cst_264 : f32 to vector<8x1xf32>
    %788 = arith.subf %786, %787 : vector<8x1xf32>
    %789 = arith.mulf %788, %784 : vector<8x1xf32>
    %cst_265 = arith.constant 0.199777111 : f32
    %790 = vector.broadcast %cst_265 : f32 to vector<8x1xf32>
    %791 = arith.addf %789, %790 : vector<8x1xf32>
    %792 = arith.mulf %791, %784 : vector<8x1xf32>
    %cst_266 = arith.constant 0.333329499 : f32
    %793 = vector.broadcast %cst_266 : f32 to vector<8x1xf32>
    %794 = arith.subf %792, %793 : vector<8x1xf32>
    %795 = arith.mulf %794, %784 : vector<8x1xf32>
    %796 = arith.mulf %795, %778 : vector<8x1xf32>
    %797 = arith.addf %796, %778 : vector<8x1xf32>
    %798 = arith.addf %783, %797 : vector<8x1xf32>
    %cst_267 = arith.constant 0.707106769 : f32
    %799 = vector.broadcast %cst_267 : f32 to vector<8x1xf32>
    %800 = arith.mulf %798, %799 : vector<8x1xf32>
    %801 = vector.broadcast %758 : vector<8x1xf32> to vector<8x32xf32>
    %802 = arith.mulf %752, %801 : vector<8x32xf32>
    %803 = vector.broadcast %800 : vector<8x1xf32> to vector<8x32xf32>
    %804 = arith.mulf %803, %802 : vector<8x32xf32>
    %805 = arith.addf %324, %804 : vector<8x32xf32>
    %cst_268 = arith.constant 5.000000e-01 : f32
    %806 = vector.broadcast %cst_268 : f32 to vector<8x32xf32>
    %807 = arith.mulf %806, %805 : vector<8x32xf32>
    %808 = arith.subf %324, %807 : vector<8x32xf32>
    %c32 = arith.constant 32 : index
    %c0_269 = arith.constant 0 : index
    %809 = vector.load %arg4[%c32, %c0_269] : memref<112x128xf32, #tpu.memory_space<vmem>>, vector<1x32xf32>
    %810 = vector.broadcast %809 : vector<1x32xf32> to vector<8x32xf32>
    %811 = arith.mulf %808, %810 : vector<8x32xf32>
    %cst_270 = arith.constant dense<0.000000e+00> : vector<8xf32>
    %812 = vector.multi_reduction <add>, %811, %cst_270 [1] : vector<8x32xf32> to vector<8xf32>
    %813 = vector.shape_cast %812 : vector<8xf32> to vector<8x1xf32>
    %c40 = arith.constant 40 : index
    %c0_271 = arith.constant 0 : index
    %814 = vector.load %arg4[%c40, %c0_271] : memref<112x128xf32, #tpu.memory_space<vmem>>, vector<1x1xf32>
    %815 = vector.broadcast %814 : vector<1x1xf32> to vector<8x1xf32>
    %816 = arith.addf %813, %815 : vector<8x1xf32>
    %817 = arith.subf %804, %807 : vector<8x32xf32>
    %c80 = arith.constant 80 : index
    %c0_272 = arith.constant 0 : index
    %818 = vector.load %arg4[%c80, %c0_272] : memref<112x128xf32, #tpu.memory_space<vmem>>, vector<1x32xf32>
    %819 = vector.broadcast %818 : vector<1x32xf32> to vector<8x32xf32>
    %820 = arith.mulf %817, %819 : vector<8x32xf32>
    %cst_273 = arith.constant dense<0.000000e+00> : vector<8xf32>
    %821 = vector.multi_reduction <add>, %820, %cst_273 [1] : vector<8x32xf32> to vector<8xf32>
    %822 = vector.shape_cast %821 : vector<8xf32> to vector<8x1xf32>
    %c88 = arith.constant 88 : index
    %c0_274 = arith.constant 0 : index
    %823 = vector.load %arg4[%c88, %c0_274] : memref<112x128xf32, #tpu.memory_space<vmem>>, vector<1x1xf32>
    %824 = vector.broadcast %823 : vector<1x1xf32> to vector<8x1xf32>
    %825 = arith.addf %822, %824 : vector<8x1xf32>
    %826 = arith.maximumf %816, %825 : vector<8x1xf32>
    %827 = arith.subf %816, %826 : vector<8x1xf32>
    %828 = math.exp %827 : vector<8x1xf32>
    %829 = arith.subf %825, %826 : vector<8x1xf32>
    %830 = math.exp %829 : vector<8x1xf32>
    %831 = arith.addf %828, %830 : vector<8x1xf32>
    %832 = tpu.reciprocal %831 {approx = true} : vector<8x1xf32> -> vector<8x1xf32>
    %833 = arith.mulf %828, %832 : vector<8x1xf32>
    %834 = arith.mulf %830, %832 : vector<8x1xf32>
    %835 = arith.mulf %290, %290 : vector<8x64xf32>
    %cst_275 = arith.constant dense<0.000000e+00> : vector<8xf32>
    %836 = vector.multi_reduction <add>, %835, %cst_275 [1] : vector<8x64xf32> to vector<8xf32>
    %837 = vector.shape_cast %836 : vector<8xf32> to vector<8x1xf32>
    %cst_276 = arith.constant 1.000000e-30 : f32
    %838 = vector.broadcast %cst_276 : f32 to vector<8x1xf32>
    %839 = arith.maximumf %837, %838 : vector<8x1xf32>
    %840 = math.rsqrt %839 : vector<8x1xf32>
    %841 = arith.mulf %839, %840 : vector<8x1xf32>
    %cst_277 = arith.constant 1.41421354 : f32
    %842 = vector.broadcast %cst_277 : f32 to vector<8x1xf32>
    %843 = arith.mulf %842, %841 : vector<8x1xf32>
    %cst_278 = arith.constant -0.99999988 : f32
    %cst_279 = arith.constant 0.99999988 : f32
    %844 = vector.broadcast %cst_278 : f32 to vector<8x1xf32>
    %845 = arith.maximumf %844, %843 : vector<8x1xf32>
    %846 = vector.broadcast %cst_279 : f32 to vector<8x1xf32>
    %847 = arith.minimumf %846, %845 : vector<8x1xf32>
    %cst_280 = arith.constant 1.000000e+00 : f32
    %848 = vector.broadcast %cst_280 : f32 to vector<8x1xf32>
    %849 = arith.addf %848, %847 : vector<8x1xf32>
    %850 = math.log %849 : vector<8x1xf32>
    %cst_281 = arith.constant 1.000000e+00 : f32
    %851 = vector.broadcast %cst_281 : f32 to vector<8x1xf32>
    %852 = arith.subf %851, %847 : vector<8x1xf32>
    %853 = math.log %852 : vector<8x1xf32>
    %854 = arith.subf %850, %853 : vector<8x1xf32>
    %cst_282 = arith.constant 5.000000e-01 : f32
    %855 = vector.broadcast %cst_282 : f32 to vector<8x1xf32>
    %856 = arith.mulf %855, %854 : vector<8x1xf32>
    %cst_283 = arith.constant 0.707106769 : f32
    %857 = vector.broadcast %cst_283 : f32 to vector<8x1xf32>
    %858 = arith.mulf %856, %857 : vector<8x1xf32>
    %859 = arith.mulf %833, %858 : vector<8x1xf32>
    %cst_284 = arith.constant 1.41421354 : f32
    %860 = vector.broadcast %cst_284 : f32 to vector<8x1xf32>
    %861 = arith.mulf %860, %859 : vector<8x1xf32>
    %862 = math.tanh %861 : vector<8x1xf32>
    %cst_285 = arith.constant 0.707106769 : f32
    %863 = vector.broadcast %cst_285 : f32 to vector<8x1xf32>
    %864 = arith.mulf %862, %863 : vector<8x1xf32>
    %865 = vector.broadcast %840 : vector<8x1xf32> to vector<8x64xf32>
    %866 = arith.mulf %290, %865 : vector<8x64xf32>
    %867 = vector.broadcast %864 : vector<8x1xf32> to vector<8x64xf32>
    %868 = arith.mulf %867, %866 : vector<8x64xf32>
    %869 = arith.mulf %864, %864 : vector<8x1xf32>
    %cst_286 = arith.constant 1.000000e-30 : f32
    %870 = vector.broadcast %cst_286 : f32 to vector<8x1xf32>
    %871 = arith.maximumf %869, %870 : vector<8x1xf32>
    %872 = math.rsqrt %871 : vector<8x1xf32>
    %cst_287 = arith.constant 4.960080e-01 : f32
    %873 = vector.broadcast %cst_287 : f32 to vector<8x1xf32>
    %874 = arith.cmpf ogt, %871, %873 : vector<8x1xf32>
    %cst_288 = arith.constant 0.70427835 : f32
    %875 = vector.broadcast %cst_288 : f32 to vector<8x1xf32>
    %876 = arith.mulf %872, %875 : vector<8x1xf32>
    %877 = vector.broadcast %876 : vector<8x1xf32> to vector<8x64xf32>
    %878 = arith.mulf %868, %877 : vector<8x64xf32>
    %879 = vector.shape_cast %874 : vector<8x1xi1> to vector<8x1xi1>
    %880 = vector.broadcast %879 : vector<8x1xi1> to vector<8x64xi1>
    %881 = arith.select %880, %878, %868 : vector<8x64xi1>, vector<8x64xf32>
    %c416 = arith.constant 416 : index
    %c0_289 = arith.constant 0 : index
    %882 = vector.load %arg3[%c416, %c0_289] : memref<768x128xbf16, #tpu.memory_space<vmem>>, vector<64x32xbf16>
    %c48 = arith.constant 48 : index
    %c0_290 = arith.constant 0 : index
    %883 = vector.load %arg4[%c48, %c0_290] : memref<112x128xf32, #tpu.memory_space<vmem>>, vector<1x32xf32>
    %884 = arith.mulf %881, %881 : vector<8x64xf32>
    %cst_291 = arith.constant dense<0.000000e+00> : vector<8xf32>
    %885 = vector.multi_reduction <add>, %884, %cst_291 [1] : vector<8x64xf32> to vector<8xf32>
    %886 = vector.shape_cast %885 : vector<8xf32> to vector<8x1xf32>
    %cst_292 = arith.constant 1.000000e-30 : f32
    %887 = vector.broadcast %cst_292 : f32 to vector<8x1xf32>
    %888 = arith.maximumf %886, %887 : vector<8x1xf32>
    %889 = math.rsqrt %888 : vector<8x1xf32>
    %890 = arith.mulf %888, %889 : vector<8x1xf32>
    %891 = arith.truncf %881 : vector<8x64xf32> to vector<8x64xbf16>
    %cst_293 = arith.constant dense<0.000000e+00> : vector<8x32xf32>
    %892 = tpu.matmul %891, %882, %cst_293 {dimension_numbers = #tpu.dot_dimension_numbers<[1], [0], [0], [1], [0, 0, 1, 1], [], []>} : vector<8x64xbf16>, vector<64x32xbf16>, vector<8x32xf32> -> vector<8x32xf32>
    %893 = arith.mulf %892, %892 : vector<8x32xf32>
    %cst_294 = arith.constant dense<0.000000e+00> : vector<8xf32>
    %894 = vector.multi_reduction <add>, %893, %cst_294 [1] : vector<8x32xf32> to vector<8xf32>
    %895 = vector.shape_cast %894 : vector<8xf32> to vector<8x1xf32>
    %cst_295 = arith.constant 1.000000e-30 : f32
    %896 = vector.broadcast %cst_295 : f32 to vector<8x1xf32>
    %897 = arith.maximumf %895, %896 : vector<8x1xf32>
    %898 = math.rsqrt %897 : vector<8x1xf32>
    %899 = arith.mulf %897, %898 : vector<8x1xf32>
    %900 = arith.mulf %899, %889 : vector<8x1xf32>
    %cst_296 = arith.constant 1.41421354 : f32
    %901 = vector.broadcast %cst_296 : f32 to vector<8x1xf32>
    %902 = arith.mulf %901, %890 : vector<8x1xf32>
    %cst_297 = arith.constant -0.99999988 : f32
    %cst_298 = arith.constant 0.99999988 : f32
    %903 = vector.broadcast %cst_297 : f32 to vector<8x1xf32>
    %904 = arith.maximumf %903, %902 : vector<8x1xf32>
    %905 = vector.broadcast %cst_298 : f32 to vector<8x1xf32>
    %906 = arith.minimumf %905, %904 : vector<8x1xf32>
    %cst_299 = arith.constant 1.000000e+00 : f32
    %907 = vector.broadcast %cst_299 : f32 to vector<8x1xf32>
    %908 = arith.addf %907, %906 : vector<8x1xf32>
    %909 = math.log %908 : vector<8x1xf32>
    %cst_300 = arith.constant 1.000000e+00 : f32
    %910 = vector.broadcast %cst_300 : f32 to vector<8x1xf32>
    %911 = arith.subf %910, %906 : vector<8x1xf32>
    %912 = math.log %911 : vector<8x1xf32>
    %913 = arith.subf %909, %912 : vector<8x1xf32>
    %cst_301 = arith.constant 5.000000e-01 : f32
    %914 = vector.broadcast %cst_301 : f32 to vector<8x1xf32>
    %915 = arith.mulf %914, %913 : vector<8x1xf32>
    %cst_302 = arith.constant 0.707106769 : f32
    %916 = vector.broadcast %cst_302 : f32 to vector<8x1xf32>
    %917 = arith.mulf %915, %916 : vector<8x1xf32>
    %918 = arith.mulf %900, %917 : vector<8x1xf32>
    %cst_303 = arith.constant 1.41421354 : f32
    %919 = vector.broadcast %cst_303 : f32 to vector<8x1xf32>
    %920 = arith.mulf %919, %918 : vector<8x1xf32>
    %921 = math.tanh %920 : vector<8x1xf32>
    %cst_304 = arith.constant 0.707106769 : f32
    %922 = vector.broadcast %cst_304 : f32 to vector<8x1xf32>
    %923 = arith.mulf %921, %922 : vector<8x1xf32>
    %924 = vector.broadcast %898 : vector<8x1xf32> to vector<8x32xf32>
    %925 = arith.mulf %892, %924 : vector<8x32xf32>
    %926 = vector.broadcast %923 : vector<8x1xf32> to vector<8x32xf32>
    %927 = arith.mulf %926, %925 : vector<8x32xf32>
    %cst_305 = arith.constant 0.000000e+00 : f32
    %928 = vector.broadcast %cst_305 : f32 to vector<8x1xf32>
    %929 = arith.cmpf ole, %895, %928 : vector<8x1xf32>
    %cst_306 = arith.constant 0.000000e+00 : f32
    %930 = vector.shape_cast %929 : vector<8x1xi1> to vector<8x1xi1>
    %931 = vector.broadcast %930 : vector<8x1xi1> to vector<8x32xi1>
    %932 = vector.broadcast %cst_306 : f32 to vector<8x32xf32>
    %933 = arith.select %931, %932, %927 : vector<8x32xi1>, vector<8x32xf32>
    %934 = arith.mulf %923, %923 : vector<8x1xf32>
    %cst_307 = arith.constant 0.000000e+00 : f32
    %935 = vector.broadcast %cst_307 : f32 to vector<8x1xf32>
    %936 = arith.select %929, %935, %934 : vector<8x1xi1>, vector<8x1xf32>
    %cst_308 = arith.constant 1.000000e-30 : f32
    %937 = vector.broadcast %cst_308 : f32 to vector<8x1xf32>
    %938 = arith.maximumf %936, %937 : vector<8x1xf32>
    %939 = math.rsqrt %938 : vector<8x1xf32>
    %cst_309 = arith.constant 4.960080e-01 : f32
    %940 = vector.broadcast %cst_309 : f32 to vector<8x1xf32>
    %941 = arith.cmpf ogt, %938, %940 : vector<8x1xf32>
    %cst_310 = arith.constant 0.70427835 : f32
    %942 = vector.broadcast %cst_310 : f32 to vector<8x1xf32>
    %943 = arith.mulf %939, %942 : vector<8x1xf32>
    %944 = vector.broadcast %943 : vector<8x1xf32> to vector<8x32xf32>
    %945 = arith.mulf %933, %944 : vector<8x32xf32>
    %946 = vector.shape_cast %941 : vector<8x1xi1> to vector<8x1xi1>
    %947 = vector.broadcast %946 : vector<8x1xi1> to vector<8x32xi1>
    %948 = arith.select %947, %945, %933 : vector<8x32xi1>, vector<8x32xf32>
    %cst_311 = arith.constant 4.960080e-01 : f32
    %949 = vector.broadcast %cst_311 : f32 to vector<8x1xf32>
    %950 = arith.select %941, %949, %936 : vector<8x1xi1>, vector<8x1xf32>
    %951 = arith.mulf %883, %883 : vector<1x32xf32>
    %cst_312 = arith.constant dense<0.000000e+00> : vector<1xf32>
    %952 = vector.multi_reduction <add>, %951, %cst_312 [1] : vector<1x32xf32> to vector<1xf32>
    %953 = vector.shape_cast %952 : vector<1xf32> to vector<1x1xf32>
    %954 = vector.broadcast %883 : vector<1x32xf32> to vector<8x32xf32>
    %955 = arith.mulf %948, %954 : vector<8x32xf32>
    %cst_313 = arith.constant dense<0.000000e+00> : vector<8xf32>
    %956 = vector.multi_reduction <add>, %955, %cst_313 [1] : vector<8x32xf32> to vector<8xf32>
    %957 = vector.shape_cast %956 : vector<8xf32> to vector<8x1xf32>
    %cst_314 = arith.constant -4.000000e+00 : f32
    %958 = vector.broadcast %cst_314 : f32 to vector<8x1xf32>
    %959 = arith.mulf %958, %957 : vector<8x1xf32>
    %cst_315 = arith.constant 1.000000e+00 : f32
    %960 = vector.broadcast %cst_315 : f32 to vector<8x1xf32>
    %961 = arith.subf %960, %959 : vector<8x1xf32>
    %cst_316 = arith.constant -2.000000e+00 : f32
    %962 = vector.broadcast %cst_316 : f32 to vector<1x1xf32>
    %963 = arith.mulf %962, %953 : vector<1x1xf32>
    %964 = vector.broadcast %963 : vector<1x1xf32> to vector<8x1xf32>
    %965 = arith.subf %961, %964 : vector<8x1xf32>
    %966 = vector.broadcast %965 : vector<8x1xf32> to vector<8x32xf32>
    %967 = arith.mulf %966, %948 : vector<8x32xf32>
    %cst_317 = arith.constant -2.000000e+00 : f32
    %968 = vector.broadcast %cst_317 : f32 to vector<8x1xf32>
    %969 = arith.mulf %968, %950 : vector<8x1xf32>
    %cst_318 = arith.constant 1.000000e+00 : f32
    %970 = vector.broadcast %cst_318 : f32 to vector<8x1xf32>
    %971 = arith.addf %970, %969 : vector<8x1xf32>
    %972 = vector.broadcast %971 : vector<8x1xf32> to vector<8x32xf32>
    %973 = vector.broadcast %883 : vector<1x32xf32> to vector<8x32xf32>
    %974 = arith.mulf %972, %973 : vector<8x32xf32>
    %975 = arith.addf %967, %974 : vector<8x32xf32>
    %cst_319 = arith.constant -4.000000e+00 : f32
    %976 = vector.broadcast %cst_319 : f32 to vector<8x1xf32>
    %977 = arith.mulf %976, %957 : vector<8x1xf32>
    %cst_320 = arith.constant 1.000000e+00 : f32
    %978 = vector.broadcast %cst_320 : f32 to vector<8x1xf32>
    %979 = arith.subf %978, %977 : vector<8x1xf32>
    %cst_321 = arith.constant 4.000000e+00 : f32
    %980 = vector.broadcast %cst_321 : f32 to vector<8x1xf32>
    %981 = arith.mulf %980, %950 : vector<8x1xf32>
    %982 = vector.broadcast %953 : vector<1x1xf32> to vector<8x1xf32>
    %983 = arith.mulf %981, %982 : vector<8x1xf32>
    %984 = arith.addf %979, %983 : vector<8x1xf32>
    %cst_322 = arith.constant 1.000000e-15 : f32
    %985 = vector.broadcast %cst_322 : f32 to vector<8x1xf32>
    %986 = arith.maximumf %984, %985 : vector<8x1xf32>
    %987 = vector.broadcast %986 : vector<8x1xf32> to vector<8x32xf32>
    %988 = arith.divf %975, %987 : vector<8x32xf32>
    %989 = arith.mulf %988, %988 : vector<8x32xf32>
    %cst_323 = arith.constant dense<0.000000e+00> : vector<8xf32>
    %990 = vector.multi_reduction <add>, %989, %cst_323 [1] : vector<8x32xf32> to vector<8xf32>
    %991 = vector.shape_cast %990 : vector<8xf32> to vector<8x1xf32>
    %cst_324 = arith.constant 1.000000e-30 : f32
    %992 = vector.broadcast %cst_324 : f32 to vector<8x1xf32>
    %993 = arith.maximumf %991, %992 : vector<8x1xf32>
    %994 = math.rsqrt %993 : vector<8x1xf32>
    %cst_325 = arith.constant 4.960080e-01 : f32
    %995 = vector.broadcast %cst_325 : f32 to vector<8x1xf32>
    %996 = arith.cmpf ogt, %993, %995 : vector<8x1xf32>
    %cst_326 = arith.constant 0.70427835 : f32
    %997 = vector.broadcast %cst_326 : f32 to vector<8x1xf32>
    %998 = arith.mulf %994, %997 : vector<8x1xf32>
    %999 = vector.broadcast %998 : vector<8x1xf32> to vector<8x32xf32>
    %1000 = arith.mulf %988, %999 : vector<8x32xf32>
    %1001 = vector.shape_cast %996 : vector<8x1xi1> to vector<8x1xi1>
    %1002 = vector.broadcast %1001 : vector<8x1xi1> to vector<8x32xi1>
    %1003 = arith.select %1002, %1000, %988 : vector<8x32xi1>, vector<8x32xf32>
    %cst_327 = arith.constant 0.000000e+00 : f32
    %1004 = vector.broadcast %cst_327 : f32 to vector<8x32xf32>
    %1005 = arith.maximumf %1003, %1004 : vector<8x32xf32>
    %1006 = arith.mulf %1005, %1005 : vector<8x32xf32>
    %cst_328 = arith.constant dense<0.000000e+00> : vector<8xf32>
    %1007 = vector.multi_reduction <add>, %1006, %cst_328 [1] : vector<8x32xf32> to vector<8xf32>
    %1008 = vector.shape_cast %1007 : vector<8xf32> to vector<8x1xf32>
    %cst_329 = arith.constant 1.000000e-30 : f32
    %1009 = vector.broadcast %cst_329 : f32 to vector<8x1xf32>
    %1010 = arith.maximumf %1008, %1009 : vector<8x1xf32>
    %1011 = math.rsqrt %1010 : vector<8x1xf32>
    %1012 = arith.mulf %1010, %1011 : vector<8x1xf32>
    %cst_330 = arith.constant 1.41421354 : f32
    %1013 = vector.broadcast %cst_330 : f32 to vector<8x1xf32>
    %1014 = arith.mulf %1013, %1012 : vector<8x1xf32>
    %cst_331 = arith.constant -0.99999988 : f32
    %cst_332 = arith.constant 0.99999988 : f32
    %1015 = vector.broadcast %cst_331 : f32 to vector<8x1xf32>
    %1016 = arith.maximumf %1015, %1014 : vector<8x1xf32>
    %1017 = vector.broadcast %cst_332 : f32 to vector<8x1xf32>
    %1018 = arith.minimumf %1017, %1016 : vector<8x1xf32>
    %cst_333 = arith.constant 1.000000e+00 : f32
    %1019 = vector.broadcast %cst_333 : f32 to vector<8x1xf32>
    %1020 = arith.addf %1019, %1018 : vector<8x1xf32>
    %1021 = math.log %1020 : vector<8x1xf32>
    %cst_334 = arith.constant 1.000000e+00 : f32
    %1022 = vector.broadcast %cst_334 : f32 to vector<8x1xf32>
    %1023 = arith.subf %1022, %1018 : vector<8x1xf32>
    %1024 = math.log %1023 : vector<8x1xf32>
    %1025 = arith.subf %1021, %1024 : vector<8x1xf32>
    %cst_335 = arith.constant 5.000000e-01 : f32
    %1026 = vector.broadcast %cst_335 : f32 to vector<8x1xf32>
    %1027 = arith.mulf %1026, %1025 : vector<8x1xf32>
    %cst_336 = arith.constant 0.707106769 : f32
    %1028 = vector.broadcast %cst_336 : f32 to vector<8x1xf32>
    %1029 = arith.mulf %1027, %1028 : vector<8x1xf32>
    %1030 = vector.broadcast %1011 : vector<8x1xf32> to vector<8x32xf32>
    %1031 = arith.mulf %1005, %1030 : vector<8x32xf32>
    %1032 = vector.broadcast %1029 : vector<8x1xf32> to vector<8x32xf32>
    %1033 = arith.mulf %1032, %1031 : vector<8x32xf32>
    %1034 = arith.mulf %746, %746 : vector<8x64xf32>
    %cst_337 = arith.constant dense<0.000000e+00> : vector<8xf32>
    %1035 = vector.multi_reduction <add>, %1034, %cst_337 [1] : vector<8x64xf32> to vector<8xf32>
    %1036 = vector.shape_cast %1035 : vector<8xf32> to vector<8x1xf32>
    %cst_338 = arith.constant 1.000000e-30 : f32
    %1037 = vector.broadcast %cst_338 : f32 to vector<8x1xf32>
    %1038 = arith.maximumf %1036, %1037 : vector<8x1xf32>
    %1039 = math.rsqrt %1038 : vector<8x1xf32>
    %1040 = arith.mulf %1038, %1039 : vector<8x1xf32>
    %cst_339 = arith.constant 1.41421354 : f32
    %1041 = vector.broadcast %cst_339 : f32 to vector<8x1xf32>
    %1042 = arith.mulf %1041, %1040 : vector<8x1xf32>
    %cst_340 = arith.constant 2.41421366 : f32
    %1043 = vector.broadcast %cst_340 : f32 to vector<8x1xf32>
    %1044 = arith.cmpf ogt, %1042, %1043 : vector<8x1xf32>
    %cst_341 = arith.constant 0.414213568 : f32
    %1045 = vector.broadcast %cst_341 : f32 to vector<8x1xf32>
    %1046 = arith.cmpf ogt, %1042, %1045 : vector<8x1xf32>
    %cst_342 = arith.constant dense<true> : vector<8x1xi1>
    %1047 = arith.xori %1044, %cst_342 : vector<8x1xi1>
    %1048 = arith.andi %1046, %1047 : vector<8x1xi1>
    %cst_343 = arith.constant 1.000000e-15 : f32
    %1049 = vector.broadcast %cst_343 : f32 to vector<8x1xf32>
    %1050 = arith.maximumf %1042, %1049 : vector<8x1xf32>
    %cst_344 = arith.constant -1.000000e+00 : f32
    %1051 = vector.broadcast %cst_344 : f32 to vector<8x1xf32>
    %1052 = arith.divf %1051, %1050 : vector<8x1xf32>
    %cst_345 = arith.constant 1.000000e+00 : f32
    %1053 = vector.broadcast %cst_345 : f32 to vector<8x1xf32>
    %1054 = arith.subf %1042, %1053 : vector<8x1xf32>
    %cst_346 = arith.constant 1.000000e+00 : f32
    %1055 = vector.broadcast %cst_346 : f32 to vector<8x1xf32>
    %1056 = arith.addf %1042, %1055 : vector<8x1xf32>
    %1057 = arith.divf %1054, %1056 : vector<8x1xf32>
    %1058 = arith.select %1048, %1057, %1042 : vector<8x1xi1>, vector<8x1xf32>
    %1059 = arith.select %1044, %1052, %1058 : vector<8x1xi1>, vector<8x1xf32>
    %cst_347 = arith.constant 0.785398185 : f32
    %cst_348 = arith.constant 0.000000e+00 : f32
    %1060 = vector.broadcast %cst_347 : f32 to vector<8x1xf32>
    %1061 = vector.broadcast %cst_348 : f32 to vector<8x1xf32>
    %1062 = arith.select %1048, %1060, %1061 : vector<8x1xi1>, vector<8x1xf32>
    %cst_349 = arith.constant 1.57079637 : f32
    %1063 = vector.broadcast %cst_349 : f32 to vector<8x1xf32>
    %1064 = arith.select %1044, %1063, %1062 : vector<8x1xi1>, vector<8x1xf32>
    %1065 = arith.mulf %1059, %1059 : vector<8x1xf32>
    %cst_350 = arith.constant 0.0805374458 : f32
    %1066 = vector.broadcast %cst_350 : f32 to vector<8x1xf32>
    %1067 = arith.mulf %1066, %1065 : vector<8x1xf32>
    %cst_351 = arith.constant 0.138776854 : f32
    %1068 = vector.broadcast %cst_351 : f32 to vector<8x1xf32>
    %1069 = arith.subf %1067, %1068 : vector<8x1xf32>
    %1070 = arith.mulf %1069, %1065 : vector<8x1xf32>
    %cst_352 = arith.constant 0.199777111 : f32
    %1071 = vector.broadcast %cst_352 : f32 to vector<8x1xf32>
    %1072 = arith.addf %1070, %1071 : vector<8x1xf32>
    %1073 = arith.mulf %1072, %1065 : vector<8x1xf32>
    %cst_353 = arith.constant 0.333329499 : f32
    %1074 = vector.broadcast %cst_353 : f32 to vector<8x1xf32>
    %1075 = arith.subf %1073, %1074 : vector<8x1xf32>
    %1076 = arith.mulf %1075, %1065 : vector<8x1xf32>
    %1077 = arith.mulf %1076, %1059 : vector<8x1xf32>
    %1078 = arith.addf %1077, %1059 : vector<8x1xf32>
    %1079 = arith.addf %1064, %1078 : vector<8x1xf32>
    %cst_354 = arith.constant 0.707106769 : f32
    %1080 = vector.broadcast %cst_354 : f32 to vector<8x1xf32>
    %1081 = arith.mulf %1079, %1080 : vector<8x1xf32>
    %1082 = arith.mulf %834, %1081 : vector<8x1xf32>
    %cst_355 = arith.constant 1.41421354 : f32
    %1083 = vector.broadcast %cst_355 : f32 to vector<8x1xf32>
    %1084 = arith.mulf %1083, %1082 : vector<8x1xf32>
    %cst_356 = arith.constant 1.27323949 : f32
    %1085 = vector.broadcast %cst_356 : f32 to vector<8x1xf32>
    %1086 = arith.mulf %1084, %1085 : vector<8x1xf32>
    %1087 = math.floor %1086 : vector<8x1xf32>
    %cst_357 = arith.constant 5.000000e-01 : f32
    %1088 = vector.broadcast %cst_357 : f32 to vector<8x1xf32>
    %1089 = arith.mulf %1087, %1088 : vector<8x1xf32>
    %1090 = math.floor %1089 : vector<8x1xf32>
    %cst_358 = arith.constant 2.000000e+00 : f32
    %1091 = vector.broadcast %cst_358 : f32 to vector<8x1xf32>
    %1092 = arith.mulf %1091, %1090 : vector<8x1xf32>
    %1093 = arith.subf %1087, %1092 : vector<8x1xf32>
    %1094 = arith.addf %1087, %1093 : vector<8x1xf32>
    %cst_359 = arith.constant 0.78515625 : f32
    %1095 = vector.broadcast %cst_359 : f32 to vector<8x1xf32>
    %1096 = arith.mulf %1094, %1095 : vector<8x1xf32>
    %1097 = arith.subf %1084, %1096 : vector<8x1xf32>
    %cst_360 = arith.constant 2.41875648E-4 : f32
    %1098 = vector.broadcast %cst_360 : f32 to vector<8x1xf32>
    %1099 = arith.mulf %1094, %1098 : vector<8x1xf32>
    %1100 = arith.subf %1097, %1099 : vector<8x1xf32>
    %cst_361 = arith.constant 3.77489506E-8 : f32
    %1101 = vector.broadcast %cst_361 : f32 to vector<8x1xf32>
    %1102 = arith.mulf %1094, %1101 : vector<8x1xf32>
    %1103 = arith.subf %1100, %1102 : vector<8x1xf32>
    %1104 = arith.mulf %1103, %1103 : vector<8x1xf32>
    %cst_362 = arith.constant 0.00938540231 : f32
    %1105 = vector.broadcast %cst_362 : f32 to vector<8x1xf32>
    %1106 = arith.mulf %1105, %1104 : vector<8x1xf32>
    %cst_363 = arith.constant 0.00311992224 : f32
    %1107 = vector.broadcast %cst_363 : f32 to vector<8x1xf32>
    %1108 = arith.addf %1106, %1107 : vector<8x1xf32>
    %1109 = arith.mulf %1108, %1104 : vector<8x1xf32>
    %cst_364 = arith.constant 0.0244301353 : f32
    %1110 = vector.broadcast %cst_364 : f32 to vector<8x1xf32>
    %1111 = arith.addf %1109, %1110 : vector<8x1xf32>
    %1112 = arith.mulf %1111, %1104 : vector<8x1xf32>
    %cst_365 = arith.constant 0.0534112789 : f32
    %1113 = vector.broadcast %cst_365 : f32 to vector<8x1xf32>
    %1114 = arith.addf %1112, %1113 : vector<8x1xf32>
    %1115 = arith.mulf %1114, %1104 : vector<8x1xf32>
    %cst_366 = arith.constant 1.333880e-01 : f32
    %1116 = vector.broadcast %cst_366 : f32 to vector<8x1xf32>
    %1117 = arith.addf %1115, %1116 : vector<8x1xf32>
    %1118 = arith.mulf %1117, %1104 : vector<8x1xf32>
    %cst_367 = arith.constant 0.333331555 : f32
    %1119 = vector.broadcast %cst_367 : f32 to vector<8x1xf32>
    %1120 = arith.addf %1118, %1119 : vector<8x1xf32>
    %1121 = arith.mulf %1120, %1104 : vector<8x1xf32>
    %1122 = arith.mulf %1121, %1103 : vector<8x1xf32>
    %1123 = arith.addf %1122, %1103 : vector<8x1xf32>
    %cst_368 = arith.constant 5.000000e-01 : f32
    %1124 = vector.broadcast %cst_368 : f32 to vector<8x1xf32>
    %1125 = arith.mulf %1094, %1124 : vector<8x1xf32>
    %cst_369 = arith.constant 2.500000e-01 : f32
    %1126 = vector.broadcast %cst_369 : f32 to vector<8x1xf32>
    %1127 = arith.mulf %1094, %1126 : vector<8x1xf32>
    %1128 = math.floor %1127 : vector<8x1xf32>
    %cst_370 = arith.constant 2.000000e+00 : f32
    %1129 = vector.broadcast %cst_370 : f32 to vector<8x1xf32>
    %1130 = arith.mulf %1129, %1128 : vector<8x1xf32>
    %1131 = arith.subf %1125, %1130 : vector<8x1xf32>
    %1132 = math.absf %1123 : vector<8x1xf32>
    %cst_371 = arith.constant 1.000000e-30 : f32
    %1133 = vector.broadcast %cst_371 : f32 to vector<8x1xf32>
    %1134 = arith.cmpf olt, %1132, %1133 : vector<8x1xf32>
    %cst_372 = arith.constant 1.000000e-30 : f32
    %1135 = vector.broadcast %cst_372 : f32 to vector<8x1xf32>
    %1136 = arith.select %1134, %1135, %1123 : vector<8x1xi1>, vector<8x1xf32>
    %cst_373 = arith.constant 5.000000e-01 : f32
    %1137 = vector.broadcast %cst_373 : f32 to vector<8x1xf32>
    %1138 = arith.cmpf ogt, %1131, %1137 : vector<8x1xf32>
    %cst_374 = arith.constant -1.000000e+00 : f32
    %1139 = vector.broadcast %cst_374 : f32 to vector<8x1xf32>
    %1140 = arith.divf %1139, %1136 : vector<8x1xf32>
    %1141 = arith.select %1138, %1140, %1123 : vector<8x1xi1>, vector<8x1xf32>
    %cst_375 = arith.constant 0.707106769 : f32
    %1142 = vector.broadcast %cst_375 : f32 to vector<8x1xf32>
    %1143 = arith.mulf %1141, %1142 : vector<8x1xf32>
    %1144 = vector.broadcast %1039 : vector<8x1xf32> to vector<8x64xf32>
    %1145 = arith.mulf %746, %1144 : vector<8x64xf32>
    %1146 = vector.broadcast %1143 : vector<8x1xf32> to vector<8x64xf32>
    %1147 = arith.mulf %1146, %1145 : vector<8x64xf32>
    %c640 = arith.constant 640 : index
    %c0_376 = arith.constant 0 : index
    %1148 = vector.load %arg3[%c640, %c0_376] : memref<768x128xbf16, #tpu.memory_space<vmem>>, vector<64x32xbf16>
    %c96 = arith.constant 96 : index
    %c0_377 = arith.constant 0 : index
    %1149 = vector.load %arg4[%c96, %c0_377] : memref<112x128xf32, #tpu.memory_space<vmem>>, vector<1x32xf32>
    %1150 = arith.mulf %1147, %1147 : vector<8x64xf32>
    %cst_378 = arith.constant dense<0.000000e+00> : vector<8xf32>
    %1151 = vector.multi_reduction <add>, %1150, %cst_378 [1] : vector<8x64xf32> to vector<8xf32>
    %1152 = vector.shape_cast %1151 : vector<8xf32> to vector<8x1xf32>
    %cst_379 = arith.constant 1.000000e-30 : f32
    %1153 = vector.broadcast %cst_379 : f32 to vector<8x1xf32>
    %1154 = arith.maximumf %1152, %1153 : vector<8x1xf32>
    %1155 = math.rsqrt %1154 : vector<8x1xf32>
    %1156 = arith.mulf %1154, %1155 : vector<8x1xf32>
    %1157 = arith.truncf %1147 : vector<8x64xf32> to vector<8x64xbf16>
    %cst_380 = arith.constant dense<0.000000e+00> : vector<8x32xf32>
    %1158 = tpu.matmul %1157, %1148, %cst_380 {dimension_numbers = #tpu.dot_dimension_numbers<[1], [0], [0], [1], [0, 0, 1, 1], [], []>} : vector<8x64xbf16>, vector<64x32xbf16>, vector<8x32xf32> -> vector<8x32xf32>
    %1159 = arith.mulf %1158, %1158 : vector<8x32xf32>
    %cst_381 = arith.constant dense<0.000000e+00> : vector<8xf32>
    %1160 = vector.multi_reduction <add>, %1159, %cst_381 [1] : vector<8x32xf32> to vector<8xf32>
    %1161 = vector.shape_cast %1160 : vector<8xf32> to vector<8x1xf32>
    %cst_382 = arith.constant 1.000000e-30 : f32
    %1162 = vector.broadcast %cst_382 : f32 to vector<8x1xf32>
    %1163 = arith.maximumf %1161, %1162 : vector<8x1xf32>
    %1164 = math.rsqrt %1163 : vector<8x1xf32>
    %1165 = arith.mulf %1163, %1164 : vector<8x1xf32>
    %1166 = arith.mulf %1165, %1155 : vector<8x1xf32>
    %cst_383 = arith.constant 1.41421354 : f32
    %1167 = vector.broadcast %cst_383 : f32 to vector<8x1xf32>
    %1168 = arith.mulf %1167, %1156 : vector<8x1xf32>
    %cst_384 = arith.constant 2.41421366 : f32
    %1169 = vector.broadcast %cst_384 : f32 to vector<8x1xf32>
    %1170 = arith.cmpf ogt, %1168, %1169 : vector<8x1xf32>
    %cst_385 = arith.constant 0.414213568 : f32
    %1171 = vector.broadcast %cst_385 : f32 to vector<8x1xf32>
    %1172 = arith.cmpf ogt, %1168, %1171 : vector<8x1xf32>
    %cst_386 = arith.constant dense<true> : vector<8x1xi1>
    %1173 = arith.xori %1170, %cst_386 : vector<8x1xi1>
    %1174 = arith.andi %1172, %1173 : vector<8x1xi1>
    %cst_387 = arith.constant 1.000000e-15 : f32
    %1175 = vector.broadcast %cst_387 : f32 to vector<8x1xf32>
    %1176 = arith.maximumf %1168, %1175 : vector<8x1xf32>
    %cst_388 = arith.constant -1.000000e+00 : f32
    %1177 = vector.broadcast %cst_388 : f32 to vector<8x1xf32>
    %1178 = arith.divf %1177, %1176 : vector<8x1xf32>
    %cst_389 = arith.constant 1.000000e+00 : f32
    %1179 = vector.broadcast %cst_389 : f32 to vector<8x1xf32>
    %1180 = arith.subf %1168, %1179 : vector<8x1xf32>
    %cst_390 = arith.constant 1.000000e+00 : f32
    %1181 = vector.broadcast %cst_390 : f32 to vector<8x1xf32>
    %1182 = arith.addf %1168, %1181 : vector<8x1xf32>
    %1183 = arith.divf %1180, %1182 : vector<8x1xf32>
    %1184 = arith.select %1174, %1183, %1168 : vector<8x1xi1>, vector<8x1xf32>
    %1185 = arith.select %1170, %1178, %1184 : vector<8x1xi1>, vector<8x1xf32>
    %cst_391 = arith.constant 0.785398185 : f32
    %cst_392 = arith.constant 0.000000e+00 : f32
    %1186 = vector.broadcast %cst_391 : f32 to vector<8x1xf32>
    %1187 = vector.broadcast %cst_392 : f32 to vector<8x1xf32>
    %1188 = arith.select %1174, %1186, %1187 : vector<8x1xi1>, vector<8x1xf32>
    %cst_393 = arith.constant 1.57079637 : f32
    %1189 = vector.broadcast %cst_393 : f32 to vector<8x1xf32>
    %1190 = arith.select %1170, %1189, %1188 : vector<8x1xi1>, vector<8x1xf32>
    %1191 = arith.mulf %1185, %1185 : vector<8x1xf32>
    %cst_394 = arith.constant 0.0805374458 : f32
    %1192 = vector.broadcast %cst_394 : f32 to vector<8x1xf32>
    %1193 = arith.mulf %1192, %1191 : vector<8x1xf32>
    %cst_395 = arith.constant 0.138776854 : f32
    %1194 = vector.broadcast %cst_395 : f32 to vector<8x1xf32>
    %1195 = arith.subf %1193, %1194 : vector<8x1xf32>
    %1196 = arith.mulf %1195, %1191 : vector<8x1xf32>
    %cst_396 = arith.constant 0.199777111 : f32
    %1197 = vector.broadcast %cst_396 : f32 to vector<8x1xf32>
    %1198 = arith.addf %1196, %1197 : vector<8x1xf32>
    %1199 = arith.mulf %1198, %1191 : vector<8x1xf32>
    %cst_397 = arith.constant 0.333329499 : f32
    %1200 = vector.broadcast %cst_397 : f32 to vector<8x1xf32>
    %1201 = arith.subf %1199, %1200 : vector<8x1xf32>
    %1202 = arith.mulf %1201, %1191 : vector<8x1xf32>
    %1203 = arith.mulf %1202, %1185 : vector<8x1xf32>
    %1204 = arith.addf %1203, %1185 : vector<8x1xf32>
    %1205 = arith.addf %1190, %1204 : vector<8x1xf32>
    %cst_398 = arith.constant 0.707106769 : f32
    %1206 = vector.broadcast %cst_398 : f32 to vector<8x1xf32>
    %1207 = arith.mulf %1205, %1206 : vector<8x1xf32>
    %1208 = arith.mulf %1166, %1207 : vector<8x1xf32>
    %cst_399 = arith.constant 1.41421354 : f32
    %1209 = vector.broadcast %cst_399 : f32 to vector<8x1xf32>
    %1210 = arith.mulf %1209, %1208 : vector<8x1xf32>
    %cst_400 = arith.constant 1.27323949 : f32
    %1211 = vector.broadcast %cst_400 : f32 to vector<8x1xf32>
    %1212 = arith.mulf %1210, %1211 : vector<8x1xf32>
    %1213 = math.floor %1212 : vector<8x1xf32>
    %cst_401 = arith.constant 5.000000e-01 : f32
    %1214 = vector.broadcast %cst_401 : f32 to vector<8x1xf32>
    %1215 = arith.mulf %1213, %1214 : vector<8x1xf32>
    %1216 = math.floor %1215 : vector<8x1xf32>
    %cst_402 = arith.constant 2.000000e+00 : f32
    %1217 = vector.broadcast %cst_402 : f32 to vector<8x1xf32>
    %1218 = arith.mulf %1217, %1216 : vector<8x1xf32>
    %1219 = arith.subf %1213, %1218 : vector<8x1xf32>
    %1220 = arith.addf %1213, %1219 : vector<8x1xf32>
    %cst_403 = arith.constant 0.78515625 : f32
    %1221 = vector.broadcast %cst_403 : f32 to vector<8x1xf32>
    %1222 = arith.mulf %1220, %1221 : vector<8x1xf32>
    %1223 = arith.subf %1210, %1222 : vector<8x1xf32>
    %cst_404 = arith.constant 2.41875648E-4 : f32
    %1224 = vector.broadcast %cst_404 : f32 to vector<8x1xf32>
    %1225 = arith.mulf %1220, %1224 : vector<8x1xf32>
    %1226 = arith.subf %1223, %1225 : vector<8x1xf32>
    %cst_405 = arith.constant 3.77489506E-8 : f32
    %1227 = vector.broadcast %cst_405 : f32 to vector<8x1xf32>
    %1228 = arith.mulf %1220, %1227 : vector<8x1xf32>
    %1229 = arith.subf %1226, %1228 : vector<8x1xf32>
    %1230 = arith.mulf %1229, %1229 : vector<8x1xf32>
    %cst_406 = arith.constant 0.00938540231 : f32
    %1231 = vector.broadcast %cst_406 : f32 to vector<8x1xf32>
    %1232 = arith.mulf %1231, %1230 : vector<8x1xf32>
    %cst_407 = arith.constant 0.00311992224 : f32
    %1233 = vector.broadcast %cst_407 : f32 to vector<8x1xf32>
    %1234 = arith.addf %1232, %1233 : vector<8x1xf32>
    %1235 = arith.mulf %1234, %1230 : vector<8x1xf32>
    %cst_408 = arith.constant 0.0244301353 : f32
    %1236 = vector.broadcast %cst_408 : f32 to vector<8x1xf32>
    %1237 = arith.addf %1235, %1236 : vector<8x1xf32>
    %1238 = arith.mulf %1237, %1230 : vector<8x1xf32>
    %cst_409 = arith.constant 0.0534112789 : f32
    %1239 = vector.broadcast %cst_409 : f32 to vector<8x1xf32>
    %1240 = arith.addf %1238, %1239 : vector<8x1xf32>
    %1241 = arith.mulf %1240, %1230 : vector<8x1xf32>
    %cst_410 = arith.constant 1.333880e-01 : f32
    %1242 = vector.broadcast %cst_410 : f32 to vector<8x1xf32>
    %1243 = arith.addf %1241, %1242 : vector<8x1xf32>
    %1244 = arith.mulf %1243, %1230 : vector<8x1xf32>
    %cst_411 = arith.constant 0.333331555 : f32
    %1245 = vector.broadcast %cst_411 : f32 to vector<8x1xf32>
    %1246 = arith.addf %1244, %1245 : vector<8x1xf32>
    %1247 = arith.mulf %1246, %1230 : vector<8x1xf32>
    %1248 = arith.mulf %1247, %1229 : vector<8x1xf32>
    %1249 = arith.addf %1248, %1229 : vector<8x1xf32>
    %cst_412 = arith.constant 5.000000e-01 : f32
    %1250 = vector.broadcast %cst_412 : f32 to vector<8x1xf32>
    %1251 = arith.mulf %1220, %1250 : vector<8x1xf32>
    %cst_413 = arith.constant 2.500000e-01 : f32
    %1252 = vector.broadcast %cst_413 : f32 to vector<8x1xf32>
    %1253 = arith.mulf %1220, %1252 : vector<8x1xf32>
    %1254 = math.floor %1253 : vector<8x1xf32>
    %cst_414 = arith.constant 2.000000e+00 : f32
    %1255 = vector.broadcast %cst_414 : f32 to vector<8x1xf32>
    %1256 = arith.mulf %1255, %1254 : vector<8x1xf32>
    %1257 = arith.subf %1251, %1256 : vector<8x1xf32>
    %1258 = math.absf %1249 : vector<8x1xf32>
    %cst_415 = arith.constant 1.000000e-30 : f32
    %1259 = vector.broadcast %cst_415 : f32 to vector<8x1xf32>
    %1260 = arith.cmpf olt, %1258, %1259 : vector<8x1xf32>
    %cst_416 = arith.constant 1.000000e-30 : f32
    %1261 = vector.broadcast %cst_416 : f32 to vector<8x1xf32>
    %1262 = arith.select %1260, %1261, %1249 : vector<8x1xi1>, vector<8x1xf32>
    %cst_417 = arith.constant 5.000000e-01 : f32
    %1263 = vector.broadcast %cst_417 : f32 to vector<8x1xf32>
    %1264 = arith.cmpf ogt, %1257, %1263 : vector<8x1xf32>
    %cst_418 = arith.constant -1.000000e+00 : f32
    %1265 = vector.broadcast %cst_418 : f32 to vector<8x1xf32>
    %1266 = arith.divf %1265, %1262 : vector<8x1xf32>
    %1267 = arith.select %1264, %1266, %1249 : vector<8x1xi1>, vector<8x1xf32>
    %cst_419 = arith.constant 0.707106769 : f32
    %1268 = vector.broadcast %cst_419 : f32 to vector<8x1xf32>
    %1269 = arith.mulf %1267, %1268 : vector<8x1xf32>
    %1270 = vector.broadcast %1164 : vector<8x1xf32> to vector<8x32xf32>
    %1271 = arith.mulf %1158, %1270 : vector<8x32xf32>
    %1272 = vector.broadcast %1269 : vector<8x1xf32> to vector<8x32xf32>
    %1273 = arith.mulf %1272, %1271 : vector<8x32xf32>
    %cst_420 = arith.constant 0.000000e+00 : f32
    %1274 = vector.broadcast %cst_420 : f32 to vector<8x1xf32>
    %1275 = arith.cmpf ole, %1161, %1274 : vector<8x1xf32>
    %cst_421 = arith.constant 0.000000e+00 : f32
    %1276 = vector.shape_cast %1275 : vector<8x1xi1> to vector<8x1xi1>
    %1277 = vector.broadcast %1276 : vector<8x1xi1> to vector<8x32xi1>
    %1278 = vector.broadcast %cst_421 : f32 to vector<8x32xf32>
    %1279 = arith.select %1277, %1278, %1273 : vector<8x32xi1>, vector<8x32xf32>
    %1280 = arith.mulf %1269, %1269 : vector<8x1xf32>
    %cst_422 = arith.constant 0.000000e+00 : f32
    %1281 = vector.broadcast %cst_422 : f32 to vector<8x1xf32>
    %1282 = arith.select %1275, %1281, %1280 : vector<8x1xi1>, vector<8x1xf32>
    %1283 = arith.mulf %1149, %1149 : vector<1x32xf32>
    %cst_423 = arith.constant dense<0.000000e+00> : vector<1xf32>
    %1284 = vector.multi_reduction <add>, %1283, %cst_423 [1] : vector<1x32xf32> to vector<1xf32>
    %1285 = vector.shape_cast %1284 : vector<1xf32> to vector<1x1xf32>
    %1286 = vector.broadcast %1149 : vector<1x32xf32> to vector<8x32xf32>
    %1287 = arith.mulf %1279, %1286 : vector<8x32xf32>
    %cst_424 = arith.constant dense<0.000000e+00> : vector<8xf32>
    %1288 = vector.multi_reduction <add>, %1287, %cst_424 [1] : vector<8x32xf32> to vector<8xf32>
    %1289 = vector.shape_cast %1288 : vector<8xf32> to vector<8x1xf32>
    %cst_425 = arith.constant 4.000000e+00 : f32
    %1290 = vector.broadcast %cst_425 : f32 to vector<8x1xf32>
    %1291 = arith.mulf %1290, %1289 : vector<8x1xf32>
    %cst_426 = arith.constant 1.000000e+00 : f32
    %1292 = vector.broadcast %cst_426 : f32 to vector<8x1xf32>
    %1293 = arith.subf %1292, %1291 : vector<8x1xf32>
    %cst_427 = arith.constant 2.000000e+00 : f32
    %1294 = vector.broadcast %cst_427 : f32 to vector<1x1xf32>
    %1295 = arith.mulf %1294, %1285 : vector<1x1xf32>
    %1296 = vector.broadcast %1295 : vector<1x1xf32> to vector<8x1xf32>
    %1297 = arith.subf %1293, %1296 : vector<8x1xf32>
    %1298 = vector.broadcast %1297 : vector<8x1xf32> to vector<8x32xf32>
    %1299 = arith.mulf %1298, %1279 : vector<8x32xf32>
    %cst_428 = arith.constant 2.000000e+00 : f32
    %1300 = vector.broadcast %cst_428 : f32 to vector<8x1xf32>
    %1301 = arith.mulf %1300, %1282 : vector<8x1xf32>
    %cst_429 = arith.constant 1.000000e+00 : f32
    %1302 = vector.broadcast %cst_429 : f32 to vector<8x1xf32>
    %1303 = arith.addf %1302, %1301 : vector<8x1xf32>
    %1304 = vector.broadcast %1303 : vector<8x1xf32> to vector<8x32xf32>
    %1305 = vector.broadcast %1149 : vector<1x32xf32> to vector<8x32xf32>
    %1306 = arith.mulf %1304, %1305 : vector<8x32xf32>
    %1307 = arith.addf %1299, %1306 : vector<8x32xf32>
    %cst_430 = arith.constant 4.000000e+00 : f32
    %1308 = vector.broadcast %cst_430 : f32 to vector<8x1xf32>
    %1309 = arith.mulf %1308, %1289 : vector<8x1xf32>
    %cst_431 = arith.constant 1.000000e+00 : f32
    %1310 = vector.broadcast %cst_431 : f32 to vector<8x1xf32>
    %1311 = arith.subf %1310, %1309 : vector<8x1xf32>
    %cst_432 = arith.constant 4.000000e+00 : f32
    %1312 = vector.broadcast %cst_432 : f32 to vector<8x1xf32>
    %1313 = arith.mulf %1312, %1282 : vector<8x1xf32>
    %1314 = vector.broadcast %1285 : vector<1x1xf32> to vector<8x1xf32>
    %1315 = arith.mulf %1313, %1314 : vector<8x1xf32>
    %1316 = arith.addf %1311, %1315 : vector<8x1xf32>
    %cst_433 = arith.constant 1.000000e-15 : f32
    %1317 = vector.broadcast %cst_433 : f32 to vector<8x1xf32>
    %1318 = arith.maximumf %1316, %1317 : vector<8x1xf32>
    %1319 = vector.broadcast %1318 : vector<8x1xf32> to vector<8x32xf32>
    %1320 = arith.divf %1307, %1319 : vector<8x32xf32>
    %cst_434 = arith.constant 0.000000e+00 : f32
    %1321 = vector.broadcast %cst_434 : f32 to vector<8x32xf32>
    %1322 = arith.maximumf %1320, %1321 : vector<8x32xf32>
    %1323 = arith.mulf %1322, %1322 : vector<8x32xf32>
    %cst_435 = arith.constant dense<0.000000e+00> : vector<8xf32>
    %1324 = vector.multi_reduction <add>, %1323, %cst_435 [1] : vector<8x32xf32> to vector<8xf32>
    %1325 = vector.shape_cast %1324 : vector<8xf32> to vector<8x1xf32>
    %cst_436 = arith.constant 1.000000e-30 : f32
    %1326 = vector.broadcast %cst_436 : f32 to vector<8x1xf32>
    %1327 = arith.maximumf %1325, %1326 : vector<8x1xf32>
    %1328 = math.rsqrt %1327 : vector<8x1xf32>
    %1329 = arith.mulf %1327, %1328 : vector<8x1xf32>
    %cst_437 = arith.constant 1.41421354 : f32
    %1330 = vector.broadcast %cst_437 : f32 to vector<8x1xf32>
    %1331 = arith.mulf %1330, %1329 : vector<8x1xf32>
    %cst_438 = arith.constant 2.41421366 : f32
    %1332 = vector.broadcast %cst_438 : f32 to vector<8x1xf32>
    %1333 = arith.cmpf ogt, %1331, %1332 : vector<8x1xf32>
    %cst_439 = arith.constant 0.414213568 : f32
    %1334 = vector.broadcast %cst_439 : f32 to vector<8x1xf32>
    %1335 = arith.cmpf ogt, %1331, %1334 : vector<8x1xf32>
    %cst_440 = arith.constant dense<true> : vector<8x1xi1>
    %1336 = arith.xori %1333, %cst_440 : vector<8x1xi1>
    %1337 = arith.andi %1335, %1336 : vector<8x1xi1>
    %cst_441 = arith.constant 1.000000e-15 : f32
    %1338 = vector.broadcast %cst_441 : f32 to vector<8x1xf32>
    %1339 = arith.maximumf %1331, %1338 : vector<8x1xf32>
    %cst_442 = arith.constant -1.000000e+00 : f32
    %1340 = vector.broadcast %cst_442 : f32 to vector<8x1xf32>
    %1341 = arith.divf %1340, %1339 : vector<8x1xf32>
    %cst_443 = arith.constant 1.000000e+00 : f32
    %1342 = vector.broadcast %cst_443 : f32 to vector<8x1xf32>
    %1343 = arith.subf %1331, %1342 : vector<8x1xf32>
    %cst_444 = arith.constant 1.000000e+00 : f32
    %1344 = vector.broadcast %cst_444 : f32 to vector<8x1xf32>
    %1345 = arith.addf %1331, %1344 : vector<8x1xf32>
    %1346 = arith.divf %1343, %1345 : vector<8x1xf32>
    %1347 = arith.select %1337, %1346, %1331 : vector<8x1xi1>, vector<8x1xf32>
    %1348 = arith.select %1333, %1341, %1347 : vector<8x1xi1>, vector<8x1xf32>
    %cst_445 = arith.constant 0.785398185 : f32
    %cst_446 = arith.constant 0.000000e+00 : f32
    %1349 = vector.broadcast %cst_445 : f32 to vector<8x1xf32>
    %1350 = vector.broadcast %cst_446 : f32 to vector<8x1xf32>
    %1351 = arith.select %1337, %1349, %1350 : vector<8x1xi1>, vector<8x1xf32>
    %cst_447 = arith.constant 1.57079637 : f32
    %1352 = vector.broadcast %cst_447 : f32 to vector<8x1xf32>
    %1353 = arith.select %1333, %1352, %1351 : vector<8x1xi1>, vector<8x1xf32>
    %1354 = arith.mulf %1348, %1348 : vector<8x1xf32>
    %cst_448 = arith.constant 0.0805374458 : f32
    %1355 = vector.broadcast %cst_448 : f32 to vector<8x1xf32>
    %1356 = arith.mulf %1355, %1354 : vector<8x1xf32>
    %cst_449 = arith.constant 0.138776854 : f32
    %1357 = vector.broadcast %cst_449 : f32 to vector<8x1xf32>
    %1358 = arith.subf %1356, %1357 : vector<8x1xf32>
    %1359 = arith.mulf %1358, %1354 : vector<8x1xf32>
    %cst_450 = arith.constant 0.199777111 : f32
    %1360 = vector.broadcast %cst_450 : f32 to vector<8x1xf32>
    %1361 = arith.addf %1359, %1360 : vector<8x1xf32>
    %1362 = arith.mulf %1361, %1354 : vector<8x1xf32>
    %cst_451 = arith.constant 0.333329499 : f32
    %1363 = vector.broadcast %cst_451 : f32 to vector<8x1xf32>
    %1364 = arith.subf %1362, %1363 : vector<8x1xf32>
    %1365 = arith.mulf %1364, %1354 : vector<8x1xf32>
    %1366 = arith.mulf %1365, %1348 : vector<8x1xf32>
    %1367 = arith.addf %1366, %1348 : vector<8x1xf32>
    %1368 = arith.addf %1353, %1367 : vector<8x1xf32>
    %cst_452 = arith.constant 0.707106769 : f32
    %1369 = vector.broadcast %cst_452 : f32 to vector<8x1xf32>
    %1370 = arith.mulf %1368, %1369 : vector<8x1xf32>
    %1371 = vector.broadcast %1328 : vector<8x1xf32> to vector<8x32xf32>
    %1372 = arith.mulf %1322, %1371 : vector<8x32xf32>
    %1373 = vector.broadcast %1370 : vector<8x1xf32> to vector<8x32xf32>
    %1374 = arith.mulf %1373, %1372 : vector<8x32xf32>
    %c704 = arith.constant 704 : index
    %c0_453 = arith.constant 0 : index
    %1375 = vector.load %arg3[%c704, %c0_453] : memref<768x128xbf16, #tpu.memory_space<vmem>>, vector<32x128xbf16>
    %1376 = arith.truncf %1033 : vector<8x32xf32> to vector<8x32xbf16>
    %cst_454 = arith.constant dense<0.000000e+00> : vector<8x128xf32>
    %1377 = tpu.matmul %1376, %1375, %cst_454 {dimension_numbers = #tpu.dot_dimension_numbers<[1], [0], [0], [1], [0, 0, 1, 1], [], []>} : vector<8x32xbf16>, vector<32x128xbf16>, vector<8x128xf32> -> vector<8x128xf32>
    %c736 = arith.constant 736 : index
    %c0_455 = arith.constant 0 : index
    %1378 = vector.load %arg3[%c736, %c0_455] : memref<768x128xbf16, #tpu.memory_space<vmem>>, vector<32x128xbf16>
    %1379 = arith.truncf %1374 : vector<8x32xf32> to vector<8x32xbf16>
    %cst_456 = arith.constant dense<0.000000e+00> : vector<8x128xf32>
    %1380 = tpu.matmul %1379, %1378, %cst_456 {dimension_numbers = #tpu.dot_dimension_numbers<[1], [0], [0], [1], [0, 0, 1, 1], [], []>} : vector<8x32xbf16>, vector<32x128xbf16>, vector<8x128xf32> -> vector<8x128xf32>
    %1381 = arith.addf %1377, %1380 : vector<8x128xf32>
    %c104 = arith.constant 104 : index
    %c0_457 = arith.constant 0 : index
    %1382 = vector.load %arg4[%c104, %c0_457] : memref<112x128xf32, #tpu.memory_space<vmem>>, vector<1x128xf32>
    %1383 = vector.broadcast %1382 : vector<1x128xf32> to vector<8x128xf32>
    %1384 = arith.addf %1381, %1383 : vector<8x128xf32>
    %cst_458 = arith.constant dense<0xFF800000> : vector<8xf32>
    %1385 = vector.multi_reduction <maximumf>, %1384, %cst_458 [1] : vector<8x128xf32> to vector<8xf32>
    %1386 = vector.shape_cast %1385 : vector<8xf32> to vector<8x1xf32>
    %1387 = vector.broadcast %1386 : vector<8x1xf32> to vector<8x128xf32>
    %1388 = arith.subf %1384, %1387 : vector<8x128xf32>
    %1389 = math.exp %1388 : vector<8x128xf32>
    %cst_459 = arith.constant dense<0.000000e+00> : vector<8xf32>
    %1390 = vector.multi_reduction <add>, %1389, %cst_459 [1] : vector<8x128xf32> to vector<8xf32>
    %1391 = vector.shape_cast %1390 : vector<8xf32> to vector<8x1xf32>
    %1392 = vector.broadcast %1391 : vector<8x1xf32> to vector<8x128xf32>
    %1393 = arith.divf %1389, %1392 : vector<8x128xf32>
    %c0_460 = arith.constant 0 : index
    %c0_461 = arith.constant 0 : index
    %1394 = vector.load %arg5[%c0_460, %c0_461] : memref<8x128xf32, #tpu.memory_space<vmem>>, vector<8x128xf32>
    tpu.vector_store %arg5[%c0_460, %c0_461], %1393 {strides = array<i32>} : memref<8x128xf32, #tpu.memory_space<vmem>>, vector<8x128xf32>,
    return
  }
  func.func @transform_0(%arg0: i32) -> (i32, i32) {
    %c0_i32 = arith.constant 0 : i32
    %c0_i32_0 = arith.constant 0 : i32
    return %arg0, %c0_i32 : i32, i32
  }
  func.func @transform_1(%arg0: i32) -> (i32, i32) {
    %c0_i32 = arith.constant 0 : i32
    %c0_i32_0 = arith.constant 0 : i32
    return %arg0, %c0_i32 : i32, i32
  }
  func.func @transform_2(%arg0: i32) -> (i32, i32) {
    %c0_i32 = arith.constant 0 : i32
    %c0_i32_0 = arith.constant 0 : i32
    %c0_i32_1 = arith.constant 0 : i32
    return %c0_i32, %c0_i32_0 : i32, i32
  }
  func.func @transform_3(%arg0: i32) -> (i32, i32) {
    %c0_i32 = arith.constant 0 : i32
    %c0_i32_0 = arith.constant 0 : i32
    %c0_i32_1 = arith.constant 0 : i32
    return %c0_i32, %c0_i32_0 : i32, i32
  }
  func.func @transform_4(%arg0: i32) -> (i32, i32) {
    %c0_i32 = arith.constant 0 : i32
    %c0_i32_0 = arith.constant 0 : i32
    return %arg0, %c0_i32 : i32, i32
  }
}

</mosaic_0001>

<bundles_post_ra>
// kernel: tpu_custom_call.1
= control target key start
LH: loop header
LB: loop body
LE: loop exit
PB: predicated region body
PF: predicated region fallthrough
CT: control target
= control target key end

     0   :  { %9 = vsyncpa [#allocation3], 0  ;;  %s3237_s0 = inlined_call_operand.hbm [shape: bf16[8,256], index: 0, kind: input, shape index: {}]   ;;  %s3238_s1 = inlined_call_operand.hbm [shape: f32[8,16], index: 1, kind: input, shape index: {}]   ;;  %s3239_s2 = inlined_call_operand.hbm [shape: bf16[768,128], index: 2, kind: input, shape index: {}]   ;;  %s3240_s3 = inlined_call_operand.hbm [shape: f32[112,128], index: 3, kind: input, shape index: {}]   ;;  %s3241_s4 = inlined_call_operand.hbm [shape: f32[8,128], index: 4, kind: output, shape index: {}]  }
   0x1   :  { %10 = vsyncpa [#allocation6], 0 }
   0x2   :  { %11 = vsyncpa [#allocation9], 0  ;;  %s29_s17 = sshll.u32 %s3238_s1, 4  ;;  %s30_s17 = int_to_ptr.hbm [resolvable:$true] %s29_s17 }
   0x3   :  { %12 = vsyncpa [#allocation4], 0  ;;  %s2818_s18 = smov [#allocation5]   ;;  %s18_s22 = sshll.u32 %s3237_s0, 4  ;;  %s19_s22 = int_to_ptr.hbm [resolvable:$true] %s18_s22 }
   0x4   :  { %s31_s19 = sshll.u32 %s2818_s18, 4  ;;  %s2819_s23 = smov [#allocation2]   ;;  %s32_s19 = int_to_ptr.vmem [resolvable:$true] %s31_s19 }
   0x5   :  { %34 = dma.hbm_to_vmem [thread:$0]  %s30_s17, 128, %s32_s19, [#allocation6]  }
   0x6   :  { %s20_s24 = sshll.u32 %s2819_s23, 4  ;;  %s39_s27 = sshll.u32 %s3239_s2, 4  ;;  %s21_s24 = int_to_ptr.vmem [resolvable:$true] %s20_s24  ;;  %s40_s27 = int_to_ptr.hbm [resolvable:$true] %s39_s27 }
   0x7   :  { %23 = dma.hbm_to_vmem [thread:$0]  %s19_s22, 128, %s21_s24, [#allocation3]  }
   0x8   :  { %s2820_s1 = smov [#allocation7]   ;;  %s52_s5 = sshll.u32 %s3240_s3, 4  ;;  %s53_s5 = int_to_ptr.hbm [resolvable:$true] %s52_s5 }
   0x9   :  { %s41_s28 = sshll.u32 %s2820_s1, 4  ;;  %s2821_s6 = smov 64   ;;  %s42_s28 = int_to_ptr.vmem [resolvable:$true] %s41_s28 }
   0xa   :  { %s2822_s0 = smov 4   ;;  %s2823_s7 = smov [#allocation8]  }
   0xb   :  { %47 = dma.hbm_to_vmem [thread:$0]  %s40_s27, 6144, %s42_s28, [#allocation6], %s2821_s6, %s2821_s6, %s2822_s0  }
   0xc   :  { %s54_s8 = sshll.u32 %s2823_s7, 4  ;;  %s2824_s9 = smov 128   ;;  %s55_s8 = int_to_ptr.vmem [resolvable:$true] %s54_s8 }
   0xd   :  { %s2825_s10 = smov 8  }
   0xe   :  { %60 = dma.hbm_to_vmem [thread:$0]  %s53_s5, 1792, %s55_s8, [#allocation9], %s2824_s9, %s2824_s9, %s2825_s10  }
   0xf   :  { %2810 = dma.done.wait [#allocation3], 128  }
  0x10   :  { %2811 = vsyncadd [#allocation3], 4294967168 }
  0x11   :  { %2812 = dma.done.wait [#allocation6], 6272  }
  0x12   :  { %2813 = vsyncadd [#allocation6], 4294961024 }
  0x13   :  { %2814 = dma.done.wait [#allocation9], 1792  }
  0x14   :  { %2815 = vsyncadd [#allocation9], 4294965504  ;;  %v2474_v0 = vld [vmem:[#allocation7 + $0x38] sm:$0xff]  ;;  %v2473_v2 = vld [vmem:[#allocation7 + $0x30] sm:$0xff]  ;;  %vm80_vm0 = vcmask 130048   ;;  %vm252_vm1 = vcmask 261120  }
  0x15   :  { %v2482_v1 = vld [vmem:[#allocation7 + $0x78] sm:$0xff]  ;;  %221 = vmatpush.bf16.msra.mxu0 %v2474_v0  ;;  %v2481_v3 = vld [vmem:[#allocation7 + $0x70] sm:$0xff]  ;;  %v2472_v4 = vld [vmem:[#allocation7 + $0x28] sm:$0xff]  ;;  %vm402_vm9 = vcmask 516096   ;;  %vm342_vm10 = vcmask 523264   ;;  %s2829_s2 = smov [#allocation10]  }
  0x16   :  { %234 = vmatpush.bf16.msra.mxu1 %v2482_v1  ;;  %v79_v5 = vld [vmem:[#allocation5] sm:$0xff]  ;;  %v2480_v6 = vld [vmem:[#allocation7 + $0x68] sm:$0xff]  ;;  %v2471_v8 = vld [vmem:[#allocation7 + $0x20] sm:$0xff]  ;;  %s2227_s3 = sshll.u32 %s2829_s2, 4  ;;  %s2229_s13 = sshll.u32 %s3241_s4, 4  ;;  %s2228_s3 = int_to_ptr.vmem [resolvable:$true] %s2227_s3  ;;  %s2230_s13 = int_to_ptr.hbm [resolvable:$true] %s2229_s13 }
  0x17   :  { %v81_v7 = vsel %vm80_vm0, %v79_v5, 0.0  ;;  %v2479_v9 = vld [vmem:[#allocation7 + $0x60] sm:$0xff]  ;;  %v2470_v10 = vld [vmem:[#allocation7 + $0x18] sm:$0xff]  ;;  %v2469_v12 = vld [vmem:[#allocation7 + $0x10] sm:$0xff] }
  0x18   :  { %82 = vadd.xlane.f32.xlu0 %v81_v7  ;;  %v2478_v11 = vld [vmem:[#allocation7 + $0x58] sm:$0xff]  ;;  %v2477_v13 = vld [vmem:[#allocation7 + $0x50] sm:$0xff]  ;;  %v2468_v14 = vld [vmem:[#allocation7 + $0x8] sm:$0xff] }
  0x19   :  { %222 = vmatpush.bf16.msra.mxu0 %v2473_v2  ;;  %v2476_v15 = vld [vmem:[#allocation7 + $0x48] sm:$0xff]  ;;  %v78_v16 = vld [vmem:[#allocation2] sm:$0xff]  ;;  %v2467_v19 = vld [vmem:[#allocation7] sm:$0xff] }
  0x1a   :  { %235 = vmatpush.bf16.msra.mxu1 %v2481_v3  ;;  %v119_v17 = vunpack.c.l.b16 %v78_v16  ;;  %v120_v18 = vunpack.c.h.b16 %v78_v16  ;;  %v2475_v20 = vld [vmem:[#allocation7 + $0x40] sm:$0xff]  ;;  %v2484_v40 = vld [vmem:[#allocation7 + $0x88] sm:$0xff] }
  0x1b   :  { %v2530_v29 = vld [vmem:[#allocation8] ss:$0 sm:$0xff]  ;;  %334 = vmatpush.bf16.msra.mxu2 %v2484_v40 }
  0x1c   :  { %v121_v21 = vpack.c.b16 %v119_v17, %v119_v17  ;;  %v122_v22 = vpack.c.b16 %v120_v18, %v120_v18  ;;  %v2483_v42 = vld [vmem:[#allocation7 + $0x80] sm:$0xff] }
  0x1d   :  { %223 = vmatpush.bf16.msra.mxu0 %v2472_v4  ;;  %v295_v4 = vld [vmem:[#allocation8 + $0x8] sm:$0x1] }
  0x1e   :  { %236 = vmatpush.bf16.msra.mxu1 %v2480_v6  ;;  %v401_v5 = vmul.f32 %v295_v4, %v295_v4 }
  0x1f   :  { %335 = vmatpush.bf16.msra.mxu2 %v2483_v42 }
  0x20   :  { %v403_v6 = vsel %vm402_vm9, %v401_v5, 0.0 }
  0x21   :  { %224 = vmatpush.bf16.msra.mxu0 %v2471_v8  ;;  %404 = vadd.xlane.f32.xlu2 %v403_v6 }
  0x22   :  { %237 = vmatpush.bf16.msra.mxu1 %v2479_v9 }
  0x25   :  { %225 = vmatpush.bf16.msra.mxu0 %v2470_v10 }
  0x26   :  { %238 = vmatpush.bf16.msra.mxu1 %v2478_v11 }
  0x29   :  { %226 = vmatpush.bf16.msra.mxu0 %v2469_v12 }
  0x2a   :  { %239 = vmatpush.bf16.msra.mxu1 %v2477_v13 }
  0x2d   :  { %227 = vmatpush.bf16.msra.mxu0 %v2468_v14 }
  0x2e   :  { %240 = vmatpush.bf16.msra.mxu1 %v2476_v15 }
  0x31   :  { %228 = vmatpush.bf16.msra.mxu0 %v2467_v19 }
  0x32   :  { %241 = vmatpush.bf16.msra.mxu1 %v2475_v20 }
  0x34   :  { %229 = vmatmul.bf16.vlgmr.msra.gmra.mxu0 %v121_v21 }
  0x35   :  { %242 = vmatmul.bf16.vlgmr.msra.gmra.mxu1 %v122_v22 }
  0x8b   :  { %v83_v23 = vpop.xlane.xlu0 %82 }
  0x8c   :  { %v84_v24 = vmax.f32 %v83_v23, 1.0 }
  0x8e   :  { %2544 = vrcp.f32 %v84_v24 }
  0x94   :  { %v2545_v25 = vpop.eup %2544 }
  0xb1   :  { %v230_v26 = vpop.f32.mrf.mxu0 }
  0xb2   :  { %v243_v27 = vpop.f32.mrf.mxu1 }
  0xb3   :  { %v244_v28 = vadd.f32 %v243_v27, %v230_v26 }
  0xb5   :  { %v247_v30 = vmul.f32 %v2545_v25, %v244_v28 }
  0xb7   :  { %v250_v31 = vadd.f32 %v2530_v29, %v247_v30 }
  0xb9   :  { %v251_v32 = vmul.f32 %v250_v31, %v250_v31  ;;  %v232_v33 = vpop.f32.mrf.mxu0 }
  0xba   :  { %v245_v34 = vpop.f32.mrf.mxu1 }
  0xbb   :  { %v253_v35 = vsel %vm252_vm1, %v251_v32, 0.0 }
  0xbc   :  { %254 = vadd.xlane.f32.xlu0 %v253_v35 }
 0x12f   :  { %v255_v36 = vpop.xlane.xlu0 %254 }
 0x130   :  { %v256_v37 = vmax.f32 %v255_v36, 1e-30 }
 0x132   :  { %2546 = vrsqrt.f32 %v256_v37  ;;  %vm263_vm3 = vweird.f32 %v256_v37 }
 0x138   :  { %v2547_v38 = vpop.eup %2546 }
 0x139   :  { %v258_v39 = vmul.f32 %v2547_v38, %v256_v37  ;;  %vm264_vm2 = vweird.f32 %v2547_v38 }
 0x13a   :  { %vm265_vm4 = vmor %vm263_vm3, %vm264_vm2 }
 0x13b   :  { %v259_v41 = vmul.f32 %v2547_v38, %v258_v39 }
 0x13d   :  { %v260_v43 = vmul.f32 0.5, %v259_v41 }
 0x13f   :  { %v261_v44 = vsub.f32 1.5, %v260_v43 }
 0x141   :  { %v262_v45 = vmul.f32 %v2547_v38, %v261_v44 }
 0x143   :  { %v266_v46 = vsel %vm265_vm4, %v2547_v38, %v262_v45 }
 0x144   :  { %v267_v47 = vmul.f32 %v266_v46, %v256_v37  ;;  %v2868_v59 = vmul.f32 %v266_v46, %v250_v31 }
 0x146   :  { %v268_v48 = vmul.f32 1.4142135, %v267_v47 }
 0x148   :  { %2548 = vtanh.f32 %v268_v48  ;;  %v730_v11 = vmul.f32 1.2732395, %v268_v48 }
 0x14a   :  { %v731_v12 = vfloor.f32 %v730_v11 }
 0x14c   :  { %v732_v13 = vmul.f32 0.5, %v731_v12 }
 0x14e   :  { %v2549_v49 = vpop.eup %2548  ;;  %v733_v14 = vfloor.f32 %v732_v13 }
 0x14f   :  { %v270_v50 = vmul.f32 0.70710677, %v2549_v49 }
 0x150   :  { %v734_v15 = vmul.f32 2.0, %v733_v14 }
 0x151   :  { %v273_v51 = vmul.f32 %v270_v50, %v270_v50  ;;  %v272_v61 = vmul.f32 %v2868_v59, %v270_v50 }
 0x152   :  { %v735_v16 = vsub.f32 %v731_v12, %v734_v15 }
 0x153   :  { %v274_v52 = vmax.f32 %v273_v51, 1e-30 }
 0x154   :  { %v2879_v17 = vadd.f32 %v735_v16, %v731_v12 }
 0x155   :  { %2550 = vrsqrt.f32 %v274_v52  ;;  %vm281_vm6 = vweird.f32 %v274_v52  ;;  %vm285_vm8 = vcmp.gt.f32.partialorder %v274_v52, 0.496008 }
 0x156   :  { %v737_v18 = vmul.f32 0.78515625, %v2879_v17  ;;  %v739_v22 = vmul.f32 0.00024187565, %v2879_v17  ;;  %v741_v24 = vmul.f32 3.774895e-08, %v2879_v17 }
 0x158   :  { %v738_v20 = vsub.f32 %v268_v48, %v737_v18 }
 0x15a   :  { %v740_v23 = vsub.f32 %v738_v20, %v739_v22 }
 0x15b   :  { %v2551_v53 = vpop.eup %2550 }
 0x15c   :  { %v276_v54 = vmul.f32 %v2551_v53, %v274_v52  ;;  %vm282_vm5 = vweird.f32 %v2551_v53  ;;  %v742_v25 = vsub.f32 %v740_v23, %v741_v24  ;;  %v758_v23 = vmul.f32 0.25, %v2879_v17  ;;  %v2531_v24 = vld [vmem:[#allocation8 + $0x8] ss:$0 sm:$0xff] }
 0x15d   :  { %vm283_vm7 = vmor %vm281_vm6, %vm282_vm5 }
 0x15e   :  { %v277_v55 = vmul.f32 %v2551_v53, %v276_v54  ;;  %v743_v27 = vmul.f32 %v742_v25, %v742_v25 }
 0x160   :  { %v278_v56 = vmul.f32 0.5, %v277_v55  ;;  %v744_v29 = vmul.f32 0.009385402, %v743_v27 }
 0x162   :  { %v279_v57 = vsub.f32 1.5, %v278_v56  ;;  %v745_v31 = vadd.f32 0.0031199222, %v744_v29 }
 0x164   :  { %v280_v58 = vmul.f32 %v2551_v53, %v279_v57  ;;  %v746_v33 = vmul.f32 %v745_v31, %v743_v27 }
 0x166   :  { %v284_v60 = vsel %vm283_vm7, %v2551_v53, %v280_v58  ;;  %v747_v35 = vadd.f32 0.024430135, %v746_v33 }
 0x167   :  { %v286_v62 = vmul.f32 0.70427835, %v284_v60 }
 0x168   :  { %v748_v37 = vmul.f32 %v747_v35, %v743_v27 }
 0x169   :  { %v287_v63 = vmul.f32 %v286_v62, %v272_v61 }
 0x16a   :  { %v749_v39 = vadd.f32 0.05341128, %v748_v37 }
 0x16b   :  { %v290_v0 = vsel %vm285_vm8, %v287_v63, %v272_v61 }
 0x16c   :  { %v312_v1 = vpack.c.bf16 %v290_v0, %v290_v0  ;;  %v296_v2 = vmul.f32 %v290_v0, %v290_v0  ;;  %v750_v41 = vmul.f32 %v749_v39, %v743_v27  ;;  %v757_v39 = vmul.f32 0.5, %v2879_v17 }
 0x16e   :  { %2313 = vmatmul.msk.bf16.vlgmr.msra.gmra.mxu2 %vm252_vm1, %v312_v1  ;;  %v297_v3 = vsel %vm252_vm1, %v296_v2, 0.0  ;;  %v751_v43 = vadd.f32 0.133388, %v750_v41 }
 0x16f   :  { %298 = vadd.xlane.f32.xlu1 %v297_v3 }
 0x170   :  { %v752_v45 = vmul.f32 %v751_v43, %v743_v27 }
 0x172   :  { %v753_v49 = vadd.f32 0.33333156, %v752_v45 }
 0x174   :  { %v754_v51 = vmul.f32 %v753_v49, %v743_v27 }
 0x176   :  { %v755_v54 = vmul.f32 %v754_v51, %v742_v25 }
 0x178   :  { %v2887_v61 = vadd.f32 %v755_v54, %v742_v25 }
 0x17a   :  { %v762_v1 = vand.u32 2147483647, %v2887_v61 }
 0x17c   :  { %vm763_vm2 = vcmp.lt.f32.partialorder %v762_v1, 1e-30 }
 0x1e2   :  { %v299_v19 = vpop.xlane.xlu1 %298 }
 0x1e3   :  { %v300_v21 = vmax.f32 %v299_v19, 1e-30 }
 0x1e5   :  { %2552 = vrsqrt.f32 %v300_v21  ;;  %vm307_vm12 = vweird.f32 %v300_v21 }
 0x1eb   :  { %v2553_v26 = vpop.eup %2552 }
 0x1ec   :  { %v302_v28 = vmul.f32 %v2553_v26, %v300_v21  ;;  %vm308_vm11 = vweird.f32 %v2553_v26 }
 0x1ed   :  { %vm309_vm13 = vmor %vm307_vm12, %vm308_vm11 }
 0x1ee   :  { %v303_v30 = vmul.f32 %v2553_v26, %v302_v28  ;;  %v759_v28 = vfloor.f32 %v758_v23  ;;  %v2487_v23 = vld [vmem:[#allocation7 + $0xa0] sm:$0xff] }
 0x1f0   :  { %v304_v32 = vmul.f32 0.5, %v303_v30 }
 0x1f1   :  { %v2874_v7 = vpop.f32.mrf.mxu2 }
 0x1f2   :  { %v341_v8 = vmul.f32 %v2874_v7, %v2874_v7  ;;  %v305_v34 = vsub.f32 1.5, %v304_v32 }
 0x1f4   :  { %v343_v9 = vsel %vm342_vm10, %v341_v8, 0.0  ;;  %v306_v36 = vmul.f32 %v2553_v26, %v305_v34 }
 0x1f5   :  { %344 = vadd.xlane.f32.xlu1 %v343_v9  ;;  %v764_v9 = vsel %vm763_vm2, 1e-30, %v2887_v61 }
 0x1f6   :  { %v310_v38 = vsel %vm309_vm13, %v2553_v26, %v306_v36  ;;  %v777_v29 = vand.u32 2147483648, %v764_v9  ;;  %vm771_vm6 = vweird.f32 %v764_v9  ;;  %v775_v32 = vand.u32 2147483647, %v764_v9 }
 0x1f7   :  { %v311_v40 = vmul.f32 %v310_v38, %v300_v21  ;;  %v760_v36 = vmul.f32 2.0, %v759_v28 }
 0x1f8   :  { %v778_v37 = vor.u32 1.1754944e-38, %v777_v29  ;;  %vm776_vm8 = vcmp.eq.f32.partialorder %v775_v32, 8.507059e+37  ;;  %v2493_v29 = vld [vmem:[#allocation7 + $0xf0] sm:$0xff] }
 0x1f9   :  { %v339_v10 = vpop.f32.mrf.mxu2  ;;  %v359_v42 = vmul.f32 1.4142135, %v311_v40  ;;  %v761_v43 = vsub.f32 %v757_v39, %v760_v36 }
 0x1fb   :  { %v2314_v44 = vclamps-f32 %v359_v42, 0.9999999 }
 0x1fd   :  { %v362_v46 = vadd.f32 1.0, %v2314_v44  ;;  %v365_v47 = vsub.f32 1.0, %v2314_v44 }
 0x1ff   :  { %2554 = vlog2.f32 %v362_v46 }
 0x200   :  { %2556 = vlog2.f32 %v365_v47 }
 0x205   :  { %v2555_v52 = vpop.eup %2554 }
 0x206   :  { %v2557_v53 = vpop.eup %2556  ;;  %v364_v57 = vmul.f32 0.6931472, %v2555_v52 }
 0x207   :  { %v367_v58 = vmul.f32 0.6931472, %v2557_v53 }
 0x209   :  { %v368_v63 = vsub.f32 %v364_v57, %v367_v58  ;;  %v405_v58 = vpop.xlane.xlu2 %404 }
 0x20b   :  { %v369_v3 = vmul.f32 0.5, %v368_v63 }
 0x20d   :  { %v370_v6 = vmul.f32 0.70710677, %v369_v3  ;;  %v413_v3 = vmul.f32 -2.0, %v405_v58 }
 0x268   :  { %v2884_v48 = vpop.xlane.xlu1 %344 }
 0x269   :  { %v346_v50 = vmax.f32 %v2884_v48, 1e-30  ;;  %vm377_vm3 = vcmp.le.f32.partialorder %v2884_v48, 0.0 }
 0x26b   :  { %2558 = vrsqrt.f32 %v346_v50  ;;  %vm353_vm15 = vweird.f32 %v346_v50 }
 0x26c   :  { %2560 = vrcp.f32 %v764_v9 }
 0x271   :  { %v2559_v55 = vpop.eup %2558 }
 0x272   :  { %v348_v56 = vmul.f32 %v2559_v55, %v346_v50  ;;  %vm354_vm14 = vweird.f32 %v2559_v55  ;;  %v2561_v12 = vpop.eup %2560 }
 0x273   :  { %vm355_vm0 = vmor %vm353_vm15, %vm354_vm14  ;;  %v767_v14 = vmul.f32 %v2561_v12, %v764_v9  ;;  %vm772_vm5 = vweird.f32 %v2561_v12  ;;  %vm765_vm14 = vcmp.gt.f32.partialorder %v761_v43, 0.5 }
 0x274   :  { %v349_v60 = vmul.f32 %v2559_v55, %v348_v56  ;;  %vm773_vm7 = vmor %vm771_vm6, %vm772_vm5 }
 0x275   :  { %v768_v18 = vsub.f32 1.0, %v767_v14 }
 0x276   :  { %v350_v62 = vmul.f32 0.5, %v349_v60  ;;  %v422_v60 = vperm.slane %v405_v58, 0 }
 0x277   :  { %v769_v21 = vmul.f32 %v2561_v12, %v768_v18 }
 0x278   :  { %v351_v0 = vsub.f32 1.5, %v350_v62 }
 0x279   :  { %v770_v27 = vadd.f32 %v2561_v12, %v769_v21 }
 0x27a   :  { %v352_v2 = vmul.f32 %v2559_v55, %v351_v0 }
 0x27b   :  { %v774_v34 = vsel %vm773_vm7, %v2561_v12, %v770_v27 }
 0x27c   :  { %v356_v4 = vsel %vm355_vm0, %v2559_v55, %v352_v2  ;;  %v779_v40 = vsel %vm776_vm8, %v778_v37, %v774_v34 }
 0x27d   :  { %v357_v5 = vmul.f32 %v356_v4, %v346_v50  ;;  %v375_v41 = vmul.f32 %v356_v4, %v2874_v7  ;;  %v780_v44 = vmul.f32 -1.0, %v779_v40 }
 0x27f   :  { %v358_v8 = vmul.f32 %v357_v5, %v310_v38  ;;  %v781_v50 = vsel %vm765_vm14, %v780_v44, %v2887_v61 }
 0x280   :  { %v782_v52 = vmul.f32 0.70710677, %v781_v50 }
 0x281   :  { %v371_v10 = vmul.f32 %v370_v6, %v358_v8 }
 0x282   :  { %v2904_v55 = vmul.f32 %v782_v52, %v2868_v59  ;;  %v414_v59 = vperm.slane %v413_v3, 0 }
 0x283   :  { %v372_v11 = vmul.f32 1.4142135, %v371_v10 }
 0x284   :  { %v789_v56 = vmul.f32 %v2904_v55, %v2904_v55  ;;  %v805_v44 = vpack.c.bf16 %v2904_v55, %v2904_v55 }
 0x285   :  { %2562 = vtanh.f32 %v372_v11 }
 0x286   :  { %v790_v57 = vsel %vm252_vm1, %v789_v56, 0.0 }
 0x28b   :  { %v2563_v13 = vpop.eup %2562 }
 0x28c   :  { %v374_v15 = vmul.f32 0.70710677, %v2563_v13 }
 0x28e   :  { %v381_v16 = vmul.f32 %v374_v15, %v374_v15  ;;  %v376_v45 = vmul.f32 %v375_v41, %v374_v15 }
 0x290   :  { %v382_v19 = vsel %vm377_vm3, 0.0, %v381_v16  ;;  %v380_v51 = vsel %vm377_vm3, 0.0, %v376_v45  ;;  %v471_v45 = vld [vmem:[#allocation8 + $0x10] sm:$0x1] }
 0x291   :  { %v383_v20 = vmax.f32 %v382_v19, 1e-30 }
 0x293   :  { %2564 = vrsqrt.f32 %v383_v20  ;;  %vm394_vm4 = vcmp.gt.f32.partialorder %v383_v20, 0.496008  ;;  %vm390_vm12 = vweird.f32 %v383_v20 }
 0x294   :  { %v400_v22 = vsel %vm394_vm4, 0.496008, %v382_v19 }
 0x295   :  { %v417_v25 = vmul.f32 -2.0, %v400_v22  ;;  %v421_v48 = vmul.f32 4.0, %v400_v22  ;;  %v2488_v22 = vld [vmem:[#allocation7 + $0xa8] sm:$0xff] }
 0x296   :  { %520 = vmatpush.bf16.msra.mxu3 %v2488_v22 }
 0x297   :  { %v418_v26 = vadd.f32 1.0, %v417_v25  ;;  %v423_v63 = vmul.f32 %v422_v60, %v421_v48  ;;  %v2485_v25 = vld [vmem:[#allocation7 + $0x90] sm:$0xff] }
 0x299   :  { %v2565_v30 = vpop.eup %2564  ;;  %v419_v31 = vmul.f32 %v2531_v24, %v418_v26  ;;  %v2494_v26 = vld [vmem:[#allocation7 + $0xf8] sm:$0xff] }
 0x29a   :  { %v385_v33 = vmul.f32 %v2565_v30, %v383_v20  ;;  %vm391_vm11 = vweird.f32 %v2565_v30  ;;  %521 = vmatpush.bf16.msra.mxu3 %v2487_v23 }
 0x29b   :  { %vm392_vm13 = vmor %vm390_vm12, %vm391_vm11 }
 0x29c   :  { %v386_v35 = vmul.f32 %v2565_v30, %v385_v33 }
 0x29e   :  { %v387_v38 = vmul.f32 0.5, %v386_v35 }
 0x2a0   :  { %v388_v42 = vsub.f32 1.5, %v387_v38 }
 0x2a2   :  { %v389_v46 = vmul.f32 %v2565_v30, %v388_v42 }
 0x2a4   :  { %v393_v47 = vsel %vm392_vm13, %v2565_v30, %v389_v46  ;;  %v588_v46 = vmul.f32 %v471_v45, %v471_v45 }
 0x2a5   :  { %v395_v49 = vmul.f32 0.70427835, %v393_v47 }
 0x2a6   :  { %v589_v47 = vsel %vm402_vm9, %v588_v46, 0.0 }
 0x2a7   :  { %v396_v17 = vmul.f32 %v395_v49, %v380_v51 }
 0x2a9   :  { %v399_v7 = vsel %vm394_vm4, %v396_v17, %v380_v51 }
 0x2aa   :  { %v407_v53 = vmul.f32 %v2531_v24, %v399_v7  ;;  %v2486_v24 = vld [vmem:[#allocation7 + $0x98] sm:$0xff] }
 0x2ab   :  { %522 = vmatpush.bf16.msra.mxu3 %v2486_v24 }
 0x2ac   :  { %v408_v54 = vsel %vm342_vm10, %v407_v53, 0.0 }
 0x2ad   :  { %409 = vadd.xlane.f32.xlu2 %v408_v54 }
 0x2af   :  { %523 = vmatpush.bf16.msra.mxu3 %v2485_v25 }
 0x2b3   :  { %827 = vmatpush.bf16.msrb.mxu3 %v2494_v26 }
 0x2b5   :  { %791 = vadd.xlane.f32.xlu2 %v790_v57 }
 0x2b7   :  { %828 = vmatpush.bf16.msrb.mxu3 %v2493_v29 }
 0x2bd   :  { %590 = vadd.xlane.f32.xlu2 %v589_v47 }
 0x320   :  { %v410_v61 = vpop.xlane.xlu2 %409 }
 0x321   :  { %v411_v62 = vmul.f32 -4.0, %v410_v61 }
 0x323   :  { %v412_v0 = vsub.f32 1.0, %v411_v62 }
 0x325   :  { %v424_v1 = vadd.f32 %v423_v63, %v412_v0  ;;  %v415_v5 = vsub.f32 %v412_v0, %v414_v59 }
 0x327   :  { %v425_v2 = vmax.f32 %v424_v1, 1e-15  ;;  %v416_v10 = vmul.f32 %v415_v5, %v399_v7 }
 0x328   :  { %v792_v54 = vpop.xlane.xlu2 %791 }
 0x329   :  { %2566 = vrcp.f32 %v425_v2  ;;  %v437_v9 = vand.u32 2147483648, %v425_v2  ;;  %v435_v12 = vand.u32 2147483647, %v425_v2  ;;  %vm431_vm0 = vweird.f32 %v425_v2 }
 0x32a   :  { %v420_v15 = vadd.f32 %v419_v31, %v416_v10  ;;  %v793_v56 = vmax.f32 %v792_v54, 1e-30 }
 0x32b   :  { %v438_v14 = vor.u32 1.1754944e-38, %v437_v9  ;;  %vm436_vm3 = vcmp.eq.f32.partialorder %v435_v12, 8.507059e+37 }
 0x32c   :  { %vm800_vm11 = vweird.f32 %v793_v56 }
 0x32f   :  { %v2567_v4 = vpop.eup %2566 }
 0x330   :  { %v427_v6 = vmul.f32 %v2567_v4, %v425_v2  ;;  %vm432_vm15 = vweird.f32 %v2567_v4 }
 0x331   :  { %vm433_vm2 = vmor %vm431_vm0, %vm432_vm15 }
 0x332   :  { %v428_v8 = vsub.f32 1.0, %v427_v6 }
 0x334   :  { %v429_v11 = vmul.f32 %v2567_v4, %v428_v8 }
 0x336   :  { %v430_v13 = vadd.f32 %v2567_v4, %v429_v11 }
 0x338   :  { %v434_v16 = vsel %vm433_vm2, %v2567_v4, %v430_v13 }
 0x339   :  { %v439_v18 = vsel %vm436_vm3, %v438_v14, %v434_v16 }
 0x33a   :  { %v440_v19 = vmul.f32 %v439_v18, %v420_v15  ;;  %v788_v18 = vld [vmem:[#allocation8 + $0x38] sm:$0x1] }
 0x33c   :  { %v441_v20 = vmul.f32 %v440_v19, %v440_v19 }
 0x33e   :  { %v442_v21 = vsel %vm342_vm10, %v441_v20, 0.0  ;;  %v968_v20 = vmul.f32 %v788_v18, %v788_v18 }
 0x33f   :  { %443 = vadd.xlane.f32.xlu0 %v442_v21 }
 0x340   :  { %v969_v23 = vsel %vm402_vm9, %v968_v20, 0.0 }
 0x341   :  { %970 = vadd.xlane.f32.xlu2 %v969_v23 }
 0x3b2   :  { %v444_v27 = vpop.xlane.xlu0 %443 }
 0x3b3   :  { %v445_v28 = vmax.f32 %v444_v27, 1e-30 }
 0x3b5   :  { %2568 = vrsqrt.f32 %v445_v28  ;;  %vm452_vm5 = vweird.f32 %v445_v28  ;;  %vm456_vm7 = vcmp.gt.f32.partialorder %v445_v28, 0.496008 }
 0x3b6   :  { %2570 = vrsqrt.f32 %v793_v56 }
 0x3bb   :  { %v2569_v30 = vpop.eup %2568 }
 0x3bc   :  { %v447_v31 = vmul.f32 %v2569_v30, %v445_v28  ;;  %vm453_vm4 = vweird.f32 %v2569_v30  ;;  %v2571_v57 = vpop.eup %2570 }
 0x3bd   :  { %vm454_vm6 = vmor %vm452_vm5, %vm453_vm4  ;;  %v795_v58 = vmul.f32 %v2571_v57, %v793_v56  ;;  %vm801_vm8 = vweird.f32 %v2571_v57 }
 0x3be   :  { %v448_v32 = vmul.f32 %v2569_v30, %v447_v31  ;;  %vm802_vm12 = vmor %vm800_vm11, %vm801_vm8 }
 0x3bf   :  { %v796_v48 = vmul.f32 %v2571_v57, %v795_v58 }
 0x3c0   :  { %v449_v33 = vmul.f32 0.5, %v448_v32 }
 0x3c1   :  { %v797_v60 = vmul.f32 0.5, %v796_v48 }
 0x3c2   :  { %v450_v34 = vsub.f32 1.5, %v449_v33 }
 0x3c3   :  { %v798_v61 = vsub.f32 1.5, %v797_v60 }
 0x3c4   :  { %v451_v35 = vmul.f32 %v2569_v30, %v450_v34 }
 0x3c5   :  { %v799_v62 = vmul.f32 %v2571_v57, %v798_v61 }
 0x3c6   :  { %v455_v36 = vsel %vm454_vm6, %v2569_v30, %v451_v35 }
 0x3c7   :  { %v457_v37 = vmul.f32 0.70427835, %v455_v36  ;;  %v2926_v63 = vsel %vm802_vm12, %v2571_v57, %v799_v62 }
 0x3c8   :  { %v804_v0 = vmul.f32 %v2926_v63, %v793_v56 }
 0x3c9   :  { %v458_v38 = vmul.f32 %v457_v37, %v440_v19 }
 0x3ca   :  { %v2929_v1 = vmul.f32 1.4142135, %v804_v0 }
 0x3cb   :  { %v461_v39 = vsel %vm456_vm7, %v458_v38, %v440_v19 }
 0x3cc   :  { %v462_v40 = vmax.f32 %v461_v39, 0.0  ;;  %v873_v59 = vadd.f32 1.0, %v2929_v1  ;;  %v856_v4 = vmax.f32 %v2929_v1, 1e-15  ;;  %vm852_vm8 = vcmp.gt.f32.partialorder %v2929_v1, 2.4142137 }
 0x3cd   :  { %v2360_v37 = vadd.f32 -1.0, %v2929_v1  ;;  %vm853_vm12 = vcmp.gt.f32.partialorder %v2929_v1, 0.41421357 }
 0x3ce   :  { %v488_v41 = vpack.c.bf16 %v462_v40, %v462_v40  ;;  %v472_v42 = vmul.f32 %v462_v40, %v462_v40  ;;  %v885_v24 = vand.u32 2147483648, %v873_v59  ;;  %vm879_vm15 = vweird.f32 %v873_v59 }
 0x3cf   :  { %v883_v25 = vand.u32 2147483647, %v873_v59  ;;  %vm862_vm3 = vweird.f32 %v856_v4  ;;  %v868_v28 = vand.u32 2147483648, %v856_v4  ;;  %v866_v31 = vand.u32 2147483647, %v856_v4 }
 0x3d0   :  { %2331 = vmatmul.msk.bf16.vlgmr.msra.gmra.mxu3 %vm342_vm10, %v488_v41  ;;  %v473_v43 = vsel %vm342_vm10, %v472_v42, 0.0  ;;  %v886_v32 = vor.u32 1.1754944e-38, %v885_v24  ;;  %v2827_v24 = vmov 0.0  }
 0x3d1   :  { %474 = vadd.xlane.f32.xlu1 %v473_v43  ;;  %vm884_vm7 = vcmp.eq.f32.partialorder %v883_v25, 8.507059e+37  ;;  %v869_v36 = vor.u32 1.1754944e-38, %v868_v28  ;;  %vm867_vm11 = vcmp.eq.f32.partialorder %v866_v31, 8.507059e+37 }
 0x3e0   :  { %2359 = vmatmul.msk.bf16.vlgmr.msrb.gmra.mxu3 %vm252_vm1, %v805_v44 }
 0x444   :  { %v475_v2 = vpop.xlane.xlu1 %474 }
 0x445   :  { %v476_v3 = vmax.f32 %v475_v2, 1e-30 }
 0x447   :  { %2572 = vrsqrt.f32 %v476_v3  ;;  %vm483_vm4 = vweird.f32 %v476_v3 }
 0x448   :  { %2574 = vrcp.f32 %v873_v59 }
 0x449   :  { %2576 = vrcp.f32 %v856_v4 }
 0x44d   :  { %v2573_v5 = vpop.eup %2572 }
 0x44e   :  { %v2575_v6 = vpop.eup %2574  ;;  %v478_v8 = vmul.f32 %v2573_v5, %v476_v3  ;;  %vm484_vm0 = vweird.f32 %v2573_v5 }
 0x44f   :  { %v2577_v9 = vpop.eup %2576  ;;  %v875_v10 = vmul.f32 %v2575_v6, %v873_v59  ;;  %vm880_vm13 = vweird.f32 %v2575_v6  ;;  %vm485_vm6 = vmor %vm483_vm4, %vm484_vm0 }
 0x450   :  { %v479_v11 = vmul.f32 %v2573_v5, %v478_v8  ;;  %v858_v12 = vmul.f32 %v2577_v9, %v856_v4  ;;  %vm863_vm14 = vweird.f32 %v2577_v9  ;;  %vm881_vm2 = vmor %vm879_vm15, %vm880_vm13  ;;  %vm2826_vm13 = vmmov 1  }
 0x451   :  { %v876_v13 = vsub.f32 1.0, %v875_v10  ;;  %vm2934_vm5 = vmor %vm862_vm3, %vm863_vm14 }
 0x452   :  { %v480_v14 = vmul.f32 0.5, %v479_v11  ;;  %v859_v15 = vsub.f32 1.0, %v858_v12  ;;  %vm854_vm14 = vmxor %vm852_vm8, %vm2826_vm13 }
 0x453   :  { %v2916_v49 = vpop.f32.mrf.mxu3  ;;  %v877_v16 = vmul.f32 %v2575_v6, %v876_v13  ;;  %vm2946_vm15 = vmand %vm853_vm12, %vm854_vm14 }
 0x454   :  { %v529_v50 = vmul.f32 %v2916_v49, %v2916_v49  ;;  %v481_v19 = vsub.f32 1.5, %v480_v14  ;;  %v860_v21 = vmul.f32 %v2577_v9, %v859_v15  ;;  %v891_v25 = vsel %vm2946_vm15, 0.7853982, %v2827_v24 }
 0x455   :  { %v878_v22 = vadd.f32 %v2575_v6, %v877_v16 }
 0x456   :  { %v530_v51 = vsel %vm342_vm10, %v529_v50, 0.0  ;;  %v482_v26 = vmul.f32 %v2573_v5, %v481_v19  ;;  %v861_v27 = vadd.f32 %v2577_v9, %v860_v21 }
 0x457   :  { %531 = vadd.xlane.f32.xlu0 %v530_v51  ;;  %v882_v29 = vsel %vm881_vm2, %v2575_v6, %v878_v22 }
 0x458   :  { %v486_v33 = vsel %vm485_vm6, %v2573_v5, %v482_v26  ;;  %v865_v34 = vsel %vm2934_vm5, %v2577_v9, %v861_v27  ;;  %v887_v35 = vsel %vm884_vm7, %v886_v32, %v882_v29  ;;  %v892_v29 = vsel %vm852_vm8, 1.5707964, %v891_v25 }
 0x459   :  { %v487_v38 = vmul.f32 %v486_v33, %v476_v3  ;;  %v870_v39 = vsel %vm867_vm11, %v869_v36, %v865_v34  ;;  %v888_v40 = vmul.f32 %v2360_v37, %v887_v35 }
 0x45a   :  { %v871_v42 = vmul.f32 -1.0, %v870_v39 }
 0x45b   :  { %v527_v17 = vpop.f32.mrf.mxu3  ;;  %v546_v43 = vmul.f32 1.4142135, %v487_v38  ;;  %v889_v44 = vsel %vm2946_vm15, %v888_v40, %v2929_v1 }
 0x45c   :  { %v890_v45 = vsel %vm852_vm8, %v871_v42, %v889_v44  ;;  %v2532_v44 = vld [vmem:[#allocation8 + $0x10] ss:$0 sm:$0xff] }
 0x45d   :  { %v2332_v46 = vclamps-f32 %v546_v43, 0.9999999  ;;  %v893_v47 = vmul.f32 %v890_v45, %v890_v45 }
 0x45f   :  { %v549_v50 = vadd.f32 1.0, %v2332_v46  ;;  %v552_v51 = vsub.f32 1.0, %v2332_v46  ;;  %v894_v17 = vmul.f32 0.080537446, %v893_v47 }
 0x461   :  { %2578 = vlog2.f32 %v549_v50  ;;  %v2361_v54 = vadd.f32 -0.13877685, %v894_v17 }
 0x462   :  { %2580 = vlog2.f32 %v552_v51 }
 0x463   :  { %v2921_v52 = vpop.f32.mrf.mxu3  ;;  %v896_v56 = vmul.f32 %v2361_v54, %v893_v47 }
 0x464   :  { %v834_v7 = vmul.f32 %v2921_v52, %v2921_v52 }
 0x465   :  { %v897_v62 = vadd.f32 0.19977711, %v896_v56 }
 0x466   :  { %v835_v53 = vsel %vm342_vm10, %v834_v7, 0.0 }
 0x467   :  { %836 = vadd.xlane.f32.xlu1 %v835_v53  ;;  %v898_v59 = vmul.f32 %v897_v62, %v893_v47 }
 0x469   :  { %v2362_v10 = vadd.f32 -0.3333295, %v898_v59 }
 0x46b   :  { %v832_v55 = vpop.f32.mrf.mxu3  ;;  %v900_v15 = vmul.f32 %v2362_v10, %v893_v47 }
 0x46c   :  { %v2579_v55 = vpop.eup %2578 }
 0x46d   :  { %v2581_v57 = vpop.eup %2580  ;;  %v551_v60 = vmul.f32 0.6931472, %v2579_v55  ;;  %v901_v21 = vmul.f32 %v900_v15, %v890_v45 }
 0x46e   :  { %v554_v61 = vmul.f32 0.6931472, %v2581_v57 }
 0x46f   :  { %v902_v26 = vadd.f32 %v901_v21, %v890_v45 }
 0x470   :  { %v555_v3 = vsub.f32 %v551_v60, %v554_v61 }
 0x471   :  { %v903_v31 = vadd.f32 %v902_v26, %v892_v29 }
 0x472   :  { %v556_v9 = vmul.f32 0.5, %v555_v3 }
 0x473   :  { %v904_v37 = vmul.f32 0.70710677, %v903_v31 }
 0x474   :  { %v557_v14 = vmul.f32 0.70710677, %v556_v9 }
 0x4ca   :  { %v2955_v7 = vpop.xlane.xlu0 %531 }
 0x4cb   :  { %v533_v53 = vmax.f32 %v2955_v7, 1e-30  ;;  %vm564_vm7 = vcmp.le.f32.partialorder %v2955_v7, 0.0 }
 0x4cd   :  { %2582 = vrsqrt.f32 %v533_v53  ;;  %vm540_vm2 = vweird.f32 %v533_v53 }
 0x4d3   :  { %v2583_v58 = vpop.eup %2582 }
 0x4d4   :  { %v535_v48 = vmul.f32 %v2583_v58, %v533_v53  ;;  %vm541_vm0 = vweird.f32 %v2583_v58 }
 0x4d5   :  { %vm542_vm3 = vmor %vm540_vm2, %vm541_vm0 }
 0x4d6   :  { %v536_v0 = vmul.f32 %v2583_v58, %v535_v48 }
 0x4d8   :  { %v537_v2 = vmul.f32 0.5, %v536_v0 }
 0x4da   :  { %v538_v4 = vsub.f32 1.5, %v537_v2  ;;  %v2958_v5 = vpop.xlane.xlu1 %836 }
 0x4db   :  { %v838_v6 = vmax.f32 %v2958_v5, 1e-30 }
 0x4dc   :  { %v539_v8 = vmul.f32 %v2583_v58, %v538_v4 }
 0x4dd   :  { %2584 = vrsqrt.f32 %v838_v6  ;;  %vm845_vm5 = vweird.f32 %v838_v6 }
 0x4de   :  { %v543_v11 = vsel %vm542_vm3, %v2583_v58, %v539_v8 }
 0x4df   :  { %v544_v12 = vmul.f32 %v543_v11, %v533_v53  ;;  %v562_v57 = vmul.f32 %v543_v11, %v2916_v49 }
 0x4e1   :  { %v545_v13 = vmul.f32 %v544_v12, %v486_v33 }
 0x4e3   :  { %v2585_v16 = vpop.eup %2584  ;;  %v558_v18 = vmul.f32 %v557_v14, %v545_v13 }
 0x4e4   :  { %v840_v19 = vmul.f32 %v2585_v16, %v838_v6  ;;  %vm846_vm4 = vweird.f32 %v2585_v16 }
 0x4e5   :  { %v559_v20 = vmul.f32 1.4142135, %v558_v18  ;;  %vm847_vm6 = vmor %vm845_vm5, %vm846_vm4 }
 0x4e6   :  { %v841_v22 = vmul.f32 %v2585_v16, %v840_v19 }
 0x4e7   :  { %2586 = vtanh.f32 %v559_v20 }
 0x4e8   :  { %v842_v23 = vmul.f32 0.5, %v841_v22 }
 0x4ea   :  { %v843_v27 = vsub.f32 1.5, %v842_v23 }
 0x4ec   :  { %v844_v28 = vmul.f32 %v2585_v16, %v843_v27 }
 0x4ed   :  { %v2587_v30 = vpop.eup %2586 }
 0x4ee   :  { %v561_v32 = vmul.f32 0.70710677, %v2587_v30  ;;  %v2966_v33 = vsel %vm847_vm6, %v2585_v16, %v844_v28  ;;  %vm962_vm6 = vcmp.le.f32.partialorder %v2958_v5, 0.0 }
 0x4ef   :  { %v849_v34 = vmul.f32 %v2966_v33, %v838_v6 }
 0x4f0   :  { %v568_v35 = vmul.f32 %v561_v32, %v561_v32  ;;  %v563_v60 = vmul.f32 %v562_v57, %v561_v32 }
 0x4f1   :  { %v850_v36 = vmul.f32 %v849_v34, %v2926_v63 }
 0x4f2   :  { %v569_v38 = vsel %vm564_vm7, 0.0, %v568_v35  ;;  %v567_v4 = vsel %vm564_vm7, 0.0, %v563_v60 }
 0x4f3   :  { %v570_v39 = vmax.f32 %v569_v38, 1e-30  ;;  %v905_v1 = vmul.f32 %v904_v37, %v850_v36 }
 0x4f5   :  { %2588 = vrsqrt.f32 %v570_v39  ;;  %vm581_vm8 = vcmp.gt.f32.partialorder %v570_v39, 0.496008  ;;  %v906_v40 = vmul.f32 1.4142135, %v905_v1  ;;  %vm577_vm12 = vweird.f32 %v570_v39 }
 0x4f6   :  { %v2974_v41 = vsel %vm581_vm8, 0.496008, %v569_v38 }
 0x4f7   :  { %v603_v42 = vmul.f32 -2.0, %v2974_v41  ;;  %v907_v43 = vmul.f32 1.2732395, %v906_v40 }
 0x4f9   :  { %v604_v45 = vadd.f32 1.0, %v603_v42  ;;  %v908_v46 = vfloor.f32 %v907_v43 }
 0x4fb   :  { %v2589_v47 = vpop.eup %2588  ;;  %v909_v63 = vmul.f32 0.5, %v908_v46  ;;  %v2977_v50 = vmul.f32 %v2532_v44, %v604_v45 }
 0x4fc   :  { %v572_v51 = vmul.f32 %v2589_v47, %v570_v39  ;;  %vm578_vm11 = vweird.f32 %v2589_v47 }
 0x4fd   :  { %v910_v17 = vfloor.f32 %v909_v63  ;;  %vm579_vm14 = vmor %vm577_vm12, %vm578_vm11 }
 0x4fe   :  { %v573_v53 = vmul.f32 %v2589_v47, %v572_v51  ;;  %v960_v51 = vmul.f32 %v2966_v33, %v2921_v52 }
 0x4ff   :  { %v911_v54 = vmul.f32 2.0, %v910_v17  ;;  %v2533_v17 = vld [vmem:[#allocation8 + $0x38] ss:$0 sm:$0xff] }
 0x500   :  { %v574_v55 = vmul.f32 0.5, %v573_v53 }
 0x501   :  { %v912_v56 = vsub.f32 %v908_v46, %v911_v54 }
 0x502   :  { %v575_v58 = vsub.f32 1.5, %v574_v55 }
 0x503   :  { %v913_v48 = vadd.f32 %v912_v56, %v908_v46 }
 0x504   :  { %v576_v61 = vmul.f32 %v2589_v47, %v575_v58 }
 0x505   :  { %v914_v62 = vmul.f32 0.78515625, %v913_v48  ;;  %v916_v59 = vmul.f32 0.00024187565, %v913_v48  ;;  %v918_v9 = vmul.f32 3.774895e-08, %v913_v48  ;;  %v935_v30 = vmul.f32 0.25, %v913_v48 }
 0x506   :  { %v580_v0 = vsel %vm579_vm14, %v2589_v47, %v576_v61  ;;  %v934_v1 = vmul.f32 0.5, %v913_v48 }
 0x507   :  { %v582_v2 = vmul.f32 0.70427835, %v580_v0  ;;  %v915_v3 = vsub.f32 %v906_v40, %v914_v62  ;;  %v936_v32 = vfloor.f32 %v935_v30  ;;  %v591_v62 = vpop.xlane.xlu2 %590  ;;  %v607_v0 = vmul.f32 4.0, %v2974_v41 }
 0x508   :  { %v599_v5 = vmul.f32 -2.0, %v591_v62 }
 0x509   :  { %v583_v6 = vmul.f32 %v582_v2, %v567_v4  ;;  %v917_v8 = vsub.f32 %v915_v3, %v916_v59  ;;  %v937_v36 = vmul.f32 2.0, %v936_v32  ;;  %v608_v2 = vperm.slane %v591_v62, 0  ;;  %v2496_v62 = vld [vmem:[#allocation7 + $0x108] sm:$0xff] }
 0x50b   :  { %v919_v10 = vsub.f32 %v917_v8, %v918_v9  ;;  %v2983_v49 = vsel %vm581_vm8, %v583_v6, %v567_v4  ;;  %v938_v42 = vsub.f32 %v934_v1, %v937_v36  ;;  %v609_v33 = vmul.f32 %v608_v2, %v607_v0  ;;  %v2495_v0 = vld [vmem:[#allocation7 + $0x100] sm:$0xff] }
 0x50c   :  { %v593_v11 = vmul.f32 %v2532_v44, %v2983_v49  ;;  %v600_v8 = vperm.slane %v599_v5, 0 }
 0x50d   :  { %v920_v12 = vmul.f32 %v919_v10, %v919_v10  ;;  %vm942_vm5 = vcmp.gt.f32.partialorder %v938_v42, 0.5 }
 0x50e   :  { %v594_v13 = vsel %vm342_vm10, %v593_v11, 0.0 }
 0x50f   :  { %v921_v14 = vmul.f32 0.009385402, %v920_v12  ;;  %595 = vadd.xlane.f32.xlu0 %v594_v13 }
 0x511   :  { %v922_v15 = vadd.f32 0.0031199222, %v921_v14 }
 0x513   :  { %v923_v16 = vmul.f32 %v922_v15, %v920_v12 }
 0x515   :  { %v924_v18 = vadd.f32 0.024430135, %v923_v16 }
 0x517   :  { %v925_v19 = vmul.f32 %v924_v18, %v920_v12 }
 0x519   :  { %v926_v7 = vadd.f32 0.05341128, %v925_v19 }
 0x51b   :  { %v927_v20 = vmul.f32 %v926_v7, %v920_v12 }
 0x51d   :  { %v928_v21 = vadd.f32 0.133388, %v927_v20 }
 0x51f   :  { %v929_v22 = vmul.f32 %v928_v21, %v920_v12 }
 0x521   :  { %v930_v23 = vadd.f32 0.33333156, %v929_v22 }
 0x523   :  { %v931_v25 = vmul.f32 %v930_v23, %v920_v12 }
 0x525   :  { %v932_v26 = vmul.f32 %v931_v25, %v919_v10 }
 0x527   :  { %v933_v27 = vadd.f32 %v932_v26, %v919_v10 }
 0x529   :  { %v939_v28 = vand.u32 2147483647, %v933_v27 }
 0x52b   :  { %vm940_vm15 = vcmp.lt.f32.partialorder %v939_v28, 1e-30 }
 0x52c   :  { %v941_v29 = vsel %vm940_vm15, 1e-30, %v933_v27 }
 0x52d   :  { %2590 = vrcp.f32 %v941_v29  ;;  %v954_v37 = vand.u32 2147483648, %v941_v29  ;;  %v952_v39 = vand.u32 2147483647, %v941_v29  ;;  %vm948_vm2 = vweird.f32 %v941_v29 }
 0x52f   :  { %v955_v43 = vor.u32 1.1754944e-38, %v954_v37  ;;  %vm953_vm4 = vcmp.eq.f32.partialorder %v952_v39, 8.507059e+37 }
 0x533   :  { %v2591_v31 = vpop.eup %2590 }
 0x534   :  { %v944_v34 = vmul.f32 %v2591_v31, %v941_v29  ;;  %vm949_vm0 = vweird.f32 %v2591_v31 }
 0x535   :  { %vm950_vm3 = vmor %vm948_vm2, %vm949_vm0 }
 0x536   :  { %v945_v35 = vsub.f32 1.0, %v944_v34 }
 0x538   :  { %v946_v38 = vmul.f32 %v2591_v31, %v945_v35 }
 0x53a   :  { %v947_v40 = vadd.f32 %v2591_v31, %v946_v38 }
 0x53c   :  { %v951_v44 = vsel %vm950_vm3, %v2591_v31, %v947_v40 }
 0x53d   :  { %v956_v45 = vsel %vm953_vm4, %v955_v43, %v951_v44 }
 0x53e   :  { %v957_v46 = vmul.f32 -1.0, %v956_v45 }
 0x540   :  { %v958_v47 = vsel %vm942_vm5, %v957_v46, %v933_v27 }
 0x541   :  { %v959_v63 = vmul.f32 0.70710677, %v958_v47 }
 0x543   :  { %v961_v53 = vmul.f32 %v960_v51, %v959_v63  ;;  %v966_v54 = vmul.f32 %v959_v63, %v959_v63 }
 0x545   :  { %v965_v55 = vsel %vm962_vm6, 0.0, %v961_v53  ;;  %v967_v56 = vsel %vm962_vm6, 0.0, %v966_v54  ;;  %v2492_v54 = vld [vmem:[#allocation7 + $0xc8] sm:$0xff] }
 0x546   :  { %v983_v57 = vmul.f32 2.0, %v967_v56  ;;  %v973_v58 = vmul.f32 %v2533_v17, %v965_v55  ;;  %v987_v25 = vmul.f32 4.0, %v967_v56  ;;  %691 = vmatpush.bf16.msrb.mxu2 %v2492_v54  ;;  %v2490_v56 = vld [vmem:[#allocation7 + $0xb8] sm:$0xff] }
 0x548   :  { %v984_v48 = vadd.f32 1.0, %v983_v57  ;;  %v974_v60 = vsel %vm342_vm10, %v973_v58, 0.0  ;;  %v2489_v57 = vld [vmem:[#allocation7 + $0xb0] sm:$0xff]  ;;  %v2498_v58 = vld [vmem:[#allocation7 + $0x118] sm:$0xff] }
 0x549   :  { %975 = vadd.xlane.f32.xlu0 %v974_v60  ;;  %v2497_v60 = vld [vmem:[#allocation7 + $0x110] sm:$0xff] }
 0x54a   :  { %v985_v61 = vmul.f32 %v2533_v17, %v984_v48 }
 0x582   :  { %v596_v3 = vpop.xlane.xlu0 %595 }
 0x583   :  { %v597_v52 = vmul.f32 -4.0, %v596_v3 }
 0x585   :  { %v598_v59 = vsub.f32 1.0, %v597_v52 }
 0x587   :  { %v610_v4 = vadd.f32 %v609_v33, %v598_v59  ;;  %v601_v10 = vsub.f32 %v598_v59, %v600_v8 }
 0x589   :  { %v611_v6 = vmax.f32 %v610_v4, 1e-15  ;;  %v602_v14 = vmul.f32 %v601_v10, %v2983_v49  ;;  %v971_v49 = vpop.xlane.xlu2 %970 }
 0x58a   :  { %v988_v26 = vperm.slane %v971_v49, 0  ;;  %v979_v32 = vmul.f32 2.0, %v971_v49 }
 0x58b   :  { %2592 = vrcp.f32 %v611_v6  ;;  %v623_v13 = vand.u32 2147483648, %v611_v6  ;;  %v621_v41 = vand.u32 2147483647, %v611_v6  ;;  %vm617_vm8 = vweird.f32 %v611_v6 }
 0x58c   :  { %v606_v19 = vadd.f32 %v2977_v50, %v602_v14  ;;  %v989_v29 = vmul.f32 %v988_v26, %v987_v25  ;;  %v980_v34 = vperm.slane %v979_v32, 0 }
 0x58d   :  { %v624_v18 = vor.u32 1.1754944e-38, %v623_v13  ;;  %vm622_vm12 = vcmp.eq.f32.partialorder %v621_v41, 8.507059e+37  ;;  %v1016_v13 = vld [vmem:[#allocation8 + $0x40] sm:$0x1]  ;;  %v2534_v41 = vld [vmem:[#allocation8 + $0x18] ss:$0 sm:$0xff] }
 0x58e   :  { %v1208_v14 = vmul.f32 %v1016_v13, %v1016_v13 }
 0x591   :  { %v2593_v9 = vpop.eup %2592 }
 0x592   :  { %v613_v11 = vmul.f32 %v2593_v9, %v611_v6  ;;  %vm618_vm7 = vweird.f32 %v2593_v9 }
 0x593   :  { %vm619_vm11 = vmor %vm617_vm8, %vm618_vm7 }
 0x594   :  { %v614_v12 = vsub.f32 1.0, %v613_v11 }
 0x596   :  { %v615_v15 = vmul.f32 %v2593_v9, %v614_v12 }
 0x598   :  { %v616_v16 = vadd.f32 %v2593_v9, %v615_v15  ;;  %v1209_v15 = vsel %vm402_vm9, %v1208_v14, 0.0 }
 0x599   :  { %1210 = vadd.xlane.f32.xlu0 %v1209_v15 }
 0x59a   :  { %v620_v7 = vsel %vm619_vm11, %v2593_v9, %v616_v16 }
 0x59b   :  { %v625_v20 = vsel %vm622_vm12, %v624_v18, %v620_v7 }
 0x59c   :  { %v2994_v21 = vmul.f32 %v625_v20, %v606_v19 }
 0x59e   :  { %v627_v22 = vmul.f32 %v2994_v21, %v2994_v21 }
 0x5a0   :  { %v628_v23 = vsel %vm342_vm10, %v627_v22, 0.0 }
 0x5a1   :  { %629 = vadd.xlane.f32.xlu1 %v628_v23 }
 0x5bc   :  { %v976_v27 = vpop.xlane.xlu0 %975 }
 0x5bd   :  { %v977_v28 = vmul.f32 4.0, %v976_v27 }
 0x5bf   :  { %v978_v30 = vsub.f32 1.0, %v977_v28 }
 0x5c1   :  { %v990_v31 = vadd.f32 %v989_v29, %v978_v30  ;;  %v981_v36 = vsub.f32 %v978_v30, %v980_v34 }
 0x5c3   :  { %v991_v50 = vmax.f32 %v990_v31, 1e-15  ;;  %v982_v1 = vmul.f32 %v981_v36, %v965_v55  ;;  %v2491_v55 = vld [vmem:[#allocation7 + $0xc0] sm:$0xff] }
 0x5c4   :  { %692 = vmatpush.bf16.msrb.mxu2 %v2491_v55 }
 0x5c5   :  { %2594 = vrcp.f32 %v991_v50  ;;  %v1003_v39 = vand.u32 2147483648, %v991_v50  ;;  %v1001_v42 = vand.u32 2147483647, %v991_v50  ;;  %vm997_vm15 = vweird.f32 %v991_v50 }
 0x5c6   :  { %v986_v45 = vadd.f32 %v985_v61, %v982_v1 }
 0x5c7   :  { %v1004_v44 = vor.u32 1.1754944e-38, %v1003_v39  ;;  %vm1002_vm2 = vcmp.eq.f32.partialorder %v1001_v42, 8.507059e+37 }
 0x5c8   :  { %693 = vmatpush.bf16.msrb.mxu2 %v2490_v56 }
 0x5cb   :  { %v2595_v35 = vpop.eup %2594 }
 0x5cc   :  { %v993_v37 = vmul.f32 %v2595_v35, %v991_v50  ;;  %vm998_vm14 = vweird.f32 %v2595_v35  ;;  %694 = vmatpush.bf16.msrb.mxu2 %v2489_v57 }
 0x5cd   :  { %vm999_vm0 = vmor %vm997_vm15, %vm998_vm14 }
 0x5ce   :  { %v994_v38 = vsub.f32 1.0, %v993_v37 }
 0x5d0   :  { %v995_v40 = vmul.f32 %v2595_v35, %v994_v38  ;;  %1065 = vmatpush.bf16.msra.mxu2 %v2498_v58 }
 0x5d2   :  { %v996_v43 = vadd.f32 %v2595_v35, %v995_v40 }
 0x5d4   :  { %v1000_v46 = vsel %vm999_vm0, %v2595_v35, %v996_v43  ;;  %1066 = vmatpush.bf16.msra.mxu2 %v2497_v60 }
 0x5d5   :  { %v1005_v47 = vsel %vm1002_vm2, %v1004_v44, %v1000_v46 }
 0x5d6   :  { %v1006_v63 = vmul.f32 %v1005_v47, %v986_v45 }
 0x5d8   :  { %v1007_v51 = vmax.f32 %v1006_v63, 0.0  ;;  %1067 = vmatpush.bf16.msra.mxu2 %v2496_v62 }
 0x5da   :  { %v1017_v17 = vmul.f32 %v1007_v51, %v1007_v51  ;;  %v1033_v12 = vpack.c.bf16 %v1007_v51, %v1007_v51 }
 0x5dc   :  { %v1018_v53 = vsel %vm342_vm10, %v1017_v17, 0.0  ;;  %1068 = vmatpush.bf16.msra.mxu2 %v2495_v0 }
 0x5dd   :  { %1019 = vadd.xlane.f32.xlu1 %v1018_v53 }
 0x614   :  { %v630_v48 = vpop.xlane.xlu1 %629 }
 0x615   :  { %v631_v61 = vmax.f32 %v630_v48, 1e-30 }
 0x617   :  { %2596 = vrsqrt.f32 %v631_v61  ;;  %vm638_vm4 = vweird.f32 %v631_v61  ;;  %vm642_vm6 = vcmp.gt.f32.partialorder %v631_v61, 0.496008 }
 0x61d   :  { %v2597_v2 = vpop.eup %2596 }
 0x61e   :  { %v633_v3 = vmul.f32 %v2597_v2, %v631_v61  ;;  %vm639_vm3 = vweird.f32 %v2597_v2 }
 0x61f   :  { %vm640_vm5 = vmor %vm638_vm4, %vm639_vm3 }
 0x620   :  { %v634_v52 = vmul.f32 %v2597_v2, %v633_v3 }
 0x622   :  { %v635_v33 = vmul.f32 0.5, %v634_v52 }
 0x624   :  { %v636_v59 = vsub.f32 1.5, %v635_v33 }
 0x626   :  { %v637_v4 = vmul.f32 %v2597_v2, %v636_v59 }
 0x628   :  { %v641_v6 = vsel %vm640_vm5, %v2597_v2, %v637_v4 }
 0x629   :  { %v643_v5 = vmul.f32 0.70427835, %v641_v6 }
 0x62b   :  { %v644_v8 = vmul.f32 %v643_v5, %v2994_v21 }
 0x62d   :  { %v647_v9 = vsel %vm642_vm6, %v644_v8, %v2994_v21 }
 0x62e   :  { %v3002_v10 = vmax.f32 %v647_v9, 0.0 }
 0x630   :  { %v658_v11 = vpack.c.bf16 %v3002_v10, %v3002_v10 }
 0x632   :  { %2349 = vmatmul.msk.bf16.vlgmr.msrb.gmra.mxu2 %vm342_vm10, %v658_v11 }
 0x642   :  { %2379 = vmatmul.msk.bf16.vlgmr.msra.gmra.mxu2 %vm342_vm10, %v1033_v12 }
 0x650   :  { %v1020_v49 = vpop.xlane.xlu1 %1019 }
 0x651   :  { %v1021_v26 = vmax.f32 %v1020_v49, 1e-30 }
 0x653   :  { %2598 = vrsqrt.f32 %v1021_v26  ;;  %vm1028_vm7 = vweird.f32 %v1021_v26 }
 0x659   :  { %v2599_v27 = vpop.eup %2598 }
 0x65a   :  { %v1023_v28 = vmul.f32 %v2599_v27, %v1021_v26  ;;  %vm1029_vm9 = vweird.f32 %v2599_v27 }
 0x65b   :  { %vm1030_vm8 = vmor %vm1028_vm7, %vm1029_vm9 }
 0x65c   :  { %v1024_v29 = vmul.f32 %v2599_v27, %v1023_v28 }
 0x65e   :  { %v1025_v30 = vmul.f32 0.5, %v1024_v29 }
 0x660   :  { %v1026_v31 = vsub.f32 1.5, %v1025_v30 }
 0x662   :  { %v1027_v50 = vmul.f32 %v2599_v27, %v1026_v31 }
 0x664   :  { %v3019_v32 = vsel %vm1030_vm8, %v2599_v27, %v1027_v50 }
 0x665   :  { %v1032_v34 = vmul.f32 %v3019_v32, %v1021_v26 }
 0x667   :  { %v3022_v35 = vmul.f32 1.4142135, %v1032_v34 }
 0x669   :  { %v1113_v36 = vadd.f32 1.0, %v3022_v35  ;;  %v1096_v37 = vmax.f32 %v3022_v35, 1e-15  ;;  %vm1092_vm4 = vcmp.gt.f32.partialorder %v3022_v35, 2.4142137  ;;  %v2380_v48 = vadd.f32 -1.0, %v3022_v35 }
 0x66a   :  { %vm1093_vm6 = vcmp.gt.f32.partialorder %v3022_v35, 0.41421357  ;;  %vm1094_vm9 = vmxor %vm1092_vm4, %vm2826_vm13 }
 0x66b   :  { %2600 = vrcp.f32 %v1113_v36  ;;  %v1125_v47 = vand.u32 2147483648, %v1113_v36  ;;  %vm1119_vm12 = vweird.f32 %v1113_v36  ;;  %v1123_v63 = vand.u32 2147483647, %v1113_v36  ;;  %vm3032_vm7 = vmand %vm1093_vm6, %vm1094_vm9 }
 0x66c   :  { %2602 = vrcp.f32 %v1096_v37  ;;  %v1108_v17 = vand.u32 2147483648, %v1096_v37  ;;  %vm1102_vm0 = vweird.f32 %v1096_v37  ;;  %v1106_v54 = vand.u32 2147483647, %v1096_v37 }
 0x66d   :  { %v1126_v55 = vor.u32 1.1754944e-38, %v1125_v47  ;;  %vm1124_vm3 = vcmp.eq.f32.partialorder %v1123_v63, 8.507059e+37 }
 0x66e   :  { %v1109_v58 = vor.u32 1.1754944e-38, %v1108_v17  ;;  %vm1107_vm5 = vcmp.eq.f32.partialorder %v1106_v54, 8.507059e+37 }
 0x671   :  { %v2601_v38 = vpop.eup %2600 }
 0x672   :  { %v2603_v39 = vpop.eup %2602  ;;  %v1115_v1 = vmul.f32 %v2601_v38, %v1113_v36  ;;  %vm1120_vm11 = vweird.f32 %v2601_v38 }
 0x673   :  { %v1098_v40 = vmul.f32 %v2603_v39, %v1096_v37  ;;  %vm1103_vm14 = vweird.f32 %v2603_v39  ;;  %vm1121_vm15 = vmor %vm1119_vm12, %vm1120_vm11 }
 0x674   :  { %v1116_v42 = vsub.f32 1.0, %v1115_v1  ;;  %vm1104_vm2 = vmor %vm1102_vm0, %vm1103_vm14 }
 0x675   :  { %v1099_v43 = vsub.f32 1.0, %v1098_v40 }
 0x676   :  { %v1117_v44 = vmul.f32 %v2601_v38, %v1116_v42 }
 0x677   :  { %v1100_v45 = vmul.f32 %v2603_v39, %v1099_v43 }
 0x678   :  { %v1118_v46 = vadd.f32 %v2601_v38, %v1117_v44 }
 0x679   :  { %v1101_v51 = vadd.f32 %v2603_v39, %v1100_v45 }
 0x67a   :  { %v1122_v53 = vsel %vm1121_vm15, %v2601_v38, %v1118_v46 }
 0x67b   :  { %v1105_v56 = vsel %vm1104_vm2, %v2603_v39, %v1101_v51  ;;  %v1127_v57 = vsel %vm1124_vm3, %v1126_v55, %v1122_v53 }
 0x67c   :  { %v1110_v60 = vsel %vm1107_vm5, %v1109_v58, %v1105_v56  ;;  %v1128_v61 = vmul.f32 %v2380_v48, %v1127_v57 }
 0x67d   :  { %v1111_v0 = vmul.f32 -1.0, %v1110_v60 }
 0x67e   :  { %v1129_v2 = vsel %vm3032_vm7, %v1128_v61, %v3022_v35 }
 0x67f   :  { %v1130_v3 = vsel %vm1092_vm4, %v1111_v0, %v1129_v2 }
 0x680   :  { %v1133_v52 = vmul.f32 %v1130_v3, %v1130_v3 }
 0x682   :  { %v1134_v33 = vmul.f32 0.080537446, %v1133_v52 }
 0x684   :  { %v2381_v59 = vadd.f32 -0.13877685, %v1134_v33 }
 0x686   :  { %v1136_v4 = vmul.f32 %v2381_v59, %v1133_v52 }
 0x688   :  { %v1137_v6 = vadd.f32 0.19977711, %v1136_v4 }
 0x68a   :  { %v1138_v5 = vmul.f32 %v1137_v6, %v1133_v52 }
 0x68c   :  { %v2382_v11 = vadd.f32 -0.3333295, %v1138_v5 }
 0x68e   :  { %v1140_v12 = vmul.f32 %v2382_v11, %v1133_v52 }
 0x690   :  { %v1141_v15 = vmul.f32 %v1140_v12, %v1130_v3 }
 0x6b5   :  { %v696_v16 = vpop.f32.mrf.mxu2 }
 0x6b6   :  { %v3009_v18 = vadd.f32 %v2534_v41, %v696_v16 }
 0x6b8   :  { %v700_v19 = vmul.f32 %v3009_v18, %v3009_v18 }
 0x6ba   :  { %v701_v7 = vsel %vm252_vm1, %v700_v19, 0.0  ;;  %v1131_v19 = vsel %vm3032_vm7, 0.7853982, %v2827_v24 }
 0x6bb   :  { %702 = vadd.xlane.f32.xlu0 %v701_v7  ;;  %v1142_v7 = vadd.f32 %v1141_v15, %v1130_v3 }
 0x6bd   :  { %v698_v20 = vpop.f32.mrf.mxu2 }
 0x6c5   :  { %v3014_v21 = vpop.f32.mrf.mxu2 }
 0x6c6   :  { %v1074_v22 = vmul.f32 %v3014_v21, %v3014_v21 }
 0x6c8   :  { %v1075_v23 = vsel %vm342_vm10, %v1074_v22, 0.0 }
 0x6c9   :  { %1076 = vadd.xlane.f32.xlu2 %v1075_v23  ;;  %v1132_v23 = vsel %vm1092_vm4, 1.5707964, %v1131_v19 }
 0x6ca   :  { %v1143_v49 = vadd.f32 %v1142_v7, %v1132_v23  ;;  %v2535_v7 = vld [vmem:[#allocation8 + $0x40] ss:$0 sm:$0xff] }
 0x6cc   :  { %v1144_v28 = vmul.f32 0.70710677, %v1143_v49 }
 0x6cd   :  { %v1072_v25 = vpop.f32.mrf.mxu2 }
 0x73c   :  { %v3041_v8 = vpop.xlane.xlu2 %1076 }
 0x73d   :  { %v1078_v9 = vmax.f32 %v3041_v8, 1e-30  ;;  %vm1202_vm5 = vcmp.le.f32.partialorder %v3041_v8, 0.0 }
 0x73f   :  { %2604 = vrsqrt.f32 %v1078_v9  ;;  %vm1085_vm11 = vweird.f32 %v1078_v9 }
 0x745   :  { %v2605_v13 = vpop.eup %2604 }
 0x746   :  { %v1080_v14 = vmul.f32 %v2605_v13, %v1078_v9  ;;  %vm1086_vm8 = vweird.f32 %v2605_v13 }
 0x747   :  { %vm1087_vm12 = vmor %vm1085_vm11, %vm1086_vm8 }
 0x748   :  { %v1081_v41 = vmul.f32 %v2605_v13, %v1080_v14 }
 0x74a   :  { %v1082_v16 = vmul.f32 0.5, %v1081_v41 }
 0x74c   :  { %v1083_v20 = vsub.f32 1.5, %v1082_v16 }
 0x74e   :  { %v1084_v22 = vmul.f32 %v2605_v13, %v1083_v20 }
 0x750   :  { %v1088_v25 = vsel %vm1087_vm12, %v2605_v13, %v1084_v22 }
 0x751   :  { %v1089_v26 = vmul.f32 %v1088_v25, %v1078_v9  ;;  %v1200_v19 = vmul.f32 %v1088_v25, %v3014_v21  ;;  %v2499_v21 = vld [vmem:[#allocation7 + $0x120] sm:$0xff]  ;;  %v1211_v25 = vpop.xlane.xlu0 %1210 }
 0x753   :  { %v1090_v27 = vmul.f32 %v1089_v26, %v3019_v32 }
 0x755   :  { %v1145_v29 = vmul.f32 %v1144_v28, %v1090_v27 }
 0x757   :  { %v1146_v30 = vmul.f32 1.4142135, %v1145_v29 }
 0x759   :  { %v1147_v31 = vmul.f32 1.2732395, %v1146_v30 }
 0x75b   :  { %v1148_v50 = vfloor.f32 %v1147_v31  ;;  %v2502_v31 = vld [vmem:[#allocation7 + $0x138] sm:$0xff] }
 0x75c   :  { %1290 = vmatpush.bf16.msrb.mxu0 %v2502_v31 }
 0x75d   :  { %v1149_v34 = vmul.f32 0.5, %v1148_v50 }
 0x75f   :  { %v1150_v36 = vfloor.f32 %v1149_v34  ;;  %v2500_v34 = vld [vmem:[#allocation7 + $0x128] sm:$0xff] }
 0x761   :  { %v1151_v37 = vmul.f32 2.0, %v1150_v36  ;;  %v1228_v36 = vperm.slane %v1211_v25, 0 }
 0x763   :  { %v1152_v38 = vsub.f32 %v1148_v50, %v1151_v37 }
 0x765   :  { %v1153_v39 = vadd.f32 %v1152_v38, %v1148_v50  ;;  %v2501_v50 = vld [vmem:[#allocation7 + $0x130] sm:$0xff] }
 0x766   :  { %1291 = vmatpush.bf16.msrb.mxu0 %v2501_v50 }
 0x767   :  { %v1154_v1 = vmul.f32 0.78515625, %v1153_v39  ;;  %v1156_v35 = vmul.f32 0.00024187565, %v1153_v39  ;;  %v1158_v43 = vmul.f32 3.774895e-08, %v1153_v39  ;;  %v1175_v62 = vmul.f32 0.25, %v1153_v39 }
 0x768   :  { %v1174_v5 = vmul.f32 0.5, %v1153_v39 }
 0x769   :  { %v1155_v40 = vsub.f32 %v1146_v30, %v1154_v1  ;;  %v1176_v2 = vfloor.f32 %v1175_v62 }
 0x76a   :  { %1292 = vmatpush.bf16.msrb.mxu0 %v2500_v34 }
 0x76b   :  { %v1157_v42 = vsub.f32 %v1155_v40, %v1156_v35  ;;  %v1177_v33 = vmul.f32 2.0, %v1176_v2 }
 0x76d   :  { %v1159_v44 = vsub.f32 %v1157_v42, %v1158_v43  ;;  %v1178_v11 = vsub.f32 %v1174_v5, %v1177_v33  ;;  %v1219_v42 = vmul.f32 2.0, %v1211_v25  ;;  %v703_v5 = vpop.xlane.xlu0 %702 }
 0x76e   :  { %1293 = vmatpush.bf16.msrb.mxu0 %v2499_v21 }
 0x76f   :  { %v1160_v45 = vmul.f32 %v1159_v44, %v1159_v44  ;;  %vm1182_vm4 = vcmp.gt.f32.partialorder %v1178_v11, 0.5  ;;  %v1220_v43 = vperm.slane %v1219_v42, 0 }
 0x771   :  { %v1161_v46 = vmul.f32 0.009385402, %v1160_v45 }
 0x773   :  { %v1162_v47 = vadd.f32 0.0031199222, %v1161_v46 }
 0x775   :  { %v1163_v32 = vmul.f32 %v1162_v47, %v1160_v45 }
 0x777   :  { %v1164_v63 = vadd.f32 0.024430135, %v1163_v32 }
 0x779   :  { %v1165_v51 = vmul.f32 %v1164_v63, %v1160_v45 }
 0x77b   :  { %v1166_v17 = vadd.f32 0.05341128, %v1165_v51 }
 0x77d   :  { %v1167_v53 = vmul.f32 %v1166_v17, %v1160_v45 }
 0x77f   :  { %v1168_v54 = vadd.f32 0.133388, %v1167_v53 }
 0x781   :  { %v1169_v55 = vmul.f32 %v1168_v54, %v1160_v45 }
 0x783   :  { %v1170_v56 = vadd.f32 0.33333156, %v1169_v55 }
 0x785   :  { %v1171_v57 = vmul.f32 %v1170_v56, %v1160_v45 }
 0x787   :  { %v1172_v58 = vmul.f32 %v1171_v57, %v1159_v44 }
 0x789   :  { %v1173_v48 = vadd.f32 %v1172_v58, %v1159_v44 }
 0x78b   :  { %v1179_v60 = vand.u32 2147483647, %v1173_v48 }
 0x78d   :  { %vm1180_vm14 = vcmp.lt.f32.partialorder %v1179_v60, 1e-30 }
 0x78e   :  { %v1181_v61 = vsel %vm1180_vm14, 1e-30, %v1173_v48 }
 0x78f   :  { %2606 = vrcp.f32 %v1181_v61  ;;  %v1194_v59 = vand.u32 2147483648, %v1181_v61  ;;  %v1192_v6 = vand.u32 2147483647, %v1181_v61  ;;  %vm1188_vm0 = vweird.f32 %v1181_v61 }
 0x791   :  { %v1195_v12 = vor.u32 1.1754944e-38, %v1194_v59  ;;  %vm1193_vm3 = vcmp.eq.f32.partialorder %v1192_v6, 8.507059e+37 }
 0x795   :  { %v2607_v0 = vpop.eup %2606 }
 0x796   :  { %v1184_v3 = vmul.f32 %v2607_v0, %v1181_v61  ;;  %vm1189_vm15 = vweird.f32 %v2607_v0 }
 0x797   :  { %vm1190_vm2 = vmor %vm1188_vm0, %vm1189_vm15 }
 0x798   :  { %v1185_v52 = vsub.f32 1.0, %v1184_v3  ;;  %v2536_v3 = vld [vmem:[#allocation8 + $0x48] ss:$0 sm:$0xff] }
 0x79a   :  { %v1186_v4 = vmul.f32 %v2607_v0, %v1185_v52 }
 0x79c   :  { %v1187_v9 = vadd.f32 %v2607_v0, %v1186_v4 }
 0x79e   :  { %v1191_v13 = vsel %vm1190_vm2, %v2607_v0, %v1187_v9  ;;  %v1404_v0 = vmul.f32 %v3002_v10, %v3002_v10  ;;  %v704_v9 = vmax.f32 %v703_v5, 1e-30 }
 0x79f   :  { %v1196_v14 = vsel %vm1193_vm3, %v1195_v12, %v1191_v13 }
 0x7a0   :  { %v1197_v15 = vmul.f32 -1.0, %v1196_v14  ;;  %v1405_v2 = vsel %vm342_vm10, %v1404_v0, 0.0  ;;  %vm711_vm0 = vweird.f32 %v704_v9 }
 0x7a2   :  { %v1198_v41 = vsel %vm1182_vm4, %v1197_v15, %v1173_v48 }
 0x7a3   :  { %v1199_v16 = vmul.f32 0.70710677, %v1198_v41 }
 0x7a5   :  { %v1201_v20 = vmul.f32 %v1200_v19, %v1199_v16  ;;  %v1206_v22 = vmul.f32 %v1199_v16, %v1199_v16 }
 0x7a7   :  { %v1205_v23 = vsel %vm1202_vm5, 0.0, %v1201_v20  ;;  %v1207_v49 = vsel %vm1202_vm5, 0.0, %v1206_v22 }
 0x7a8   :  { %v1223_v26 = vmul.f32 2.0, %v1207_v49  ;;  %v1213_v27 = vmul.f32 %v2535_v7, %v1205_v23  ;;  %v1227_v8 = vmul.f32 4.0, %v1207_v49 }
 0x7aa   :  { %v1224_v28 = vadd.f32 1.0, %v1223_v26  ;;  %v1214_v29 = vsel %vm342_vm10, %v1213_v27, 0.0  ;;  %v1229_v39 = vmul.f32 %v1228_v36, %v1227_v8 }
 0x7ab   :  { %1215 = vadd.xlane.f32.xlu1 %v1214_v29 }
 0x7ac   :  { %v1225_v30 = vmul.f32 %v2535_v7, %v1224_v28 }
 0x81e   :  { %v1216_v37 = vpop.xlane.xlu1 %1215 }
 0x81f   :  { %v1217_v38 = vmul.f32 4.0, %v1216_v37 }
 0x821   :  { %v1218_v1 = vsub.f32 1.0, %v1217_v38 }
 0x823   :  { %v1230_v40 = vadd.f32 %v1229_v39, %v1218_v1  ;;  %v1221_v45 = vsub.f32 %v1218_v1, %v1220_v43 }
 0x825   :  { %v1231_v35 = vmax.f32 %v1230_v40, 1e-15  ;;  %v1222_v63 = vmul.f32 %v1221_v45, %v1205_v23 }
 0x827   :  { %2608 = vrcp.f32 %v1231_v35  ;;  %v1243_v32 = vand.u32 2147483648, %v1231_v35  ;;  %v1241_v17 = vand.u32 2147483647, %v1231_v35  ;;  %vm1237_vm9 = vweird.f32 %v1231_v35 }
 0x828   :  { %v1226_v55 = vadd.f32 %v1225_v30, %v1222_v63  ;;  %2610 = vrsqrt.f32 %v704_v9 }
 0x829   :  { %v1244_v54 = vor.u32 1.1754944e-38, %v1243_v32  ;;  %vm1242_vm8 = vcmp.eq.f32.partialorder %v1241_v17, 8.507059e+37 }
 0x82d   :  { %v2609_v44 = vpop.eup %2608 }
 0x82e   :  { %v1233_v46 = vmul.f32 %v2609_v44, %v1231_v35  ;;  %vm1238_vm6 = vweird.f32 %v2609_v44  ;;  %v2611_v13 = vpop.eup %2610 }
 0x82f   :  { %vm1239_vm7 = vmor %vm1237_vm9, %vm1238_vm6  ;;  %v706_v14 = vmul.f32 %v2611_v13, %v704_v9  ;;  %vm712_vm15 = vweird.f32 %v2611_v13 }
 0x830   :  { %v1234_v47 = vsub.f32 1.0, %v1233_v46  ;;  %vm713_vm2 = vmor %vm711_vm0, %vm712_vm15 }
 0x831   :  { %v707_v41 = vmul.f32 %v2611_v13, %v706_v14 }
 0x832   :  { %v1235_v51 = vmul.f32 %v2609_v44, %v1234_v47 }
 0x833   :  { %v708_v7 = vmul.f32 0.5, %v707_v41 }
 0x834   :  { %v1236_v53 = vadd.f32 %v2609_v44, %v1235_v51 }
 0x835   :  { %v709_v23 = vsub.f32 1.5, %v708_v7 }
 0x836   :  { %v1240_v56 = vsel %vm1239_vm7, %v2609_v44, %v1236_v53 }
 0x837   :  { %v1245_v57 = vsel %vm1242_vm8, %v1244_v54, %v1240_v56  ;;  %v710_v28 = vmul.f32 %v2611_v13, %v709_v23 }
 0x838   :  { %v1246_v58 = vmul.f32 %v1245_v57, %v1226_v55 }
 0x839   :  { %v3076_v50 = vsel %vm713_vm2, %v2611_v13, %v710_v28 }
 0x83a   :  { %v3053_v48 = vmax.f32 %v1246_v58, 0.0  ;;  %v715_v34 = vmul.f32 %v3076_v50, %v704_v9 }
 0x83c   :  { %v1257_v60 = vpack.c.bf16 %v3053_v48, %v3053_v48  ;;  %v1686_v61 = vmul.f32 %v3053_v48, %v3053_v48  ;;  %v716_v25 = vmul.f32 1.4142135, %v715_v34 }
 0x83e   :  { %2399 = vmatmul.msk.bf16.vlgmr.msrb.gmra.mxu0 %vm342_vm10, %v1257_v60  ;;  %v1687_v62 = vsel %vm342_vm10, %v1686_v61, 0.0  ;;  %v2350_v39 = vclamps-f32 %v716_v25, 0.9999999  ;;  %v2537_v25 = vld [vmem:[#allocation8 + $0x50] ss:$0 sm:$0xff] }
 0x83f   :  { %1688 = vadd.xlane.f32.xlu1 %v1687_v62 }
 0x840   :  { %v719_v47 = vadd.f32 1.0, %v2350_v39  ;;  %v722_v56 = vsub.f32 1.0, %v2350_v39 }
 0x847   :  { %1406 = vadd.xlane.f32.xlu1 %v1405_v2 }
 0x8bb   :  { %v1295_v52 = vpop.f32.mrf.mxu0 }
 0x8bc   :  { %v3064_v33 = vadd.f32 %v2536_v3, %v1295_v52 }
 0x8be   :  { %v1299_v59 = vmul.f32 %v3064_v33, %v3064_v33 }
 0x8c0   :  { %v1300_v4 = vsel %vm252_vm1, %v1299_v59, 0.0 }
 0x8c1   :  { %1301 = vadd.xlane.f32.xlu2 %v1300_v4 }
 0x8c3   :  { %v1297_v6 = vpop.f32.mrf.mxu0 }
 0x934   :  { %v1302_v11 = vpop.xlane.xlu2 %1301 }
 0x935   :  { %v1303_v12 = vmax.f32 %v1302_v11, 1e-30 }
 0x937   :  { %2612 = vrsqrt.f32 %v1303_v12  ;;  %vm1310_vm12 = vweird.f32 %v1303_v12 }
 0x93d   :  { %v2613_v15 = vpop.eup %2612 }
 0x93e   :  { %v1305_v16 = vmul.f32 %v2613_v15, %v1303_v12  ;;  %vm1311_vm11 = vweird.f32 %v2613_v15 }
 0x93f   :  { %vm1312_vm14 = vmor %vm1310_vm12, %vm1311_vm11 }
 0x940   :  { %v1306_v19 = vmul.f32 %v2613_v15, %v1305_v16 }
 0x942   :  { %v1307_v20 = vmul.f32 0.5, %v1306_v19 }
 0x944   :  { %v1308_v22 = vsub.f32 1.5, %v1307_v20 }
 0x946   :  { %v1309_v49 = vmul.f32 %v2613_v15, %v1308_v22 }
 0x948   :  { %v3069_v26 = vsel %vm1312_vm14, %v2613_v15, %v1309_v49  ;;  %v728_v49 = vmul.f32 %v3076_v50, %v3009_v18  ;;  %v1689_v18 = vpop.xlane.xlu1 %1688 }
 0x949   :  { %v1314_v27 = vmul.f32 %v3069_v26, %v1303_v12  ;;  %v1369_v28 = vmul.f32 %v3069_v26, %v3064_v33  ;;  %v1690_v50 = vmax.f32 %v1689_v18, 1e-30 }
 0x94b   :  { %v3072_v29 = vmul.f32 1.4142135, %v1314_v27 }
 0x94d   :  { %v1320_v30 = vmax.f32 %v3072_v29, 1e-15  ;;  %v1337_v31 = vadd.f32 1.0, %v3072_v29  ;;  %vm1316_vm5 = vcmp.gt.f32.partialorder %v3072_v29, 2.4142137  ;;  %v2400_v17 = vadd.f32 -1.0, %v3072_v29 }
 0x94e   :  { %vm1317_vm12 = vcmp.gt.f32.partialorder %v3072_v29, 0.41421357  ;;  %vm1318_vm14 = vmxor %vm1316_vm5, %vm2826_vm13 }
 0x94f   :  { %2614 = vrcp.f32 %v1320_v30  ;;  %v1332_v1 = vand.u32 2147483648, %v1320_v30  ;;  %v1330_v42 = vand.u32 2147483647, %v1320_v30  ;;  %v1349_v43 = vand.u32 2147483648, %v1337_v31  ;;  %vm3085_vm0 = vmand %vm1317_vm12, %vm1318_vm14 }
 0x950   :  { %2616 = vrcp.f32 %v1337_v31  ;;  %v1347_v45 = vand.u32 2147483647, %v1337_v31  ;;  %vm1326_vm6 = vweird.f32 %v1320_v30  ;;  %vm1343_vm7 = vweird.f32 %v1337_v31 }
 0x951   :  { %v1333_v32 = vor.u32 1.1754944e-38, %v1332_v1  ;;  %vm1331_vm8 = vcmp.eq.f32.partialorder %v1330_v42, 8.507059e+37  ;;  %v1350_v53 = vor.u32 1.1754944e-38, %v1349_v43  ;;  %2618 = vlog2.f32 %v719_v47 }
 0x952   :  { %vm1348_vm15 = vcmp.eq.f32.partialorder %v1347_v45, 8.507059e+37  ;;  %2620 = vlog2.f32 %v722_v56  ;;  %v1355_v16 = vsel %vm3085_vm0, 0.7853982, %v2827_v24 }
 0x953   :  { %v1356_v20 = vsel %vm1316_vm5, 1.5707964, %v1355_v16  ;;  %2622 = vrsqrt.f32 %v1690_v50 }
 0x955   :  { %v2615_v21 = vpop.eup %2614 }
 0x956   :  { %v2617_v36 = vpop.eup %2616  ;;  %v1322_v8 = vmul.f32 %v2615_v21, %v1320_v30  ;;  %vm1327_vm3 = vweird.f32 %v2615_v21 }
 0x957   :  { %v1339_v37 = vmul.f32 %v2617_v36, %v1337_v31  ;;  %vm1344_vm4 = vweird.f32 %v2617_v36  ;;  %vm1328_vm9 = vmor %vm1326_vm6, %vm1327_vm3  ;;  %v2619_v52 = vpop.eup %2618  ;;  %vm1697_vm3 = vweird.f32 %v1690_v50 }
 0x958   :  { %v1323_v38 = vsub.f32 1.0, %v1322_v8  ;;  %vm1345_vm11 = vmor %vm1343_vm7, %vm1344_vm4  ;;  %v2621_v4 = vpop.eup %2620  ;;  %v721_v5 = vmul.f32 0.6931472, %v2619_v52 }
 0x959   :  { %v1340_v40 = vsub.f32 1.0, %v1339_v37  ;;  %v724_v9 = vmul.f32 0.6931472, %v2621_v4  ;;  %v2623_v33 = vpop.eup %2622 }
 0x95a   :  { %v1324_v35 = vmul.f32 %v2615_v21, %v1323_v38  ;;  %v1692_v26 = vmul.f32 %v2623_v33, %v1690_v50  ;;  %vm1698_vm2 = vweird.f32 %v2623_v33 }
 0x95b   :  { %v1341_v44 = vmul.f32 %v2617_v36, %v1340_v40  ;;  %v725_v13 = vsub.f32 %v721_v5, %v724_v9  ;;  %vm1699_vm4 = vmor %vm1697_vm3, %vm1698_vm2 }
 0x95c   :  { %v1325_v46 = vadd.f32 %v2615_v21, %v1324_v35  ;;  %v1693_v40 = vmul.f32 %v2623_v33, %v1692_v26 }
 0x95d   :  { %v1342_v63 = vadd.f32 %v2617_v36, %v1341_v44  ;;  %v726_v41 = vmul.f32 0.5, %v725_v13 }
 0x95e   :  { %v1329_v51 = vsel %vm1328_vm9, %v2615_v21, %v1325_v46  ;;  %v1694_v35 = vmul.f32 0.5, %v1693_v40 }
 0x95f   :  { %v1334_v54 = vsel %vm1331_vm8, %v1333_v32, %v1329_v51  ;;  %v1346_v55 = vsel %vm1345_vm11, %v2617_v36, %v1342_v63  ;;  %v727_v22 = vmul.f32 0.70710677, %v726_v41  ;;  %v2538_v36 = vld [vmem:[#allocation8 + $0x20] ss:$0 sm:$0xff]  ;;  %v1407_v51 = vpop.xlane.xlu1 %1406 }
 0x960   :  { %v1335_v57 = vmul.f32 -1.0, %v1334_v54  ;;  %v1351_v58 = vsel %vm1348_vm15, %v1350_v53, %v1346_v55  ;;  %v1695_v42 = vsub.f32 1.5, %v1694_v35  ;;  %v1408_v54 = vmax.f32 %v1407_v51, 1e-30 }
 0x961   :  { %v1352_v60 = vmul.f32 %v2400_v17, %v1351_v58  ;;  %v729_v30 = vmul.f32 %v728_v49, %v727_v22 }
 0x962   :  { %v1696_v43 = vmul.f32 %v2623_v33, %v1695_v42 }
 0x963   :  { %v1353_v62 = vsel %vm3085_vm0, %v1352_v60, %v3072_v29 }
 0x964   :  { %v1354_v0 = vsel %vm1316_vm5, %v1335_v57, %v1353_v62  ;;  %v3105_v44 = vsel %vm1699_vm4, %v2623_v33, %v1696_v43 }
 0x965   :  { %v1357_v2 = vmul.f32 %v1354_v0, %v1354_v0  ;;  %v1701_v45 = vmul.f32 %v3105_v44, %v1690_v50 }
 0x967   :  { %v1358_v3 = vmul.f32 0.080537446, %v1357_v2  ;;  %v3108_v46 = vmul.f32 1.4142135, %v1701_v45 }
 0x969   :  { %v2401_v59 = vadd.f32 -0.13877685, %v1358_v3  ;;  %v1724_v47 = vadd.f32 1.0, %v3108_v46  ;;  %v1707_v32 = vmax.f32 %v3108_v46, 1e-15  ;;  %v2423_v13 = vadd.f32 -1.0, %v3108_v46 }
 0x96a   :  { %vm1703_vm14 = vcmp.gt.f32.partialorder %v3108_v46, 2.4142137  ;;  %vm1704_vm0 = vcmp.gt.f32.partialorder %v3108_v46, 0.41421357 }
 0x96b   :  { %v1360_v6 = vmul.f32 %v2401_v59, %v1357_v2  ;;  %2624 = vrcp.f32 %v1724_v47  ;;  %vm1730_vm6 = vweird.f32 %v1724_v47  ;;  %v1719_v59 = vand.u32 2147483648, %v1707_v32  ;;  %vm1705_vm2 = vmxor %vm1703_vm14, %vm2826_vm13 }
 0x96c   :  { %2626 = vrcp.f32 %v1707_v32  ;;  %vm1713_vm8 = vweird.f32 %v1707_v32  ;;  %vm3118_vm3 = vmand %vm1704_vm0, %vm1705_vm2 }
 0x96d   :  { %v1361_v11 = vadd.f32 0.19977711, %v1360_v6  ;;  %2628 = vrsqrt.f32 %v1408_v54  ;;  %v1717_v6 = vand.u32 2147483647, %v1707_v32 }
 0x96f   :  { %v1362_v12 = vmul.f32 %v1361_v11, %v1357_v2  ;;  %vm1718_vm15 = vcmp.eq.f32.partialorder %v1717_v6, 8.507059e+37 }
 0x971   :  { %v2402_v14 = vadd.f32 -0.3333295, %v1362_v12  ;;  %v2625_v63 = vpop.eup %2624 }
 0x972   :  { %v2627_v17 = vpop.eup %2626  ;;  %v1726_v53 = vmul.f32 %v2625_v63, %v1724_v47  ;;  %vm1731_vm5 = vweird.f32 %v2625_v63 }
 0x973   :  { %v1364_v15 = vmul.f32 %v2402_v14, %v1357_v2  ;;  %v1709_v55 = vmul.f32 %v2627_v17, %v1707_v32  ;;  %v2629_v61 = vpop.eup %2628  ;;  %v1734_v2 = vand.u32 2147483647, %v1724_v47  ;;  %vm1714_vm9 = vweird.f32 %v2627_v17  ;;  %vm1732_vm7 = vmor %vm1730_vm6, %vm1731_vm5 }
 0x974   :  { %v1727_v56 = vsub.f32 1.0, %v1726_v53  ;;  %v1410_v3 = vmul.f32 %v2629_v61, %v1408_v54  ;;  %vm1715_vm11 = vmor %vm1713_vm8, %vm1714_vm9  ;;  %v1720_v14 = vor.u32 1.1754944e-38, %v1719_v59  ;;  %vm1416_vm4 = vweird.f32 %v2629_v61 }
 0x975   :  { %v1365_v19 = vmul.f32 %v1364_v15, %v1354_v0  ;;  %v1710_v57 = vsub.f32 1.0, %v1709_v55  ;;  %vm1735_vm12 = vcmp.eq.f32.partialorder %v1734_v2, 8.507059e+37  ;;  %vm1415_vm5 = vweird.f32 %v1408_v54 }
 0x976   :  { %v1728_v58 = vmul.f32 %v2625_v63, %v1727_v56  ;;  %v1411_v9 = vmul.f32 %v2629_v61, %v1410_v3  ;;  %vm1417_vm6 = vmor %vm1415_vm5, %vm1416_vm4  ;;  %v2828_v32 = vmov 0   ;;  %vm1595_vm5 = vcmask 253952  }
 0x977   :  { %v1366_v7 = vadd.f32 %v1365_v19, %v1354_v0  ;;  %v1711_v60 = vmul.f32 %v2627_v17, %v1710_v57  ;;  %v1736_v0 = vand.u32 2147483648, %v1724_v47  ;;  %2528 = vset.pattern.permute.xlu0 %v2828_v32  ;;  %2529 = vset.pattern.permute.xlu1 %v2828_v32 }
 0x978   :  { %v1729_v62 = vadd.f32 %v2625_v63, %v1728_v58  ;;  %v1412_v16 = vmul.f32 0.5, %v1411_v9  ;;  %2527 = vset.pattern.permute.xlu2 %v2828_v32 }
 0x979   :  { %v1367_v23 = vadd.f32 %v1366_v7, %v1356_v20  ;;  %v1712_v52 = vadd.f32 %v2627_v17, %v1711_v60  ;;  %v1737_v5 = vor.u32 1.1754944e-38, %v1736_v0  ;;  %v1742_v60 = vsel %vm3118_vm3, 0.7853982, %v2827_v24 }
 0x97a   :  { %v1733_v4 = vsel %vm1732_vm7, %v2625_v63, %v1729_v62  ;;  %v1413_v22 = vsub.f32 1.5, %v1412_v16  ;;  %v1743_v0 = vsel %vm1703_vm14, 1.5707964, %v1742_v60 }
 0x97b   :  { %v1368_v27 = vmul.f32 0.70710677, %v1367_v23  ;;  %v1716_v11 = vsel %vm1715_vm11, %v2627_v17, %v1712_v52  ;;  %v1738_v12 = vsel %vm1735_vm12, %v1737_v5, %v1733_v4 }
 0x97c   :  { %v1721_v15 = vsel %vm1718_vm15, %v1720_v14, %v1716_v11  ;;  %v1739_v41 = vmul.f32 %v2423_v13, %v1738_v12  ;;  %v1414_v49 = vmul.f32 %v2629_v61, %v1413_v22 }
 0x97d   :  { %v1370_v31 = vmul.f32 %v1369_v28, %v1368_v27  ;;  %v1722_v7 = vmul.f32 -1.0, %v1721_v15 }
 0x97e   :  { %v1740_v20 = vsel %vm3118_vm3, %v1739_v41, %v3108_v46  ;;  %v3127_v28 = vsel %vm1417_vm6, %v2629_v61, %v1414_v49 }
 0x97f   :  { %v1371_v34 = vadd.f32 %v1370_v31, %v729_v30  ;;  %v1741_v23 = vsel %vm1703_vm14, %v1722_v7, %v1740_v20 }
 0x980   :  { %v1744_v27 = vmul.f32 %v1741_v23, %v1741_v23 }
 0x981   :  { %v1372_v21 = vmul.f32 0.5, %v1371_v34 }
 0x983   :  { %v1383_v8 = vsub.f32 %v1370_v31, %v1372_v21  ;;  %v1373_v37 = vsub.f32 %v729_v30, %v1372_v21  ;;  %v1745_v30 = vmul.f32 0.080537446, %v1744_v27  ;;  %v1419_v31 = vmul.f32 %v3127_v28, %v1408_v54 }
 0x985   :  { %v1386_v38 = vmul.f32 %v2537_v25, %v1383_v8  ;;  %v1376_v29 = vmul.f32 %v2538_v36, %v1373_v37  ;;  %v2424_v34 = vadd.f32 -0.13877685, %v1745_v30  ;;  %v1420_v21 = vmul.f32 1.4142135, %v1419_v31  ;;  %v2539_v8 = vld [vmem:[#allocation8 + $0x58] ss:$0 sm:$0xff] }
 0x986   :  { %v2540_v37 = vld [vmem:[#allocation8 + $0x28] ss:$0 sm:$0xff] }
 0x987   :  { %v1387_v39 = vsel %vm252_vm1, %v1386_v38, 0.0  ;;  %v1377_v1 = vsel %vm252_vm1, %v1376_v29, 0.0  ;;  %v1747_v25 = vmul.f32 %v2424_v34, %v1744_v27  ;;  %v2403_v36 = vclamps-f32 %v1420_v21, 0.9999999 }
 0x988   :  { %1388 = vadd.xlane.f32.xlu0 %v1387_v39  ;;  %1378 = vadd.xlane.f32.xlu2 %v1377_v1 }
 0x989   :  { %v1748_v38 = vadd.f32 0.19977711, %v1747_v25  ;;  %v1423_v29 = vadd.f32 1.0, %v2403_v36  ;;  %v1426_v18 = vsub.f32 1.0, %v2403_v36 }
 0x98b   :  { %v1749_v26 = vmul.f32 %v1748_v38, %v1744_v27  ;;  %2630 = vlog2.f32 %v1423_v29 }
 0x98c   :  { %2632 = vlog2.f32 %v1426_v18 }
 0x98d   :  { %v2425_v43 = vadd.f32 -0.3333295, %v1749_v26 }
 0x98f   :  { %v1751_v51 = vmul.f32 %v2425_v43, %v1744_v27 }
 0x991   :  { %v2631_v63 = vpop.eup %2630  ;;  %v1752_v53 = vmul.f32 %v1751_v51, %v1741_v23 }
 0x992   :  { %v2633_v17 = vpop.eup %2632  ;;  %v1425_v54 = vmul.f32 0.6931472, %v2631_v63 }
 0x993   :  { %v1428_v55 = vmul.f32 0.6931472, %v2633_v17  ;;  %v1753_v61 = vadd.f32 %v1752_v53, %v1741_v23 }
 0x995   :  { %v1429_v62 = vsub.f32 %v1425_v54, %v1428_v55  ;;  %v1754_v2 = vadd.f32 %v1753_v61, %v1743_v0 }
 0x997   :  { %v1430_v3 = vmul.f32 0.5, %v1429_v62  ;;  %v1755_v59 = vmul.f32 0.70710677, %v1754_v2 }
 0x999   :  { %v1431_v5 = vmul.f32 0.70710677, %v1430_v3 }
 0x9fb   :  { %v1389_v39 = vpop.xlane.xlu0 %1388  ;;  %v1379_v1 = vpop.xlane.xlu2 %1378 }
 0x9fc   :  { %v1392_v50 = vadd.f32 %v2539_v8, %v1389_v39  ;;  %v1382_v33 = vadd.f32 %v2540_v37, %v1379_v1 }
 0x9fe   :  { %v1393_v40 = vmax.f32 %v1382_v33, %v1392_v50 }
 0xa00   :  { %v1394_v35 = vsub.f32 %v1382_v33, %v1393_v40  ;;  %v1397_v42 = vsub.f32 %v1392_v50, %v1393_v40 }
 0xa02   :  { %v1395_v45 = vmul.f32 1.442695, %v1394_v35  ;;  %v1398_v47 = vmul.f32 1.442695, %v1397_v42 }
 0xa04   :  { %2634 = vpow2.f32 %v1395_v45 }
 0xa05   :  { %2636 = vpow2.f32 %v1398_v47 }
 0xa0a   :  { %v2635_v56 = vpop.eup %2634 }
 0xa0b   :  { %v2637_v57 = vpop.eup %2636 }
 0xa0c   :  { %v1400_v58 = vadd.f32 %v2637_v57, %v2635_v56 }
 0xa0e   :  { %2638 = vrcp.f32 %v1400_v58 }
 0xa14   :  { %v2639_v52 = vpop.eup %2638 }
 0xa15   :  { %v1403_v4 = vmul.f32 %v2639_v52, %v2637_v57  ;;  %v1402_v6 = vmul.f32 %v2639_v52, %v2635_v56 }
 0xa17   :  { %v1756_v9 = vmul.f32 %v1755_v59, %v1403_v4  ;;  %v1432_v11 = vmul.f32 %v1431_v5, %v1402_v6 }
 0xa19   :  { %v1757_v12 = vmul.f32 1.4142135, %v1756_v9  ;;  %v1433_v13 = vmul.f32 1.4142135, %v1432_v11 }
 0xa1b   :  { %v1758_v14 = vmul.f32 1.2732395, %v1757_v12  ;;  %2640 = vtanh.f32 %v1433_v13 }
 0xa1d   :  { %v1759_v15 = vfloor.f32 %v1758_v14 }
 0xa1f   :  { %v1760_v41 = vmul.f32 0.5, %v1759_v15 }
 0xa21   :  { %v2641_v16 = vpop.eup %2640  ;;  %v1761_v19 = vfloor.f32 %v1760_v41  ;;  %v2506_v41 = vld [vmem:[#allocation7 + $0xe8] sm:$0xff] }
 0xa22   :  { %v1435_v7 = vmul.f32 0.70710677, %v2641_v16  ;;  %v2509_v16 = vld [vmem:[#allocation7 + $0x150] sm:$0xff]  ;;  %1526 = vmatpush.bf16.msrb.mxu1 %v2506_v41 }
 0xa23   :  { %v1762_v46 = vmul.f32 2.0, %v1761_v19  ;;  %v2508_v19 = vld [vmem:[#allocation7 + $0x148] sm:$0xff] }
 0xa24   :  { %1439 = vperm.xlu0 %2528, %v1435_v7   ;;  %v1443_v20 = vmul.f32 %v1435_v7, %v1435_v7  ;;  %v2505_v7 = vld [vmem:[#allocation7 + $0xe0] sm:$0xff] }
 0xa25   :  { %v1763_v22 = vsub.f32 %v1759_v15, %v1762_v46  ;;  %v2507_v46 = vld [vmem:[#allocation7 + $0x140] sm:$0xff] }
 0xa26   :  { %v1444_v23 = vmax.f32 %v1443_v20, 1e-30  ;;  %1527 = vmatpush.bf16.msrb.mxu1 %v2505_v7  ;;  %v2504_v20 = vld [vmem:[#allocation7 + $0xd8] sm:$0xff] }
 0xa27   :  { %v1764_v49 = vadd.f32 %v1763_v22, %v1759_v15  ;;  %v2510_v15 = vld [vmem:[#allocation7 + $0x158] sm:$0xff]  ;;  %v2503_v22 = vld [vmem:[#allocation7 + $0xd0] sm:$0xff] }
 0xa28   :  { %2642 = vrsqrt.f32 %v1444_v23  ;;  %vm1455_vm9 = vcmp.gt.f32.partialorder %v1444_v23, 0.496008  ;;  %vm1451_vm8 = vweird.f32 %v1444_v23  ;;  %1875 = vmatpush.bf16.msra.mxu3 %v2510_v15 }
 0xa29   :  { %v1765_v27 = vmul.f32 0.78515625, %v1764_v49  ;;  %v1463_v30 = vsel %vm1455_vm9, 1, %v2828_v32  ;;  %v1767_v34 = vmul.f32 0.00024187565, %v1764_v49  ;;  %v1769_v25 = vmul.f32 3.774895e-08, %v1764_v49 }
 0xa2a   :  { %v1786_v57 = vmul.f32 0.25, %v1764_v49  ;;  %v1785_v59 = vmul.f32 0.5, %v1764_v49  ;;  %1528 = vmatpush.bf16.msrb.mxu1 %v2504_v20 }
 0xa2b   :  { %v1766_v31 = vsub.f32 %v1757_v12, %v1765_v27 }
 0xa2c   :  { %v1787_v60 = vfloor.f32 %v1786_v57  ;;  %1876 = vmatpush.bf16.msra.mxu3 %v2509_v16 }
 0xa2d   :  { %v1768_v21 = vsub.f32 %v1766_v31, %v1767_v34 }
 0xa2e   :  { %v2643_v36 = vpop.eup %2642  ;;  %v1788_v0 = vmul.f32 2.0, %v1787_v60  ;;  %1529 = vmatpush.bf16.msrb.mxu1 %v2503_v22 }
 0xa2f   :  { %v1446_v8 = vmul.f32 %v2643_v36, %v1444_v23  ;;  %v1770_v37 = vsub.f32 %v1768_v21, %v1769_v25  ;;  %vm1452_vm7 = vweird.f32 %v2643_v36  ;;  %v1811_v23 = vmul.f32 %v3105_v44, %v3053_v48 }
 0xa30   :  { %vm1453_vm11 = vmor %vm1451_vm8, %vm1452_vm7  ;;  %v1789_v6 = vsub.f32 %v1785_v59, %v1788_v0  ;;  %1877 = vmatpush.bf16.msra.mxu3 %v2508_v19  ;;  %v1436_v21 = vmul.f32 %v3127_v28, %v3002_v10 }
 0xa31   :  { %v1447_v38 = vmul.f32 %v2643_v36, %v1446_v8  ;;  %v1771_v29 = vmul.f32 %v1770_v37, %v1770_v37 }
 0xa32   :  { %vm1793_vm3 = vcmp.gt.f32.partialorder %v1789_v6, 0.5 }
 0xa33   :  { %v1448_v39 = vmul.f32 0.5, %v1447_v38  ;;  %v1772_v1 = vmul.f32 0.009385402, %v1771_v29 }
 0xa34   :  { %1878 = vmatpush.bf16.msra.mxu3 %v2507_v46 }
 0xa35   :  { %v1449_v18 = vsub.f32 1.5, %v1448_v39  ;;  %v1773_v50 = vadd.f32 0.0031199222, %v1772_v1  ;;  %v1477_v1 = vld [vmem:[#allocation8 + $0x30] sm:$0x1] }
 0xa36   :  { %v1594_v10 = vmul.f32 %v1477_v1, %v1477_v1 }
 0xa37   :  { %v1450_v33 = vmul.f32 %v2643_v36, %v1449_v18  ;;  %v1774_v26 = vmul.f32 %v1773_v50, %v1771_v29  ;;  %v1826_v18 = vld [vmem:[#allocation8 + $0x60] sm:$0x1] }
 0xa39   :  { %v1454_v40 = vsel %vm1453_vm11, %v2643_v36, %v1450_v33  ;;  %v1775_v35 = vadd.f32 0.024430135, %v1774_v26  ;;  %v1596_v33 = vsel %vm1595_vm5, %v1594_v10, 0.0 }
 0xa3a   :  { %v1456_v42 = vmul.f32 0.70427835, %v1454_v40 }
 0xa3b   :  { %v1776_v43 = vmul.f32 %v1775_v35, %v1771_v29  ;;  %v2018_v35 = vmul.f32 %v1826_v18, %v1826_v18 }
 0xa3c   :  { %1459 = vperm.xlu1 %2529, %v1456_v42  }
 0xa3d   :  { %v1777_v45 = vadd.f32 0.05341128, %v1776_v43 }
 0xa3f   :  { %v1778_v47 = vmul.f32 %v1777_v45, %v1771_v29 }
 0xa41   :  { %v1779_v32 = vadd.f32 0.133388, %v1778_v47  ;;  %v2019_v47 = vsel %vm1595_vm5, %v2018_v35, 0.0 }
 0xa43   :  { %v1780_v63 = vmul.f32 %v1779_v32, %v1771_v29 }
 0xa45   :  { %v1781_v51 = vadd.f32 0.33333156, %v1780_v63 }
 0xa47   :  { %v1782_v17 = vmul.f32 %v1781_v51, %v1771_v29 }
 0xa49   :  { %v1783_v53 = vmul.f32 %v1782_v17, %v1770_v37 }
 0xa4b   :  { %v1784_v54 = vadd.f32 %v1783_v53, %v1770_v37 }
 0xa4d   :  { %v1790_v55 = vand.u32 2147483647, %v1784_v54 }
 0xa4f   :  { %vm1791_vm12 = vcmp.lt.f32.partialorder %v1790_v55, 1e-30 }
 0xa50   :  { %v1792_v56 = vsel %vm1791_vm12, 1e-30, %v1784_v54 }
 0xa51   :  { %2644 = vrcp.f32 %v1792_v56  ;;  %v1805_v2 = vand.u32 2147483648, %v1792_v56  ;;  %v1803_v52 = vand.u32 2147483647, %v1792_v56  ;;  %vm1799_vm15 = vweird.f32 %v1792_v56 }
 0xa53   :  { %v1806_v5 = vor.u32 1.1754944e-38, %v1805_v2  ;;  %vm1804_vm2 = vcmp.eq.f32.partialorder %v1803_v52, 8.507059e+37 }
 0xa57   :  { %v2645_v58 = vpop.eup %2644 }
 0xa58   :  { %v1795_v61 = vmul.f32 %v2645_v58, %v1792_v56  ;;  %vm1800_vm14 = vweird.f32 %v2645_v58 }
 0xa59   :  { %vm1801_vm0 = vmor %vm1799_vm15, %vm1800_vm14 }
 0xa5a   :  { %v1796_v62 = vsub.f32 1.0, %v1795_v61 }
 0xa5c   :  { %v1797_v3 = vmul.f32 %v2645_v58, %v1796_v62 }
 0xa5e   :  { %v1798_v4 = vadd.f32 %v2645_v58, %v1797_v3 }
 0xa60   :  { %v1802_v9 = vsel %vm1801_vm0, %v2645_v58, %v1798_v4 }
 0xa61   :  { %v1807_v11 = vsel %vm1804_vm2, %v1806_v5, %v1802_v9 }
 0xa62   :  { %v1808_v12 = vmul.f32 -1.0, %v1807_v11 }
 0xa64   :  { %v1809_v13 = vsel %vm1793_vm3, %v1808_v12, %v1784_v54 }
 0xa65   :  { %v1810_v14 = vmul.f32 0.70710677, %v1809_v13 }
 0xa67   :  { %1814 = vperm.xlu2 %2527, %v1810_v14  }
 0xa6f   :  { %1465 = vperm.xlu2 %2527, %v1463_v30  }
 0xa96   :  { %v1440_v30 = vpop.permute.xlu0 %1439 }
 0xa97   :  { %v1442_v8 = vmul.f32 %v1440_v30, %v1436_v21 }
 0xaae   :  { %v1460_v25 = vpop.permute.xlu1 %1459 }
 0xaaf   :  { %v1462_v37 = vmul.f32 %v1460_v25, %v1442_v8 }
 0xac1   :  { %v1815_v49 = vpop.permute.xlu2 %1814 }
 0xac2   :  { %v1817_v27 = vmul.f32 %v1815_v49, %v1811_v23 }
 0xac4   :  { %v1843_v31 = vpack.c.bf16 %v1817_v27, %v1817_v27  ;;  %v1827_v34 = vmul.f32 %v1817_v27, %v1817_v27 }
 0xac6   :  { %2442 = vmatmul.msk.bf16.vlgmr.msra.gmra.mxu3 %vm342_vm10, %v1843_v31  ;;  %v1828_v36 = vsel %vm342_vm10, %v1827_v34, 0.0 }
 0xac7   :  { %1829 = vadd.xlane.f32.xlu2 %v1828_v36 }
 0xac9   :  { %v1466_v38 = vpop.permute.xlu2 %1465 }
 0xaca   :  { %vm1467_vm4 = vcmp.eq.s32.totalorder %v1466_v38, 1 }
 0xacb   :  { %v1468_v29 = vsel %vm1467_vm4, %v1462_v37, %v1442_v8 }
 0xacc   :  { %v1494_v48 = vpack.c.bf16 %v1468_v29, %v1468_v29  ;;  %v1478_v44 = vmul.f32 %v1468_v29, %v1468_v29 }
 0xace   :  { %2420 = vmatmul.msk.bf16.vlgmr.msrb.gmra.mxu1 %vm342_vm10, %v1494_v48  ;;  %v1479_v39 = vsel %vm342_vm10, %v1478_v44, 0.0 }
 0xacf   :  { %1480 = vadd.xlane.f32.xlu1 %v1479_v39 }
 0xad7   :  { %1597 = vadd.xlane.f32.xlu1 %v1596_v33 }
 0xadf   :  { %2020 = vadd.xlane.f32.xlu1 %v2019_v47 }
 0xb3a   :  { %v1830_v45 = vpop.xlane.xlu2 %1829 }
 0xb3b   :  { %v1831_v63 = vmax.f32 %v1830_v45, 1e-30 }
 0xb3d   :  { %2646 = vrsqrt.f32 %v1831_v63  ;;  %vm1838_vm6 = vweird.f32 %v1831_v63 }
 0xb42   :  { %v1481_v3 = vpop.xlane.xlu1 %1480 }
 0xb43   :  { %v2647_v17 = vpop.eup %2646  ;;  %v1482_v4 = vmax.f32 %v1481_v3, 1e-30 }
 0xb44   :  { %v1833_v53 = vmul.f32 %v2647_v17, %v1831_v63  ;;  %vm1839_vm10 = vweird.f32 %v2647_v17 }
 0xb45   :  { %vm1840_vm9 = vmor %vm1838_vm6, %vm1839_vm10 }
 0xb46   :  { %v1834_v54 = vmul.f32 %v2647_v17, %v1833_v53 }
 0xb48   :  { %v1835_v55 = vmul.f32 0.5, %v1834_v54 }
 0xb49   :  { %v3143_v28 = vpop.f32.mrf.mxu3 }
 0xb4a   :  { %v1884_v50 = vmul.f32 %v3143_v28, %v3143_v28  ;;  %v1836_v56 = vsub.f32 1.5, %v1835_v55 }
 0xb4b   :  { %v3147_v26 = vpop.f32.mrf.mxu1 }
 0xb4c   :  { %v1535_v40 = vmul.f32 %v3147_v26, %v3147_v26  ;;  %v1885_v42 = vsel %vm252_vm1, %v1884_v50, 0.0  ;;  %v1837_v57 = vmul.f32 %v2647_v17, %v1836_v56 }
 0xb4d   :  { %1886 = vadd.xlane.f32.xlu0 %v1885_v42 }
 0xb4e   :  { %v1536_v43 = vsel %vm252_vm1, %v1535_v40, 0.0  ;;  %v3153_v58 = vsel %vm1840_vm9, %v2647_v17, %v1837_v57  ;;  %vm1489_vm9 = vweird.f32 %v1482_v4 }
 0xb4f   :  { %1537 = vadd.xlane.f32.xlu2 %v1536_v43  ;;  %v1842_v60 = vmul.f32 %v3153_v58, %v1831_v63 }
 0xb51   :  { %v1882_v32 = vpop.f32.mrf.mxu3  ;;  %v3156_v61 = vmul.f32 1.4142135, %v1842_v60 }
 0xb53   :  { %v1533_v51 = vpop.f32.mrf.mxu1  ;;  %v1923_v62 = vadd.f32 1.0, %v3156_v61  ;;  %v1906_v0 = vmax.f32 %v3156_v61, 1e-15  ;;  %vm1902_vm2 = vcmp.gt.f32.partialorder %v3156_v61, 2.4142137  ;;  %v2443_v31 = vadd.f32 -1.0, %v3156_v61 }
 0xb54   :  { %vm1903_vm4 = vcmp.gt.f32.partialorder %v3156_v61, 0.41421357  ;;  %vm1904_vm5 = vmxor %vm1902_vm2, %vm2826_vm13 }
 0xb55   :  { %2648 = vrcp.f32 %v1923_v62  ;;  %v1935_v15 = vand.u32 2147483648, %v1923_v62  ;;  %vm1929_vm8 = vweird.f32 %v1923_v62  ;;  %v1933_v41 = vand.u32 2147483647, %v1923_v62  ;;  %vm3166_vm10 = vmand %vm1903_vm4, %vm1904_vm5 }
 0xb56   :  { %2650 = vrcp.f32 %v1906_v0  ;;  %v1918_v7 = vand.u32 2147483648, %v1906_v0  ;;  %vm1912_vm14 = vweird.f32 %v1906_v0  ;;  %v1916_v20 = vand.u32 2147483647, %v1906_v0 }
 0xb57   :  { %2652 = vrsqrt.f32 %v1482_v4  ;;  %v1936_v22 = vor.u32 1.1754944e-38, %v1935_v15  ;;  %vm1934_vm0 = vcmp.eq.f32.partialorder %v1933_v41, 8.507059e+37 }
 0xb58   :  { %v1919_v30 = vor.u32 1.1754944e-38, %v1918_v7  ;;  %vm1917_vm3 = vcmp.eq.f32.partialorder %v1916_v20, 8.507059e+37 }
 0xb5b   :  { %v2649_v2 = vpop.eup %2648 }
 0xb5c   :  { %v2651_v52 = vpop.eup %2650  ;;  %v1925_v59 = vmul.f32 %v2649_v2, %v1923_v62  ;;  %vm1930_vm7 = vweird.f32 %v2649_v2 }
 0xb5d   :  { %v1908_v6 = vmul.f32 %v2651_v52, %v1906_v0  ;;  %v2653_v13 = vpop.eup %2652  ;;  %vm1913_vm11 = vweird.f32 %v2651_v52  ;;  %vm1931_vm12 = vmor %vm1929_vm8, %vm1930_vm7 }
 0xb5e   :  { %v1926_v5 = vsub.f32 1.0, %v1925_v59  ;;  %v1484_v16 = vmul.f32 %v2653_v13, %v1482_v4  ;;  %vm1914_vm15 = vmor %vm1912_vm14, %vm1913_vm11  ;;  %vm1490_vm6 = vweird.f32 %v2653_v13 }
 0xb5f   :  { %v1909_v9 = vsub.f32 1.0, %v1908_v6  ;;  %vm1491_vm7 = vmor %vm1489_vm9, %vm1490_vm6  ;;  %v1941_v6 = vsel %vm3166_vm10, 0.7853982, %v2827_v24 }
 0xb60   :  { %v1927_v11 = vmul.f32 %v2649_v2, %v1926_v5  ;;  %v1485_v23 = vmul.f32 %v2653_v13, %v1484_v16  ;;  %v1942_v15 = vsel %vm1902_vm2, 1.5707964, %v1941_v6 }
 0xb61   :  { %v1910_v12 = vmul.f32 %v2651_v52, %v1909_v9 }
 0xb62   :  { %v1928_v14 = vadd.f32 %v2649_v2, %v1927_v11  ;;  %v1486_v25 = vmul.f32 0.5, %v1485_v23 }
 0xb63   :  { %v1911_v19 = vadd.f32 %v2651_v52, %v1910_v12 }
 0xb64   :  { %v1932_v46 = vsel %vm1931_vm12, %v2649_v2, %v1928_v14  ;;  %v1487_v38 = vsub.f32 1.5, %v1486_v25 }
 0xb65   :  { %v1915_v49 = vsel %vm1914_vm15, %v2651_v52, %v1911_v19  ;;  %v1937_v27 = vsel %vm1934_vm0, %v1936_v22, %v1932_v46 }
 0xb66   :  { %v1920_v34 = vsel %vm1917_vm3, %v1919_v30, %v1915_v49  ;;  %v1938_v21 = vmul.f32 %v2443_v31, %v1937_v27  ;;  %v1488_v48 = vmul.f32 %v2653_v13, %v1487_v38 }
 0xb67   :  { %v1921_v8 = vmul.f32 -1.0, %v1920_v34 }
 0xb68   :  { %v1939_v37 = vsel %vm3166_vm10, %v1938_v21, %v3156_v61  ;;  %v1492_v39 = vsel %vm1491_vm7, %v2653_v13, %v1488_v48 }
 0xb69   :  { %v1940_v29 = vsel %vm1902_vm2, %v1921_v8, %v1939_v37  ;;  %v1493_v10 = vmul.f32 %v1492_v39, %v1482_v4 }
 0xb6a   :  { %v1943_v44 = vmul.f32 %v1940_v29, %v1940_v29 }
 0xb6b   :  { %v1552_v50 = vmul.f32 1.4142135, %v1493_v10 }
 0xb6c   :  { %v1944_v1 = vmul.f32 0.080537446, %v1943_v44 }
 0xb6d   :  { %v2421_v40 = vclamps-f32 %v1552_v50, 0.9999999 }
 0xb6e   :  { %v2444_v18 = vadd.f32 -0.13877685, %v1944_v1 }
 0xb6f   :  { %v1555_v42 = vadd.f32 1.0, %v2421_v40  ;;  %v1558_v43 = vsub.f32 1.0, %v2421_v40 }
 0xb70   :  { %v1946_v33 = vmul.f32 %v2444_v18, %v1943_v44 }
 0xb71   :  { %2654 = vlog2.f32 %v1555_v42  ;;  %v2541_v42 = vld [vmem:[#allocation8 + $0x30] ss:$0 sm:$0xff] }
 0xb72   :  { %v1947_v35 = vadd.f32 0.19977711, %v1946_v33  ;;  %2656 = vlog2.f32 %v1558_v43 }
 0xb74   :  { %v1948_v45 = vmul.f32 %v1947_v35, %v1943_v44 }
 0xb76   :  { %v2445_v17 = vadd.f32 -0.3333295, %v1948_v45 }
 0xb77   :  { %v2655_v53 = vpop.eup %2654 }
 0xb78   :  { %v1950_v54 = vmul.f32 %v2445_v17, %v1943_v44  ;;  %v2657_v55 = vpop.eup %2656  ;;  %v1557_v2 = vmul.f32 0.6931472, %v2655_v53 }
 0xb79   :  { %v1560_v3 = vmul.f32 0.6931472, %v2657_v55 }
 0xb7a   :  { %v1951_v62 = vmul.f32 %v1950_v54, %v1940_v29 }
 0xb7b   :  { %v1561_v12 = vsub.f32 %v1557_v2, %v1560_v3 }
 0xb7c   :  { %v1952_v5 = vadd.f32 %v1951_v62, %v1940_v29 }
 0xb7d   :  { %v1562_v7 = vmul.f32 0.5, %v1561_v12 }
 0xb7e   :  { %v1953_v41 = vadd.f32 %v1952_v5, %v1942_v15 }
 0xb7f   :  { %v1563_v30 = vmul.f32 0.70710677, %v1562_v7 }
 0xb80   :  { %v1954_v49 = vmul.f32 0.70710677, %v1953_v41 }
 0xbc0   :  { %v3175_v47 = vpop.xlane.xlu0 %1886 }
 0xbc1   :  { %v1888_v32 = vmax.f32 %v3175_v47, 1e-30 }
 0xbc2   :  { %v3178_v63 = vpop.xlane.xlu2 %1537 }
 0xbc3   :  { %v1539_v51 = vmax.f32 %v3178_v63, 1e-30  ;;  %2658 = vrsqrt.f32 %v1888_v32  ;;  %vm1895_vm12 = vweird.f32 %v1888_v32  ;;  %vm1570_vm2 = vcmp.le.f32.partialorder %v3178_v63, 0.0 }
 0xbc5   :  { %2660 = vrsqrt.f32 %v1539_v51  ;;  %vm1546_vm15 = vweird.f32 %v1539_v51 }
 0xbc9   :  { %v2659_v56 = vpop.eup %2658 }
 0xbca   :  { %v1890_v60 = vmul.f32 %v2659_v56, %v1888_v32  ;;  %vm1896_vm8 = vweird.f32 %v2659_v56 }
 0xbcb   :  { %v2661_v57 = vpop.eup %2660  ;;  %vm1897_vm14 = vmor %vm1895_vm12, %vm1896_vm8 }
 0xbcc   :  { %v1541_v0 = vmul.f32 %v2661_v57, %v1539_v51  ;;  %v1891_v52 = vmul.f32 %v2659_v56, %v1890_v60  ;;  %vm1547_vm11 = vweird.f32 %v2661_v57 }
 0xbcd   :  { %vm1548_vm0 = vmor %vm1546_vm15, %vm1547_vm11 }
 0xbce   :  { %v1542_v59 = vmul.f32 %v2661_v57, %v1541_v0  ;;  %v1892_v4 = vmul.f32 0.5, %v1891_v52 }
 0xbd0   :  { %v1543_v9 = vmul.f32 0.5, %v1542_v59  ;;  %v1893_v11 = vsub.f32 1.5, %v1892_v4 }
 0xbd2   :  { %v1544_v13 = vsub.f32 1.5, %v1543_v9  ;;  %v1894_v14 = vmul.f32 %v2659_v56, %v1893_v11 }
 0xbd4   :  { %v1545_v16 = vmul.f32 %v2661_v57, %v1544_v13  ;;  %v3186_v19 = vsel %vm1897_vm14, %v2659_v56, %v1894_v14  ;;  %vm2012_vm14 = vcmp.le.f32.partialorder %v3175_v47, 0.0 }
 0xbd5   :  { %v1899_v46 = vmul.f32 %v3186_v19, %v1888_v32 }
 0xbd6   :  { %v1549_v20 = vsel %vm1548_vm0, %v2661_v57, %v1545_v16 }
 0xbd7   :  { %v1550_v22 = vmul.f32 %v1549_v20, %v1539_v51  ;;  %v1900_v23 = vmul.f32 %v1899_v46, %v3153_v58  ;;  %v1568_v2 = vmul.f32 %v1549_v20, %v3147_v26 }
 0xbd9   :  { %v1551_v27 = vmul.f32 %v1550_v22, %v1492_v39  ;;  %v1955_v31 = vmul.f32 %v1954_v49, %v1900_v23 }
 0xbdb   :  { %v1564_v61 = vmul.f32 %v1563_v30, %v1551_v27  ;;  %v1956_v34 = vmul.f32 1.4142135, %v1955_v31 }
 0xbdd   :  { %v1565_v21 = vmul.f32 1.4142135, %v1564_v61  ;;  %v1957_v25 = vmul.f32 1.2732395, %v1956_v34 }
 0xbdf   :  { %2662 = vtanh.f32 %v1565_v21  ;;  %v1958_v36 = vfloor.f32 %v1957_v25 }
 0xbe1   :  { %v1959_v8 = vmul.f32 0.5, %v1958_v36 }
 0xbe3   :  { %v1960_v37 = vfloor.f32 %v1959_v8 }
 0xbe5   :  { %v2663_v38 = vpop.eup %2662  ;;  %v1961_v29 = vmul.f32 2.0, %v1960_v37 }
 0xbe6   :  { %v1567_v48 = vmul.f32 0.70710677, %v2663_v38 }
 0xbe7   :  { %v1962_v44 = vsub.f32 %v1958_v36, %v1961_v29 }
 0xbe8   :  { %v1574_v1 = vmul.f32 %v1567_v48, %v1567_v48  ;;  %v1569_v59 = vmul.f32 %v1568_v2, %v1567_v48 }
 0xbe9   :  { %v1963_v58 = vadd.f32 %v1962_v44, %v1958_v36 }
 0xbea   :  { %v1575_v39 = vsel %vm1570_vm2, 0.0, %v1574_v1  ;;  %v1573_v12 = vsel %vm1570_vm2, 0.0, %v1569_v59 }
 0xbeb   :  { %v1576_v10 = vmax.f32 %v1575_v39, 1e-30  ;;  %v1964_v18 = vmul.f32 0.78515625, %v1963_v58  ;;  %v1966_v33 = vmul.f32 0.00024187565, %v1963_v58  ;;  %v1968_v45 = vmul.f32 3.774895e-08, %v1963_v58 }
 0xbec   :  { %v1985_v27 = vmul.f32 0.25, %v1963_v58  ;;  %v1984_v37 = vmul.f32 0.5, %v1963_v58 }
 0xbed   :  { %2664 = vrsqrt.f32 %v1576_v10  ;;  %vm1587_vm3 = vcmp.gt.f32.partialorder %v1576_v10, 0.496008  ;;  %v1965_v50 = vsub.f32 %v1956_v34, %v1964_v18  ;;  %vm1583_vm5 = vweird.f32 %v1576_v10 }
 0xbee   :  { %v3194_v40 = vsel %vm1587_vm3, 0.496008, %v1575_v39  ;;  %v1986_v31 = vfloor.f32 %v1985_v27 }
 0xbef   :  { %v1610_v35 = vmul.f32 -2.0, %v3194_v40  ;;  %v1967_v43 = vsub.f32 %v1965_v50, %v1966_v33  ;;  %v2010_v50 = vmul.f32 %v3186_v19, %v3143_v28  ;;  %v2542_v33 = vld [vmem:[#allocation8 + $0x60] ss:$0 sm:$0xff] }
 0xbf0   :  { %v1987_v21 = vmul.f32 2.0, %v1986_v31 }
 0xbf1   :  { %v1611_v32 = vadd.f32 1.0, %v1610_v35  ;;  %v1969_v51 = vsub.f32 %v1967_v43, %v1968_v45 }
 0xbf2   :  { %v1988_v29 = vsub.f32 %v1984_v37, %v1987_v21 }
 0xbf3   :  { %v2665_v17 = vpop.eup %2664  ;;  %v3197_v53 = vmul.f32 %v2541_v42, %v1611_v32  ;;  %v1970_v54 = vmul.f32 %v1969_v51, %v1969_v51 }
 0xbf4   :  { %v1578_v55 = vmul.f32 %v2665_v17, %v1576_v10  ;;  %vm1584_vm4 = vweird.f32 %v2665_v17  ;;  %vm1992_vm12 = vcmp.gt.f32.partialorder %v1988_v29, 0.5 }
 0xbf5   :  { %v1971_v56 = vmul.f32 0.009385402, %v1970_v54  ;;  %vm1585_vm10 = vmor %vm1583_vm5, %vm1584_vm4 }
 0xbf6   :  { %v1579_v57 = vmul.f32 %v2665_v17, %v1578_v55  ;;  %v1598_v55 = vpop.xlane.xlu1 %1597 }
 0xbf7   :  { %v1972_v60 = vadd.f32 0.0031199222, %v1971_v56  ;;  %v1614_v56 = vmul.f32 4.0, %v3194_v40  ;;  %v1606_v47 = vmul.f32 -2.0, %v1598_v55 }
 0xbf8   :  { %v1580_v62 = vmul.f32 0.5, %v1579_v57  ;;  %v1615_v57 = vperm.slane %v1598_v55, 0 }
 0xbf9   :  { %v1973_v0 = vmul.f32 %v1972_v60, %v1970_v54 }
 0xbfa   :  { %v1581_v3 = vsub.f32 1.5, %v1580_v62  ;;  %v1616_v19 = vmul.f32 %v1615_v57, %v1614_v56 }
 0xbfb   :  { %v1974_v52 = vadd.f32 0.024430135, %v1973_v0 }
 0xbfc   :  { %v1582_v4 = vmul.f32 %v2665_v17, %v1581_v3  ;;  %v1607_v3 = vperm.slane %v1606_v47, 0 }
 0xbfd   :  { %v1975_v6 = vmul.f32 %v1974_v52, %v1970_v54 }
 0xbfe   :  { %v1586_v5 = vsel %vm1585_vm10, %v2665_v17, %v1582_v4 }
 0xbff   :  { %v1588_v9 = vmul.f32 0.70427835, %v1586_v5  ;;  %v1976_v11 = vadd.f32 0.05341128, %v1975_v6 }
 0xc01   :  { %v1589_v13 = vmul.f32 %v1588_v9, %v1573_v12  ;;  %v1977_v14 = vmul.f32 %v1976_v11, %v1970_v54 }
 0xc03   :  { %v3203_v15 = vsel %vm1587_vm3, %v1589_v13, %v1573_v12  ;;  %v1978_v26 = vadd.f32 0.133388, %v1977_v14 }
 0xc04   :  { %v1600_v41 = vmul.f32 %v2541_v42, %v3203_v15 }
 0xc05   :  { %v1979_v16 = vmul.f32 %v1978_v26, %v1970_v54 }
 0xc06   :  { %v1601_v7 = vsel %vm252_vm1, %v1600_v41, 0.0 }
 0xc07   :  { %1602 = vadd.xlane.f32.xlu2 %v1601_v7  ;;  %v1980_v46 = vadd.f32 0.33333156, %v1979_v16 }
 0xc09   :  { %v1981_v20 = vmul.f32 %v1980_v46, %v1970_v54 }
 0xc0b   :  { %v1982_v22 = vmul.f32 %v1981_v20, %v1969_v51  ;;  %v2021_v20 = vpop.xlane.xlu1 %2020 }
 0xc0d   :  { %v1983_v23 = vadd.f32 %v1982_v22, %v1969_v51 }
 0xc0f   :  { %v1989_v49 = vand.u32 2147483647, %v1983_v23 }
 0xc11   :  { %vm1990_vm6 = vcmp.lt.f32.partialorder %v1989_v49, 1e-30 }
 0xc12   :  { %v1991_v63 = vsel %vm1990_vm6, 1e-30, %v1983_v23 }
 0xc13   :  { %2666 = vrcp.f32 %v1991_v63  ;;  %v2004_v25 = vand.u32 2147483648, %v1991_v63  ;;  %v2002_v8 = vand.u32 2147483647, %v1991_v63  ;;  %vm1998_vm7 = vweird.f32 %v1991_v63 }
 0xc15   :  { %v2005_v48 = vor.u32 1.1754944e-38, %v2004_v25  ;;  %vm2003_vm11 = vcmp.eq.f32.partialorder %v2002_v8, 8.507059e+37 }
 0xc19   :  { %v2667_v30 = vpop.eup %2666 }
 0xc1a   :  { %v1994_v61 = vmul.f32 %v2667_v30, %v1991_v63  ;;  %vm1999_vm9 = vweird.f32 %v2667_v30 }
 0xc1b   :  { %vm2000_vm8 = vmor %vm1998_vm7, %vm1999_vm9 }
 0xc1c   :  { %v1995_v34 = vsub.f32 1.0, %v1994_v61  ;;  %v2029_v61 = vmul.f32 2.0, %v2021_v20 }
 0xc1e   :  { %v1996_v36 = vmul.f32 %v2667_v30, %v1995_v34 }
 0xc20   :  { %v1997_v38 = vadd.f32 %v2667_v30, %v1996_v36 }
 0xc22   :  { %v2001_v44 = vsel %vm2000_vm8, %v2667_v30, %v1997_v38 }
 0xc23   :  { %v2006_v1 = vsel %vm2003_vm11, %v2005_v48, %v2001_v44 }
 0xc24   :  { %v2007_v39 = vmul.f32 -1.0, %v2006_v1 }
 0xc26   :  { %v2008_v10 = vsel %vm1992_vm12, %v2007_v39, %v1983_v23 }
 0xc27   :  { %v2009_v18 = vmul.f32 0.70710677, %v2008_v10 }
 0xc29   :  { %v2011_v35 = vmul.f32 %v2010_v50, %v2009_v18  ;;  %v2016_v42 = vmul.f32 %v2009_v18, %v2009_v18 }
 0xc2b   :  { %v2015_v58 = vsel %vm2012_vm14, 0.0, %v2011_v35  ;;  %v2017_v43 = vsel %vm2012_vm14, 0.0, %v2016_v42 }
 0xc2c   :  { %v2033_v45 = vmul.f32 2.0, %v2017_v43  ;;  %v2023_v32 = vmul.f32 %v2542_v33, %v2015_v58  ;;  %v2037_v22 = vmul.f32 4.0, %v2017_v43 }
 0xc2e   :  { %v2034_v51 = vadd.f32 1.0, %v2033_v45  ;;  %v2024_v17 = vsel %vm252_vm1, %v2023_v32, 0.0 }
 0xc2f   :  { %2025 = vadd.xlane.f32.xlu2 %v2024_v17 }
 0xc30   :  { %v2035_v54 = vmul.f32 %v2542_v33, %v2034_v51 }
 0xc7a   :  { %v1603_v60 = vpop.xlane.xlu2 %1602 }
 0xc7b   :  { %v1604_v28 = vmul.f32 -4.0, %v1603_v60 }
 0xc7d   :  { %v1605_v62 = vsub.f32 1.0, %v1604_v28 }
 0xc7f   :  { %v1617_v0 = vadd.f32 %v1616_v19, %v1605_v62  ;;  %v1608_v59 = vsub.f32 %v1605_v62, %v1607_v3 }
 0xc81   :  { %v1618_v2 = vmax.f32 %v1617_v0, 1e-15  ;;  %v1609_v9 = vmul.f32 %v1608_v59, %v3203_v15  ;;  %v2038_v15 = vperm.slane %v2021_v20, 0  ;;  %v2514_v0 = vld [vmem:[#allocation7 + $0x178] sm:$0xff] }
 0xc82   :  { %2161 = vmatpush.bf16.msrb.mxu2 %v2514_v0 }
 0xc83   :  { %2668 = vrcp.f32 %v1618_v2  ;;  %v1630_v5 = vand.u32 2147483648, %v1618_v2  ;;  %v1628_v40 = vand.u32 2147483647, %v1618_v2  ;;  %vm1624_vm0 = vweird.f32 %v1618_v2 }
 0xc84   :  { %v1613_v14 = vadd.f32 %v3197_v53, %v1609_v9  ;;  %v2039_v63 = vmul.f32 %v2038_v15, %v2037_v22  ;;  %v2030_v53 = vperm.slane %v2029_v61, 0 }
 0xc85   :  { %v1631_v13 = vor.u32 1.1754944e-38, %v1630_v5  ;;  %vm1629_vm3 = vcmp.eq.f32.partialorder %v1628_v40, 8.507059e+37 }
 0xc89   :  { %v2669_v52 = vpop.eup %2668 }
 0xc8a   :  { %v1620_v4 = vmul.f32 %v2669_v52, %v1618_v2  ;;  %vm1625_vm15 = vweird.f32 %v2669_v52  ;;  %v2513_v2 = vld [vmem:[#allocation7 + $0x170] sm:$0xff] }
 0xc8b   :  { %vm1626_vm2 = vmor %vm1624_vm0, %vm1625_vm15  ;;  %2162 = vmatpush.bf16.msrb.mxu2 %v2513_v2  ;;  %v2511_v2 = vld [vmem:[#allocation7 + $0x160] sm:$0xff] }
 0xc8c   :  { %v1621_v6 = vsub.f32 1.0, %v1620_v4 }
 0xc8e   :  { %v1622_v11 = vmul.f32 %v2669_v52, %v1621_v6 }
 0xc90   :  { %v1623_v12 = vadd.f32 %v2669_v52, %v1622_v11 }
 0xc92   :  { %v1627_v26 = vsel %vm1626_vm2, %v2669_v52, %v1623_v12 }
 0xc93   :  { %v1632_v41 = vsel %vm1629_vm3, %v1631_v13, %v1627_v26 }
 0xc94   :  { %v1633_v16 = vmul.f32 %v1632_v41, %v1613_v14 }
 0xc96   :  { %v1634_v7 = vmul.f32 %v1633_v16, %v1633_v16 }
 0xc98   :  { %v1635_v46 = vsel %vm252_vm1, %v1634_v7, 0.0 }
 0xc99   :  { %1636 = vadd.xlane.f32.xlu0 %v1635_v46 }
 0xca2   :  { %v2026_v23 = vpop.xlane.xlu2 %2025 }
 0xca3   :  { %v2027_v49 = vmul.f32 4.0, %v2026_v23 }
 0xca5   :  { %v2028_v27 = vsub.f32 1.0, %v2027_v49 }
 0xca7   :  { %v2040_v30 = vadd.f32 %v2039_v63, %v2028_v27  ;;  %v2031_v21 = vsub.f32 %v2028_v27, %v2030_v53 }
 0xca9   :  { %v2041_v31 = vmax.f32 %v2040_v30, 1e-15  ;;  %v2032_v37 = vmul.f32 %v2031_v21, %v2015_v58 }
 0xcab   :  { %2670 = vrcp.f32 %v2041_v31  ;;  %v2053_v8 = vand.u32 2147483648, %v2041_v31  ;;  %v2051_v29 = vand.u32 2147483647, %v2041_v31  ;;  %vm2047_vm5 = vweird.f32 %v2041_v31 }
 0xcac   :  { %v2036_v1 = vadd.f32 %v2035_v54, %v2032_v37 }
 0xcad   :  { %v2054_v44 = vor.u32 1.1754944e-38, %v2053_v8  ;;  %vm2052_vm6 = vcmp.eq.f32.partialorder %v2051_v29, 8.507059e+37 }
 0xcb1   :  { %v2671_v34 = vpop.eup %2670 }
 0xcb2   :  { %v2043_v25 = vmul.f32 %v2671_v34, %v2041_v31  ;;  %vm2048_vm4 = vweird.f32 %v2671_v34 }
 0xcb3   :  { %vm2049_vm10 = vmor %vm2047_vm5, %vm2048_vm4 }
 0xcb4   :  { %v2044_v36 = vsub.f32 1.0, %v2043_v25 }
 0xcb6   :  { %v2045_v38 = vmul.f32 %v2671_v34, %v2044_v36 }
 0xcb8   :  { %v2046_v48 = vadd.f32 %v2671_v34, %v2045_v38 }
 0xcba   :  { %v2050_v39 = vsel %vm2049_vm10, %v2671_v34, %v2046_v48 }
 0xcbb   :  { %v2055_v10 = vsel %vm2052_vm6, %v2054_v44, %v2050_v39 }
 0xcbc   :  { %v2056_v18 = vmul.f32 %v2055_v10, %v2036_v1 }
 0xcbe   :  { %v3215_v50 = vmax.f32 %v2056_v18, 0.0 }
 0xcc0   :  { %v2058_v33 = vmul.f32 %v3215_v50, %v3215_v50 }
 0xcc2   :  { %v2059_v35 = vsel %vm252_vm1, %v2058_v33, 0.0 }
 0xcc3   :  { %2060 = vadd.xlane.f32.xlu1 %v2059_v35 }
 0xd0c   :  { %v1637_v42 = vpop.xlane.xlu0 %1636 }
 0xd0d   :  { %v1638_v58 = vmax.f32 %v1637_v42, 1e-30 }
 0xd0f   :  { %2672 = vrsqrt.f32 %v1638_v58  ;;  %vm1645_vm7 = vweird.f32 %v1638_v58  ;;  %vm1649_vm11 = vcmp.gt.f32.partialorder %v1638_v58, 0.496008 }
 0xd15   :  { %v2673_v43 = vpop.eup %2672 }
 0xd16   :  { %v1640_v45 = vmul.f32 %v2673_v43, %v1638_v58  ;;  %vm1646_vm9 = vweird.f32 %v2673_v43 }
 0xd17   :  { %vm1647_vm8 = vmor %vm1645_vm7, %vm1646_vm9 }
 0xd18   :  { %v1641_v32 = vmul.f32 %v2673_v43, %v1640_v45 }
 0xd1a   :  { %v1642_v51 = vmul.f32 0.5, %v1641_v32 }
 0xd1c   :  { %v1643_v17 = vsub.f32 1.5, %v1642_v51 }
 0xd1e   :  { %v1644_v54 = vmul.f32 %v2673_v43, %v1643_v17 }
 0xd20   :  { %v1648_v55 = vsel %vm1647_vm8, %v2673_v43, %v1644_v54 }
 0xd21   :  { %v1650_v56 = vmul.f32 0.70427835, %v1648_v55 }
 0xd23   :  { %v1651_v57 = vmul.f32 %v1650_v56, %v1633_v16 }
 0xd25   :  { %v1654_v60 = vsel %vm1649_vm11, %v1651_v57, %v1633_v16 }
 0xd26   :  { %v3220_v28 = vmax.f32 %v1654_v60, 0.0 }
 0xd28   :  { %v1656_v19 = vmul.f32 %v3220_v28, %v3220_v28 }
 0xd2a   :  { %v1657_v62 = vsel %vm252_vm1, %v1656_v19, 0.0 }
 0xd2b   :  { %1658 = vadd.xlane.f32.xlu2 %v1657_v62  ;;  %v2512_v62 = vld [vmem:[#allocation7 + $0x168] sm:$0xff] }
 0xd2c   :  { %2189 = vmatpush.bf16.msra.mxu0 %v2512_v62 }
 0xd30   :  { %2190 = vmatpush.bf16.msra.mxu0 %v2511_v2 }
 0xd36   :  { %v2061_v47 = vpop.xlane.xlu1 %2060 }
 0xd37   :  { %v2062_v3 = vmax.f32 %v2061_v47, 1e-30 }
 0xd39   :  { %2674 = vrsqrt.f32 %v2062_v3  ;;  %vm2069_vm14 = vweird.f32 %v2062_v3 }
 0xd3f   :  { %v2675_v52 = vpop.eup %2674 }
 0xd40   :  { %v2064_v59 = vmul.f32 %v2675_v52, %v2062_v3  ;;  %vm2070_vm12 = vweird.f32 %v2675_v52 }
 0xd41   :  { %vm2071_vm15 = vmor %vm2069_vm14, %vm2070_vm12 }
 0xd42   :  { %v2065_v4 = vmul.f32 %v2675_v52, %v2064_v59 }
 0xd44   :  { %v2066_v6 = vmul.f32 0.5, %v2065_v4 }
 0xd46   :  { %v2067_v5 = vsub.f32 1.5, %v2066_v6 }
 0xd48   :  { %v2068_v9 = vmul.f32 %v2675_v52, %v2067_v5 }
 0xd4a   :  { %v2072_v11 = vsel %vm2071_vm15, %v2675_v52, %v2068_v9 }
 0xd4b   :  { %v2073_v40 = vmul.f32 %v2072_v11, %v2062_v3  ;;  %v2128_v17 = vmul.f32 %v2072_v11, %v3215_v50 }
 0xd4d   :  { %v2074_v12 = vmul.f32 1.4142135, %v2073_v40 }
 0xd4f   :  { %v2079_v13 = vmax.f32 %v2074_v12, 1e-15  ;;  %v2096_v14 = vadd.f32 1.0, %v2074_v12  ;;  %vm2075_vm3 = vcmp.gt.f32.partialorder %v2074_v12, 2.4142137  ;;  %v2446_v34 = vadd.f32 -1.0, %v2074_v12 }
 0xd50   :  { %vm2076_vm7 = vcmp.gt.f32.partialorder %v2074_v12, 0.41421357  ;;  %vm2077_vm8 = vmxor %vm2075_vm3, %vm2826_vm13 }
 0xd51   :  { %2676 = vrcp.f32 %v2079_v13  ;;  %v2091_v20 = vand.u32 2147483648, %v2079_v13  ;;  %v2089_v23 = vand.u32 2147483647, %v2079_v13  ;;  %v2108_v49 = vand.u32 2147483648, %v2096_v14  ;;  %vm2078_vm12 = vmand %vm2076_vm7, %vm2077_vm8 }
 0xd52   :  { %2678 = vrcp.f32 %v2096_v14  ;;  %v2106_v27 = vand.u32 2147483647, %v2096_v14  ;;  %vm2085_vm4 = vweird.f32 %v2079_v13  ;;  %vm2102_vm10 = vweird.f32 %v2096_v14 }
 0xd53   :  { %v2092_v31 = vor.u32 1.1754944e-38, %v2091_v20  ;;  %vm2090_vm6 = vcmp.eq.f32.partialorder %v2089_v23, 8.507059e+37  ;;  %v2109_v21 = vor.u32 1.1754944e-38, %v2108_v49  ;;  %v2114_v58 = vsel %vm2078_vm12, 0.7853982, %v2827_v24 }
 0xd54   :  { %vm2107_vm11 = vcmp.eq.f32.partialorder %v2106_v27, 8.507059e+37  ;;  %v2115_v32 = vsel %vm2075_vm3, 1.5707964, %v2114_v58 }
 0xd57   :  { %v2677_v26 = vpop.eup %2676 }
 0xd58   :  { %v2679_v41 = vpop.eup %2678  ;;  %v2081_v16 = vmul.f32 %v2677_v26, %v2079_v13  ;;  %vm2086_vm0 = vweird.f32 %v2677_v26 }
 0xd59   :  { %v2098_v7 = vmul.f32 %v2679_v41, %v2096_v14  ;;  %vm2103_vm2 = vweird.f32 %v2679_v41  ;;  %vm2087_vm5 = vmor %vm2085_vm4, %vm2086_vm0 }
 0xd5a   :  { %v2082_v46 = vsub.f32 1.0, %v2081_v16  ;;  %vm2104_vm9 = vmor %vm2102_vm10, %vm2103_vm2 }
 0xd5b   :  { %v2099_v22 = vsub.f32 1.0, %v2098_v7 }
 0xd5c   :  { %v2083_v15 = vmul.f32 %v2677_v26, %v2082_v46 }
 0xd5d   :  { %v2100_v63 = vmul.f32 %v2679_v41, %v2099_v22 }
 0xd5e   :  { %v2084_v30 = vadd.f32 %v2677_v26, %v2083_v15  ;;  %v2543_v15 = vld [vmem:[#allocation8 + $0x68] ss:$0 sm:$0xff] }
 0xd5f   :  { %v2101_v61 = vadd.f32 %v2679_v41, %v2100_v63 }
 0xd60   :  { %v2088_v53 = vsel %vm2087_vm5, %v2677_v26, %v2084_v30 }
 0xd61   :  { %v2093_v25 = vsel %vm2090_vm6, %v2092_v31, %v2088_v53  ;;  %v2105_v36 = vsel %vm2104_vm9, %v2679_v41, %v2101_v61 }
 0xd62   :  { %v2094_v8 = vmul.f32 -1.0, %v2093_v25  ;;  %v2110_v37 = vsel %vm2107_vm11, %v2109_v21, %v2105_v36 }
 0xd63   :  { %v2111_v38 = vmul.f32 %v2446_v34, %v2110_v37 }
 0xd65   :  { %v2112_v29 = vsel %vm2078_vm12, %v2111_v38, %v2074_v12 }
 0xd66   :  { %v2113_v48 = vsel %vm2075_vm3, %v2094_v8, %v2112_v29 }
 0xd67   :  { %v2116_v44 = vmul.f32 %v2113_v48, %v2113_v48 }
 0xd69   :  { %v2117_v1 = vmul.f32 0.080537446, %v2116_v44 }
 0xd6b   :  { %v2447_v39 = vadd.f32 -0.13877685, %v2117_v1 }
 0xd6d   :  { %v2119_v10 = vmul.f32 %v2447_v39, %v2116_v44 }
 0xd6f   :  { %v2120_v18 = vadd.f32 0.19977711, %v2119_v10 }
 0xd71   :  { %v2121_v33 = vmul.f32 %v2120_v18, %v2116_v44 }
 0xd73   :  { %v2448_v35 = vadd.f32 -0.3333295, %v2121_v33 }
 0xd75   :  { %v2123_v42 = vmul.f32 %v2448_v35, %v2116_v44 }
 0xd77   :  { %v2124_v43 = vmul.f32 %v2123_v42, %v2113_v48 }
 0xd79   :  { %v2125_v45 = vadd.f32 %v2124_v43, %v2113_v48 }
 0xd7b   :  { %v2126_v51 = vadd.f32 %v2125_v45, %v2115_v32 }
 0xd7d   :  { %v2127_v54 = vmul.f32 0.70710677, %v2126_v51 }
 0xd7f   :  { %v2129_v55 = vmul.f32 %v2128_v17, %v2127_v54 }
 0xd81   :  { %v2139_v56 = vpack.c.bf16 %v2129_v55, %v2129_v55 }
 0xd83   :  { %2457 = vmatmul.msk.bf16.vlgmr.msrb.gmra.mxu2 %vm252_vm1, %v2139_v56 }
 0xd9e   :  { %v1659_v57 = vpop.xlane.xlu2 %1658 }
 0xd9f   :  { %v1660_v60 = vmax.f32 %v1659_v57, 1e-30 }
 0xda1   :  { %2680 = vrsqrt.f32 %v1660_v60  ;;  %vm1667_vm14 = vweird.f32 %v1660_v60 }
 0xda7   :  { %v2681_v19 = vpop.eup %2680 }
 0xda8   :  { %v1662_v0 = vmul.f32 %v2681_v19, %v1660_v60  ;;  %vm1668_vm13 = vweird.f32 %v2681_v19 }
 0xda9   :  { %vm1669_vm15 = vmor %vm1667_vm14, %vm1668_vm13 }
 0xdaa   :  { %v1663_v24 = vmul.f32 %v2681_v19, %v1662_v0 }
 0xdac   :  { %v1664_v47 = vmul.f32 0.5, %v1663_v24 }
 0xdae   :  { %v1665_v3 = vsub.f32 1.5, %v1664_v47 }
 0xdb0   :  { %v1666_v52 = vmul.f32 %v2681_v19, %v1665_v3 }
 0xdb2   :  { %v1670_v50 = vsel %vm1669_vm15, %v2681_v19, %v1666_v52 }
 0xdb3   :  { %v1671_v59 = vmul.f32 %v1670_v50, %v1660_v60  ;;  %v1684_v16 = vmul.f32 %v1670_v50, %v3220_v28 }
 0xdb5   :  { %v1672_v4 = vmul.f32 1.4142135, %v1671_v59 }
 0xdb7   :  { %v2422_v6 = vclamps-f32 %v1672_v4, 0.9999999 }
 0xdb9   :  { %v1675_v5 = vadd.f32 1.0, %v2422_v6  ;;  %v1678_v9 = vsub.f32 1.0, %v2422_v6 }
 0xdbb   :  { %2682 = vlog2.f32 %v1675_v5 }
 0xdbc   :  { %2684 = vlog2.f32 %v1678_v9 }
 0xdc1   :  { %v2683_v11 = vpop.eup %2682 }
 0xdc2   :  { %v2685_v40 = vpop.eup %2684  ;;  %v1677_v12 = vmul.f32 0.6931472, %v2683_v11 }
 0xdc3   :  { %v1680_v13 = vmul.f32 0.6931472, %v2685_v40 }
 0xdc5   :  { %v1681_v14 = vsub.f32 %v1677_v12, %v1680_v13 }
 0xdc7   :  { %v1682_v26 = vmul.f32 0.5, %v1681_v14 }
 0xdc9   :  { %v1683_v41 = vmul.f32 0.70710677, %v1682_v26 }
 0xdcb   :  { %v1685_v7 = vmul.f32 %v1684_v16, %v1683_v41 }
 0xdcd   :  { %v2134_v46 = vpack.c.bf16 %v1685_v7, %v1685_v7 }
 0xdcf   :  { %2466 = vmatmul.msk.bf16.vlgmr.msra.gmra.mxu0 %vm252_vm1, %v2134_v46 }
 0xe06   :  { %v2164_v20 = vpop.f32.mrf.mxu2 }
 0xe0e   :  { %v2166_v22 = vpop.f32.mrf.mxu2 }
 0xe4c   :  { %v2192_v23 = vpop.f32.mrf.mxu0 }
 0xe4d   :  { %v2193_v49 = vadd.f32 %v2192_v23, %v2164_v20 }
 0xe4f   :  { %v2198_v63 = vadd.f32 %v2543_v15, %v2193_v49 }
 0xe51   :  { %2199 = vmax.xlane.f32.xlu0 %v2198_v63 }
 0xe54   :  { %v2194_v27 = vpop.f32.mrf.mxu0 }
 0xec4   :  { %v2200_v30 = vpop.xlane.xlu0 %2199 }
 0xec5   :  { %v2201_v31 = vsub.f32 %v2198_v63, %v2200_v30 }
 0xec7   :  { %v2202_v61 = vmul.f32 1.442695, %v2201_v31 }
 0xec9   :  { %2686 = vpow2.f32 %v2202_v61 }
 0xecf   :  { %v2687_v53 = vpop.eup %2686 }
 0xed0   :  { %2204 = vadd.xlane.f32.xlu1 %v2687_v53 }
 0xf43   :  { %v2205_v34 = vpop.xlane.xlu1 %2204 }
 0xf44   :  { %2688 = vrcp.f32 %v2205_v34  ;;  %v2217_v36 = vand.u32 2147483648, %v2205_v34  ;;  %v2215_v37 = vand.u32 2147483647, %v2205_v34  ;;  %vm2211_vm0 = vweird.f32 %v2205_v34 }
 0xf46   :  { %v2218_v29 = vor.u32 1.1754944e-38, %v2217_v36  ;;  %vm2216_vm3 = vcmp.eq.f32.partialorder %v2215_v37, 8.507059e+37 }
 0xf4a   :  { %v2689_v28 = vpop.eup %2688 }
 0xf4b   :  { %v2207_v21 = vmul.f32 %v2689_v28, %v2205_v34  ;;  %vm2212_vm1 = vweird.f32 %v2689_v28 }
 0xf4c   :  { %vm2213_vm2 = vmor %vm2211_vm0, %vm2212_vm1 }
 0xf4d   :  { %v2208_v25 = vsub.f32 1.0, %v2207_v21 }
 0xf4f   :  { %v2209_v8 = vmul.f32 %v2689_v28, %v2208_v25 }
 0xf51   :  { %v2210_v38 = vadd.f32 %v2689_v28, %v2209_v8 }
 0xf53   :  { %v2214_v48 = vsel %vm2213_vm2, %v2689_v28, %v2210_v38 }
 0xf54   :  { %v2219_v44 = vsel %vm2216_vm3, %v2218_v29, %v2214_v48 }
 0xf55   :  { %v2220_v1 = vmul.f32 %v2687_v53, %v2219_v44 }
 0xf57   :  { %2221 = vst [vmem:[#allocation10] sm:$0xff] %v2220_v1 }
 0xf58   :  { %2232 = dma.vmem_to_hbm [thread:$0]  %s2228_s3, 128, %s2230_s13, [#allocation4]  }
 0xf59   :  { %2816 = dma.done.wait [#allocation4], 128  }
 0xf5a   :  { %2817 = vsyncadd [#allocation4], 4294967168 }
 0xf5b   :  { %2237 = vsyncpa [#allocation3], 1 }
 0xf5c   :  { %2238 = vsyncpa [#allocation6], 1 }
 0xf5d   :  { %2239 = vsyncpa [#allocation9], 1 }
 0xf5e   :  { %2240 = vsyncpa [#allocation4], 1 }

</bundles_post_ra>
